<compile_context>
chip_gen: v5e
topology: v5e:2x2
jax: 0.10.0
libtpu: 0.0.40
codegen_flags: <defaults>
</compile_context>

<pallas_src>
import functools

import numpy as np

import jax
import jax.numpy as jnp
from jax import lax
from jax.experimental import pallas as pl
from jax.experimental.pallas import tpu as pltpu


# ----------------------------- Pallas kernel ------------------------------- #

def fused_actor_kernel(x_ref, w1_ref, b1_ref, w2_ref, b2_ref,
                       wf1_ref, bf1_ref, wf2_ref, bf2_ref,
                       wf3_ref, bf3_ref, wfo_ref, bfo_ref,
                       o_ref, *, NP, Hp, Wp, C1, K1, POOL):
    """Whole Convolutional_ActorNetwork forward in one VMEM-resident kernel.

    x_ref  : (H*NP, W*Cin)            raw input; rows=(h,n) h-major, lanes=(w,c)
    w1_ref : (K1, W*Cin, Wp*POOL*C1)  conv1 as K1 row-shifted W-Toeplitz mats
    w2_ref : (Hp*Wp*C1, Ho2*Wo2*C2)   conv2 block-Toeplitz lift
    wf*_ref: pre-transposed dense weights (wf1 rows pre-permuted for torch's
             NCHW flatten); wfo/bfo lane-padded to a multiple of 128.
    o_ref  : (NP, out_pad)
    """
    Ho1p = Hp * POOL          # conv1 output rows actually consumed by the pool

    # ---- conv1: K1 row-shifted Toeplitz matmuls, accumulated in f32 ----------
    z = jnp.dot(x_ref[0:Ho1p * NP, :], w1_ref[0],
                preferred_element_type=jnp.float32)
    for di in range(1, K1):
        z = z + jnp.dot(x_ref[di * NP:(di + Ho1p) * NP, :], w1_ref[di],
                        preferred_element_type=jnp.float32)
    # z: (Ho1p*NP, Wp*POOL*C1), rows=(i,n) i-major, lanes=(j,c) j-major.

    # ---- MaxPool2d(POOL): pool j over lane groups, then i over row groups ----
    cols = []
    for jp in range(Wp):
        c = z[:, jp * POOL * C1: jp * POOL * C1 + C1]
        for tj in range(1, POOL):
            j0 = (jp * POOL + tj) * C1
            c = jnp.maximum(c, z[:, j0:j0 + C1])
        cols.append(c)
    zj = jnp.concatenate(cols, axis=1)                  # (Ho1p*NP, Wp*C1)

    rows = []
    for ip in range(Hp):
        r = zj[ip * POOL * NP: ip * POOL * NP + NP, :]
        for ti in range(1, POOL):
            i0 = (ip * POOL + ti) * NP
            r = jnp.maximum(r, zj[i0:i0 + NP, :])
        rows.append(r)
    y = jnp.concatenate(rows, axis=1)                   # (NP, Hp*Wp*C1) NHWC-flat

    # Bias + ReLU commute with the max (per-channel constant bias, monotone
    # ReLU), so relu(maxpool(conv1)+b) == maxpool(relu(conv1+b)) exactly.
    y = jnp.maximum(y + b1_ref[...], 0.0)

    # ---- conv2 (dense block-Toeplitz) + ReLU; maxpool2 = MaxPool2d(1) = id ----
    h = jnp.maximum(
        jnp.dot(y, w2_ref[...], preferred_element_type=jnp.float32) + b2_ref[...],
        0.0)                                            # (NP, Ho2*Wo2*C2)

    # ---- fc stack; torch's NCHW flatten is folded into wf1's permuted rows ---
    h = jnp.maximum(jnp.dot(h, wf1_ref[...], preferred_element_type=jnp.float32)
                    + bf1_ref[...], 0.0)
    h = jnp.maximum(jnp.dot(h, wf2_ref[...], preferred_element_type=jnp.float32)
                    + bf2_ref[...], 0.0)
    h = jnp.maximum(jnp.dot(h, wf3_ref[...], preferred_element_type=jnp.float32)
                    + bf3_ref[...], 0.0)
    o_ref[...] = (jnp.dot(h, wfo_ref[...], preferred_element_type=jnp.float32)
                  + bfo_ref[...])


# --------------------------- one-time weight prep --------------------------- #

def prepare_params(params, input_size):
    """Reshape / transpose / lift all weights ONCE (never per forward call)."""
    (w1c, b1c, w2c, b2c, wf1, bf1, wf2, bf2, wf3, bf3, wfo, bfo) = params
    Cin, H, W = input_size
    K1, K2, POOL = 5, 3, 3
    C1, C2 = w1c.shape[0], w2c.shape[0]
    Ho1, Wo1 = H - K1 + 1, W - K1 + 1
    Hp, Wp = Ho1 // POOL, Wo1 // POOL        # MaxPool2d(3) floors, like torch
    Wo1p = Wp * POOL                         # conv1 width consumed by the pool
    Ho2, Wo2 = Hp - K2 + 1, Wp - K2 + 1

    # conv1 -> K1 W-Toeplitz matrices: row (w*Cin + c), col (j*C1 + co).
    # Replaces the 1.6 MB, 94%-zero kron lift with 240 KB; K per dot = W*Cin.
    w1np = np.asarray(w1c, np.float32)
    w1_toe = np.zeros((K1, W * Cin, Wo1p * C1), np.float32)
    for di in range(K1):
        for j in range(Wo1p):
            for dj in range(K1):
                r0 = (j + dj) * Cin
                w1_toe[di, r0:r0 + Cin, j * C1:(j + 1) * C1] = w1np[:, :, di, dj].T
    b1_lift = np.tile(np.asarray(b1c, np.float32), Hp * Wp).reshape(1, -1)

    # conv2 as a dense block-Toeplitz map: NHWC-flat pooled (Hp*Wp*C1)
    # -> NHWC-flat conv2 output (Ho2*Wo2*C2).
    w2np = np.asarray(w2c, np.float32)
    w2_lift = np.zeros((Hp * Wp * C1, Ho2 * Wo2 * C2), np.float32)
    for i in range(Ho2):
        for j in range(Wo2):
            for di in range(K2):
                for dj in range(K2):
                    r0 = ((i + di) * Wp + (j + dj)) * C1
                    c0 = (i * Wo2 + j) * C2
                    w2_lift[r0:r0 + C1, c0:c0 + C2] = w2np[:, :, di, dj].T
    b2_lift = np.tile(np.asarray(b2c, np.float32), Ho2 * Wo2).reshape(1, -1)

    # fc1: transpose + permute its input rows so the kernel's NHWC flatten
    # (i, j, c) matches torch's NCHW flatten (c, i, j) exactly.
    perm = np.asarray([c * (Ho2 * Wo2) + i * Wo2 + j
                       for i in range(Ho2) for j in range(Wo2) for c in range(C2)],
                      dtype=np.int32)
    wf1_p = np.asarray(wf1, np.float32).T[perm, :]      # (Ho2*Wo2*C2, 512)

    # f_out: lane-pad the output columns to a multiple of 128 (lane-dense store).
    out_dim = wfo.shape[0]
    out_pad = max(128, ((out_dim + 127) // 128) * 128)
    wfo_p = np.zeros((wfo.shape[1], out_pad), np.float32)
    wfo_p[:, :out_dim] = np.asarray(wfo, np.float32).T
    bfo_p = np.zeros((1, out_pad), np.float32)
    bfo_p[0, :out_dim] = np.asarray(bfo, np.float32)

    to_dev = jnp.asarray
    return (to_dev(w1_toe), to_dev(b1_lift), to_dev(w2_lift), to_dev(b2_lift),
            to_dev(wf1_p), to_dev(np.asarray(bf1, np.float32).reshape(1, -1)),
            to_dev(np.asarray(wf2, np.float32).T),
            to_dev(np.asarray(bf2, np.float32).reshape(1, -1)),
            to_dev(np.asarray(wf3, np.float32).T),
            to_dev(np.asarray(bf3, np.float32).reshape(1, -1)),
            to_dev(wfo_p), to_dev(bfo_p))


# ------------------------------- forward pass ------------------------------- #

@functools.partial(jax.jit, static_argnames=("out_dim",))
def conv_actor_forward(x, prepped, *, out_dim):
    """Forward pass. x: (N, C_in, H, W) float32; prepped = prepare_params(...)."""
    (w1_toe, b1_lift, w2_lift, b2_lift,
     wf1_p, bf1r, wf2t, bf2r, wf3t, bf3r, wfo_p, bfo_p) = prepped
    N, Cin, H, W = x.shape
    K1, POOL = 5, 3
    Ho1, Wo1 = H - K1 + 1, W - K1 + 1
    Hp, Wp = Ho1 // POOL, Wo1 // POOL
    C1 = b1_lift.shape[1] // (Hp * Wp)
    NP = max(8, -(-N // 8) * 8)   # pad batch so every row group is sublane-aligned

    # Cheap, non-inflating prologue: (N,C,H,W) -> rows=(h,n) h-major, lanes=(w,c).
    # ~8 KB moved; the old wrapper-side im2col (460 KB HBM intermediate plus
    # stack/6-D-transpose/pad prologue) is gone — patches are built in-kernel.
    x2 = x.transpose(2, 0, 3, 1).reshape(H, N, W * Cin)
    x2 = jnp.pad(x2, ((0, 0), (0, NP - N), (0, 0)))
    x2 = x2.reshape(H * NP, W * Cin)

    vmem = pl.BlockSpec(memory_space=pltpu.MemorySpace.VMEM)
    kernel = functools.partial(fused_actor_kernel,
                               NP=NP, Hp=Hp, Wp=Wp, C1=C1, K1=K1, POOL=POOL)
    out = pl.pallas_call(
        kernel,
        out_shape=jax.ShapeDtypeStruct((NP, wfo_p.shape[1]), jnp.float32),
        in_specs=[vmem] * 13,
        out_specs=vmem,
    )(x2, w1_toe, b1_lift, w2_lift, b2_lift,
      wf1_p, bf1r, wf2t, bf2r, wf3t, bf3r, wfo_p, bfo_p)
    return out[:N, :out_dim]


# -------------------------- params & reference ----------------------------- #

def init_params(key, input_size, action_size):
    """Deterministic PyTorch-style uniform(-1/sqrt(fan_in), 1/sqrt(fan_in)) init."""
    Cin, H, W = input_size
    h2, w2 = (H - 4) // 3 - 2, (W - 4) // 3 - 2
    fc_in = 16 * h2 * w2

    def uni(k, shape, fan_in):
        b = float(fan_in) ** -0.5
        return jax.random.uniform(k, shape, jnp.float32, -b, b)

    ks = jax.random.split(key, 12)
    return (
        uni(ks[0], (16, Cin, 5, 5), Cin * 25), uni(ks[1], (16,), Cin * 25),
        uni(ks[2], (16, 16, 3, 3), 16 * 9),    uni(ks[3], (16,), 16 * 9),
        uni(ks[4], (512, fc_in), fc_in),       uni(ks[5], (512,), fc_in),
        uni(ks[6], (512, 512), 512),           uni(ks[7], (512,), 512),
        uni(ks[8], (512, 512), 512),           uni(ks[9], (512,), 512),
        uni(ks[10], (action_size * 2, 512), 512),
        uni(ks[11], (action_size * 2,), 512),
    )


def reference_forward(x, params):
    """Pure-JAX reference mirroring the PyTorch forward, for validation."""
    (w1c, b1c, w2c, b2c, wf1, bf1, wf2, bf2, wf3, bf3, wfo, bfo) = params
    dn = ('NCHW', 'OIHW', 'NCHW')
    y = lax.conv_general_dilated(x, w1c, (1, 1), 'VALID', dimension_numbers=dn)
    y = jax.nn.relu(y + b1c.reshape(1, -1, 1, 1))
    y = lax.reduce_window(y, -jnp.inf, lax.max, (1, 1, 3, 3), (1, 1, 3, 3), 'VALID')
    y = lax.conv_general_dilated(y, w2c, (1, 1), 'VALID', dimension_numbers=dn)
    y = jax.nn.relu(y + b2c.reshape(1, -1, 1, 1))
    y = y.reshape(y.shape[0], -1)
    y = jax.nn.relu(y @ wf1.T + bf1)
    y = jax.nn.relu(y @ wf2.T + bf2)
    y = jax.nn.relu(y @ wf3.T + bf3)
    return y @ wfo.T + bfo


if __name__ == "__main__":
    key = jax.random.PRNGKey(0)
    kx, kp = jax.random.split(key)

    input_size = (4, 16, 16)          # (C_in, H, W)  -> fc_input_size = 64
    action_size = 4                   # f_out width = 8
    batch = 2

    x = jax.random.normal(kx, (batch, *input_size), jnp.float32)
    params = init_params(kp, input_size, action_size)
    prepped = prepare_params(params, input_size)   # one-time weight prep

    out = conv_actor_forward(x, prepped, out_dim=action_size * 2)
    out = jax.block_until_ready(out)

    ref = reference_forward(x, params)
    assert out.shape == (batch, action_size * 2), out.shape
    assert jnp.allclose(out, ref, atol=1e-4, rtol=1e-4), \
        float(jnp.max(jnp.abs(out - ref)))

    print("KERNEL_OK")
</pallas_src>

<mosaic_0001>
module attributes {stable_mosaic.version = 11 : i64} {
  func.func @fused_actor_kernel(%arg0: memref<128x64xf32, #tpu.memory_space<vmem>>, %arg1: memref<5x64x192xf32, #tpu.memory_space<vmem>>, %arg2: memref<1x256xf32, #tpu.memory_space<vmem>>, %arg3: memref<256x64xf32, #tpu.memory_space<vmem>>, %arg4: memref<1x64xf32, #tpu.memory_space<vmem>>, %arg5: memref<64x512xf32, #tpu.memory_space<vmem>>, %arg6: memref<1x512xf32, #tpu.memory_space<vmem>>, %arg7: memref<512x512xf32, #tpu.memory_space<vmem>>, %arg8: memref<1x512xf32, #tpu.memory_space<vmem>>, %arg9: memref<512x512xf32, #tpu.memory_space<vmem>>, %arg10: memref<1x512xf32, #tpu.memory_space<vmem>>, %arg11: memref<512x128xf32, #tpu.memory_space<vmem>>, %arg12: memref<1x128xf32, #tpu.memory_space<vmem>>, %arg13: memref<8x128xf32, #tpu.memory_space<vmem>>) attributes {dimension_semantics = [], scalar_prefetch = 0 : i64, scratch_operands = 0 : i64, tpu.core_type = #tpu.core_type<tc>} {
    %c0 = arith.constant 0 : index
    %c0_0 = arith.constant 0 : index
    %0 = vector.load %arg0[%c0, %c0_0] : memref<128x64xf32, #tpu.memory_space<vmem>>, vector<96x64xf32>
    %c0_1 = arith.constant 0 : index
    %c0_2 = arith.constant 0 : index
    %c0_3 = arith.constant 0 : index
    %1 = vector.load %arg1[%c0_1, %c0_2, %c0_3] : memref<5x64x192xf32, #tpu.memory_space<vmem>>, vector<1x64x192xf32>
    %2 = vector.shape_cast %1 : vector<1x64x192xf32> to vector<64x192xf32>
    %cst = arith.constant dense<0.000000e+00> : vector<96x192xf32>
    %3 = tpu.matmul %0, %2, %cst {dimension_numbers = #tpu.dot_dimension_numbers<[1], [0], [0], [1], [0, 0, 1, 1], [], []>} : vector<96x64xf32>, vector<64x192xf32>, vector<96x192xf32> -> vector<96x192xf32>
    %c8 = arith.constant 8 : index
    %c0_4 = arith.constant 0 : index
    %4 = vector.load %arg0[%c8, %c0_4] : memref<128x64xf32, #tpu.memory_space<vmem>>, vector<96x64xf32>
    %c1 = arith.constant 1 : index
    %c0_5 = arith.constant 0 : index
    %c0_6 = arith.constant 0 : index
    %5 = vector.load %arg1[%c1, %c0_5, %c0_6] : memref<5x64x192xf32, #tpu.memory_space<vmem>>, vector<1x64x192xf32>
    %6 = vector.shape_cast %5 : vector<1x64x192xf32> to vector<64x192xf32>
    %cst_7 = arith.constant dense<0.000000e+00> : vector<96x192xf32>
    %7 = tpu.matmul %4, %6, %cst_7 {dimension_numbers = #tpu.dot_dimension_numbers<[1], [0], [0], [1], [0, 0, 1, 1], [], []>} : vector<96x64xf32>, vector<64x192xf32>, vector<96x192xf32> -> vector<96x192xf32>
    %8 = arith.addf %3, %7 : vector<96x192xf32>
    %c16 = arith.constant 16 : index
    %c0_8 = arith.constant 0 : index
    %9 = vector.load %arg0[%c16, %c0_8] : memref<128x64xf32, #tpu.memory_space<vmem>>, vector<96x64xf32>
    %c2 = arith.constant 2 : index
    %c0_9 = arith.constant 0 : index
    %c0_10 = arith.constant 0 : index
    %10 = vector.load %arg1[%c2, %c0_9, %c0_10] : memref<5x64x192xf32, #tpu.memory_space<vmem>>, vector<1x64x192xf32>
    %11 = vector.shape_cast %10 : vector<1x64x192xf32> to vector<64x192xf32>
    %cst_11 = arith.constant dense<0.000000e+00> : vector<96x192xf32>
    %12 = tpu.matmul %9, %11, %cst_11 {dimension_numbers = #tpu.dot_dimension_numbers<[1], [0], [0], [1], [0, 0, 1, 1], [], []>} : vector<96x64xf32>, vector<64x192xf32>, vector<96x192xf32> -> vector<96x192xf32>
    %13 = arith.addf %8, %12 : vector<96x192xf32>
    %c24 = arith.constant 24 : index
    %c0_12 = arith.constant 0 : index
    %14 = vector.load %arg0[%c24, %c0_12] : memref<128x64xf32, #tpu.memory_space<vmem>>, vector<96x64xf32>
    %c3 = arith.constant 3 : index
    %c0_13 = arith.constant 0 : index
    %c0_14 = arith.constant 0 : index
    %15 = vector.load %arg1[%c3, %c0_13, %c0_14] : memref<5x64x192xf32, #tpu.memory_space<vmem>>, vector<1x64x192xf32>
    %16 = vector.shape_cast %15 : vector<1x64x192xf32> to vector<64x192xf32>
    %cst_15 = arith.constant dense<0.000000e+00> : vector<96x192xf32>
    %17 = tpu.matmul %14, %16, %cst_15 {dimension_numbers = #tpu.dot_dimension_numbers<[1], [0], [0], [1], [0, 0, 1, 1], [], []>} : vector<96x64xf32>, vector<64x192xf32>, vector<96x192xf32> -> vector<96x192xf32>
    %18 = arith.addf %13, %17 : vector<96x192xf32>
    %c32 = arith.constant 32 : index
    %c0_16 = arith.constant 0 : index
    %19 = vector.load %arg0[%c32, %c0_16] : memref<128x64xf32, #tpu.memory_space<vmem>>, vector<96x64xf32>
    %c4 = arith.constant 4 : index
    %c0_17 = arith.constant 0 : index
    %c0_18 = arith.constant 0 : index
    %20 = vector.load %arg1[%c4, %c0_17, %c0_18] : memref<5x64x192xf32, #tpu.memory_space<vmem>>, vector<1x64x192xf32>
    %21 = vector.shape_cast %20 : vector<1x64x192xf32> to vector<64x192xf32>
    %cst_19 = arith.constant dense<0.000000e+00> : vector<96x192xf32>
    %22 = tpu.matmul %19, %21, %cst_19 {dimension_numbers = #tpu.dot_dimension_numbers<[1], [0], [0], [1], [0, 0, 1, 1], [], []>} : vector<96x64xf32>, vector<64x192xf32>, vector<96x192xf32> -> vector<96x192xf32>
    %23 = arith.addf %18, %22 : vector<96x192xf32>
    %24 = vector.extract_strided_slice %23 {offsets = [0, 0], sizes = [96, 16], strides = [1, 1]} : vector<96x192xf32> to vector<96x16xf32>
    %25 = vector.extract_strided_slice %23 {offsets = [0, 16], sizes = [96, 16], strides = [1, 1]} : vector<96x192xf32> to vector<96x16xf32>
    %26 = arith.maximumf %24, %25 : vector<96x16xf32>
    %27 = vector.extract_strided_slice %23 {offsets = [0, 32], sizes = [96, 16], strides = [1, 1]} : vector<96x192xf32> to vector<96x16xf32>
    %28 = arith.maximumf %26, %27 : vector<96x16xf32>
    %29 = vector.extract_strided_slice %23 {offsets = [0, 48], sizes = [96, 16], strides = [1, 1]} : vector<96x192xf32> to vector<96x16xf32>
    %30 = vector.extract_strided_slice %23 {offsets = [0, 64], sizes = [96, 16], strides = [1, 1]} : vector<96x192xf32> to vector<96x16xf32>
    %31 = arith.maximumf %29, %30 : vector<96x16xf32>
    %32 = vector.extract_strided_slice %23 {offsets = [0, 80], sizes = [96, 16], strides = [1, 1]} : vector<96x192xf32> to vector<96x16xf32>
    %33 = arith.maximumf %31, %32 : vector<96x16xf32>
    %34 = vector.extract_strided_slice %23 {offsets = [0, 96], sizes = [96, 16], strides = [1, 1]} : vector<96x192xf32> to vector<96x16xf32>
    %35 = vector.extract_strided_slice %23 {offsets = [0, 112], sizes = [96, 16], strides = [1, 1]} : vector<96x192xf32> to vector<96x16xf32>
    %36 = arith.maximumf %34, %35 : vector<96x16xf32>
    %37 = vector.extract_strided_slice %23 {offsets = [0, 128], sizes = [96, 16], strides = [1, 1]} : vector<96x192xf32> to vector<96x16xf32>
    %38 = arith.maximumf %36, %37 : vector<96x16xf32>
    %39 = vector.extract_strided_slice %23 {offsets = [0, 144], sizes = [96, 16], strides = [1, 1]} : vector<96x192xf32> to vector<96x16xf32>
    %40 = vector.extract_strided_slice %23 {offsets = [0, 160], sizes = [96, 16], strides = [1, 1]} : vector<96x192xf32> to vector<96x16xf32>
    %41 = arith.maximumf %39, %40 : vector<96x16xf32>
    %42 = vector.extract_strided_slice %23 {offsets = [0, 176], sizes = [96, 16], strides = [1, 1]} : vector<96x192xf32> to vector<96x16xf32>
    %43 = arith.maximumf %41, %42 : vector<96x16xf32>
    %44 = tpu.concatenate %28, %33, %38, %43 in 1 : vector<96x16xf32>, vector<96x16xf32>, vector<96x16xf32>, vector<96x16xf32> -> vector<96x64xf32>
    %45 = vector.extract_strided_slice %44 {offsets = [0, 0], sizes = [8, 64], strides = [1, 1]} : vector<96x64xf32> to vector<8x64xf32>
    %46 = vector.extract_strided_slice %44 {offsets = [8, 0], sizes = [8, 64], strides = [1, 1]} : vector<96x64xf32> to vector<8x64xf32>
    %47 = arith.maximumf %45, %46 : vector<8x64xf32>
    %48 = vector.extract_strided_slice %44 {offsets = [16, 0], sizes = [8, 64], strides = [1, 1]} : vector<96x64xf32> to vector<8x64xf32>
    %49 = arith.maximumf %47, %48 : vector<8x64xf32>
    %50 = vector.extract_strided_slice %44 {offsets = [24, 0], sizes = [8, 64], strides = [1, 1]} : vector<96x64xf32> to vector<8x64xf32>
    %51 = vector.extract_strided_slice %44 {offsets = [32, 0], sizes = [8, 64], strides = [1, 1]} : vector<96x64xf32> to vector<8x64xf32>
    %52 = arith.maximumf %50, %51 : vector<8x64xf32>
    %53 = vector.extract_strided_slice %44 {offsets = [40, 0], sizes = [8, 64], strides = [1, 1]} : vector<96x64xf32> to vector<8x64xf32>
    %54 = arith.maximumf %52, %53 : vector<8x64xf32>
    %55 = vector.extract_strided_slice %44 {offsets = [48, 0], sizes = [8, 64], strides = [1, 1]} : vector<96x64xf32> to vector<8x64xf32>
    %56 = vector.extract_strided_slice %44 {offsets = [56, 0], sizes = [8, 64], strides = [1, 1]} : vector<96x64xf32> to vector<8x64xf32>
    %57 = arith.maximumf %55, %56 : vector<8x64xf32>
    %58 = vector.extract_strided_slice %44 {offsets = [64, 0], sizes = [8, 64], strides = [1, 1]} : vector<96x64xf32> to vector<8x64xf32>
    %59 = arith.maximumf %57, %58 : vector<8x64xf32>
    %60 = vector.extract_strided_slice %44 {offsets = [72, 0], sizes = [8, 64], strides = [1, 1]} : vector<96x64xf32> to vector<8x64xf32>
    %61 = vector.extract_strided_slice %44 {offsets = [80, 0], sizes = [8, 64], strides = [1, 1]} : vector<96x64xf32> to vector<8x64xf32>
    %62 = arith.maximumf %60, %61 : vector<8x64xf32>
    %63 = vector.extract_strided_slice %44 {offsets = [88, 0], sizes = [8, 64], strides = [1, 1]} : vector<96x64xf32> to vector<8x64xf32>
    %64 = arith.maximumf %62, %63 : vector<8x64xf32>
    %65 = tpu.concatenate %49, %54, %59, %64 in 1 : vector<8x64xf32>, vector<8x64xf32>, vector<8x64xf32>, vector<8x64xf32> -> vector<8x256xf32>
    %c0_20 = arith.constant 0 : index
    %c0_21 = arith.constant 0 : index
    %66 = vector.load %arg2[%c0_20, %c0_21] : memref<1x256xf32, #tpu.memory_space<vmem>>, vector<1x256xf32>
    %67 = vector.broadcast %66 : vector<1x256xf32> to vector<8x256xf32>
    %68 = arith.addf %65, %67 : vector<8x256xf32>
    %cst_22 = arith.constant 0.000000e+00 : f32
    %69 = vector.broadcast %cst_22 : f32 to vector<8x256xf32>
    %70 = arith.maximumf %68, %69 : vector<8x256xf32>
    %c0_23 = arith.constant 0 : index
    %c0_24 = arith.constant 0 : index
    %71 = vector.load %arg3[%c0_23, %c0_24] : memref<256x64xf32, #tpu.memory_space<vmem>>, vector<256x64xf32>
    %cst_25 = arith.constant dense<0.000000e+00> : vector<8x64xf32>
    %72 = tpu.matmul %70, %71, %cst_25 {dimension_numbers = #tpu.dot_dimension_numbers<[1], [0], [0], [1], [0, 0, 1, 1], [], []>} : vector<8x256xf32>, vector<256x64xf32>, vector<8x64xf32> -> vector<8x64xf32>
    %c0_26 = arith.constant 0 : index
    %c0_27 = arith.constant 0 : index
    %73 = vector.load %arg4[%c0_26, %c0_27] : memref<1x64xf32, #tpu.memory_space<vmem>>, vector<1x64xf32>
    %74 = vector.broadcast %73 : vector<1x64xf32> to vector<8x64xf32>
    %75 = arith.addf %72, %74 : vector<8x64xf32>
    %cst_28 = arith.constant 0.000000e+00 : f32
    %76 = vector.broadcast %cst_28 : f32 to vector<8x64xf32>
    %77 = arith.maximumf %75, %76 : vector<8x64xf32>
    %c0_29 = arith.constant 0 : index
    %c0_30 = arith.constant 0 : index
    %78 = vector.load %arg5[%c0_29, %c0_30] : memref<64x512xf32, #tpu.memory_space<vmem>>, vector<64x512xf32>
    %cst_31 = arith.constant dense<0.000000e+00> : vector<8x512xf32>
    %79 = tpu.matmul %77, %78, %cst_31 {dimension_numbers = #tpu.dot_dimension_numbers<[1], [0], [0], [1], [0, 0, 1, 1], [], []>} : vector<8x64xf32>, vector<64x512xf32>, vector<8x512xf32> -> vector<8x512xf32>
    %c0_32 = arith.constant 0 : index
    %c0_33 = arith.constant 0 : index
    %80 = vector.load %arg6[%c0_32, %c0_33] : memref<1x512xf32, #tpu.memory_space<vmem>>, vector<1x512xf32>
    %81 = vector.broadcast %80 : vector<1x512xf32> to vector<8x512xf32>
    %82 = arith.addf %79, %81 : vector<8x512xf32>
    %cst_34 = arith.constant 0.000000e+00 : f32
    %83 = vector.broadcast %cst_34 : f32 to vector<8x512xf32>
    %84 = arith.maximumf %82, %83 : vector<8x512xf32>
    %c0_35 = arith.constant 0 : index
    %c0_36 = arith.constant 0 : index
    %85 = vector.load %arg7[%c0_35, %c0_36] : memref<512x512xf32, #tpu.memory_space<vmem>>, vector<512x512xf32>
    %cst_37 = arith.constant dense<0.000000e+00> : vector<8x512xf32>
    %86 = tpu.matmul %84, %85, %cst_37 {dimension_numbers = #tpu.dot_dimension_numbers<[1], [0], [0], [1], [0, 0, 1, 1], [], []>} : vector<8x512xf32>, vector<512x512xf32>, vector<8x512xf32> -> vector<8x512xf32>
    %c0_38 = arith.constant 0 : index
    %c0_39 = arith.constant 0 : index
    %87 = vector.load %arg8[%c0_38, %c0_39] : memref<1x512xf32, #tpu.memory_space<vmem>>, vector<1x512xf32>
    %88 = vector.broadcast %87 : vector<1x512xf32> to vector<8x512xf32>
    %89 = arith.addf %86, %88 : vector<8x512xf32>
    %cst_40 = arith.constant 0.000000e+00 : f32
    %90 = vector.broadcast %cst_40 : f32 to vector<8x512xf32>
    %91 = arith.maximumf %89, %90 : vector<8x512xf32>
    %c0_41 = arith.constant 0 : index
    %c0_42 = arith.constant 0 : index
    %92 = vector.load %arg9[%c0_41, %c0_42] : memref<512x512xf32, #tpu.memory_space<vmem>>, vector<512x512xf32>
    %cst_43 = arith.constant dense<0.000000e+00> : vector<8x512xf32>
    %93 = tpu.matmul %91, %92, %cst_43 {dimension_numbers = #tpu.dot_dimension_numbers<[1], [0], [0], [1], [0, 0, 1, 1], [], []>} : vector<8x512xf32>, vector<512x512xf32>, vector<8x512xf32> -> vector<8x512xf32>
    %c0_44 = arith.constant 0 : index
    %c0_45 = arith.constant 0 : index
    %94 = vector.load %arg10[%c0_44, %c0_45] : memref<1x512xf32, #tpu.memory_space<vmem>>, vector<1x512xf32>
    %95 = vector.broadcast %94 : vector<1x512xf32> to vector<8x512xf32>
    %96 = arith.addf %93, %95 : vector<8x512xf32>
    %cst_46 = arith.constant 0.000000e+00 : f32
    %97 = vector.broadcast %cst_46 : f32 to vector<8x512xf32>
    %98 = arith.maximumf %96, %97 : vector<8x512xf32>
    %c0_47 = arith.constant 0 : index
    %c0_48 = arith.constant 0 : index
    %99 = vector.load %arg11[%c0_47, %c0_48] : memref<512x128xf32, #tpu.memory_space<vmem>>, vector<512x128xf32>
    %cst_49 = arith.constant dense<0.000000e+00> : vector<8x128xf32>
    %100 = tpu.matmul %98, %99, %cst_49 {dimension_numbers = #tpu.dot_dimension_numbers<[1], [0], [0], [1], [0, 0, 1, 1], [], []>} : vector<8x512xf32>, vector<512x128xf32>, vector<8x128xf32> -> vector<8x128xf32>
    %c0_50 = arith.constant 0 : index
    %c0_51 = arith.constant 0 : index
    %101 = vector.load %arg12[%c0_50, %c0_51] : memref<1x128xf32, #tpu.memory_space<vmem>>, vector<1x128xf32>
    %102 = vector.broadcast %101 : vector<1x128xf32> to vector<8x128xf32>
    %103 = arith.addf %100, %102 : vector<8x128xf32>
    %c0_52 = arith.constant 0 : index
    %c0_53 = arith.constant 0 : index
    %104 = vector.load %arg13[%c0_52, %c0_53] : memref<8x128xf32, #tpu.memory_space<vmem>>, vector<8x128xf32>
    tpu.vector_store %arg13[%c0_52, %c0_53], %103 {strides = array<i32>} : memref<8x128xf32, #tpu.memory_space<vmem>>, vector<8x128xf32>,
    return
  }
}

</mosaic_0001>

<bundles_post_ra>
// kernel: conv_actor_forward.1
= control target key start
LH: loop header
LB: loop body
LE: loop exit
PB: predicated region body
PF: predicated region fallthrough
CT: control target
= control target key end

     0   :  { %18 = vsyncpa [#allocation3], 0  ;;  %s4617_s0 = inlined_call_operand.vmem [shape: f32[128,64], index: 0, kind: input, shape index: {}]   ;;  %s4618_s1 = inlined_call_operand.hbm [shape: f32[5,64,192], index: 1, kind: input, shape index: {}]   ;;  %s4619_s2 = inlined_call_operand.vmem [shape: f32[1,256], index: 2, kind: input, shape index: {}]   ;;  %s4620_s3 = inlined_call_operand.vmem [shape: f32[256,64], index: 3, kind: input, shape index: {}]   ;;  %s4621_s4 = inlined_call_operand.vmem [shape: f32[1,64], index: 4, kind: input, shape index: {}]   ;;  %s4622_s5 = inlined_call_operand.vmem [shape: f32[64,512], index: 5, kind: input, shape index: {}]   ;;  %s4623_s6 = inlined_call_operand.vmem [shape: f32[1,512], index: 6, kind: input, shape index: {}]   ;;  %s4624_s7 = inlined_call_operand.hbm [shape: f32[512,512], index: 7, kind: input, shape index: {}]   ;;  %s4625_s8 = inlined_call_operand.vmem [shape: f32[1,512], index: 8, kind: input, shape index: {}]   ;;  %s4626_s9 = inlined_call_operand.hbm [shape: f32[512,512], index: 9, kind: input, shape index: {}]   ;;  %s4627_s10 = inlined_call_operand.vmem [shape: f32[1,512], index: 10, kind: input, shape index: {}]   ;;  %s4628_s11 = inlined_call_operand.vmem [shape: f32[512,128], index: 11, kind: input, shape index: {}]   ;;  %s4629_s12 = inlined_call_operand.vmem [shape: f32[1,128], index: 12, kind: input, shape index: {}]   ;;  %s4630_s13 = inlined_call_operand.vmem [shape: f32[8,128], index: 13, kind: output, shape index: {}]  }
   0x1   :  { %19 = vsyncpa [#allocation5], 0  ;;  %s49_s27 = sshll.u32 %s4624_s7, 4  ;;  %s3182_s28 = smov [#allocation4]   ;;  %s50_s27 = int_to_ptr.hbm [resolvable:$true] %s49_s27 }
   0x2   :  { %s51_s29 = sshll.u32 %s3182_s28, 4  ;;  %s26_s15 = sshll.u32 %s4618_s1, 4  ;;  %s52_s29 = int_to_ptr.vmem [resolvable:$true] %s51_s29  ;;  %s27_s15 = int_to_ptr.hbm [resolvable:$true] %s26_s15 }
   0x3   :  { %s3183_s16 = smov 512   ;;  %s3184_s17 = smov 32  }
   0x4   :  { %57 = dma.hbm_to_vmem [thread:$0]  %s50_s27, 32768, %s52_s29, [#allocation5], %s3183_s16, %s3183_s16, %s3184_s17  }
   0x5   :  { %s3185_s18 = smov [#allocation2]   ;;  %s3186_s20 = smov 256  }
   0x6   :  { %s28_s19 = sshll.u32 %s3185_s18, 4  ;;  %s3187_s21 = smov 16   ;;  %s29_s19 = int_to_ptr.vmem [resolvable:$true] %s28_s19 }
   0x7   :  { %34 = dma.hbm_to_vmem [thread:$0]  %s27_s15, 10240, %s29_s19, [#allocation3], %s3186_s20, %s3186_s20, %s3187_s21  }
   0x8   :  { %s64_s23 = sshll.u32 %s4626_s9, 4  ;;  %s3188_s24 = smov [#allocation6]   ;;  %s65_s23 = int_to_ptr.hbm [resolvable:$true] %s64_s23 }
   0x9   :  { %s66_s25 = sshll.u32 %s3188_s24, 4  ;;  %s67_s25 = int_to_ptr.vmem [resolvable:$true] %s66_s25 }
   0xa   :  { %72 = dma.hbm_to_vmem [thread:$0]  %s65_s23, 32768, %s67_s25, [#allocation5], %s3183_s16, %s3183_s16, %s3184_s17  }
   0xb   :  { %3178 = dma.done.wait [#allocation3], 10240  }
   0xc   :  { %3179 = vsyncadd [#allocation3], 4294957056 }
   0xd   :  { %3180 = dma.done.wait [#allocation5], 65536  }
   0xe   :  { %3181 = vsyncadd [#allocation5], 4294901760  ;;  %v135_v0 = vld [vmem:[#allocation2 + $0xf0] sm:$0xff]  ;;  %v136_v1 = vld [vmem:[#allocation2 + $0xf8] sm:$0xff]  ;;  %vm137_vm0 = vcmask 523264   ;;  %s3190_s21 = smov 96  }
   0xf   :  { %v133_v2 = vld [vmem:[#allocation2 + $0xe0] sm:$0xff]  ;;  %182 = vmatpush.msra.mxu0 %v135_v0  ;;  %3078 = vmatpush.msra.mxu2 %v135_v0  ;;  %v134_v3 = vld [vmem:[#allocation2 + $0xe8] sm:$0xff]  ;;  %v131_v4 = vld [vmem:[#allocation2 + $0xd0] sm:$0xff]  ;;  %s3191_s7 = smov 64   ;;  %vm1346_vm1 = vcmask 130048   ;;  %vm1359_vm2 = vcmask 261120  }
  0x10   :  { %235 = vmatpush.msra.mxu1 %v136_v1  ;;  %3086 = vmatpush.msra.mxu3 %v136_v1  ;;  %v132_v5 = vld [vmem:[#allocation2 + $0xd8] sm:$0xff]  ;;  %v129_v6 = vld [vmem:[#allocation2 + $0xc0] sm:$0xff]  ;;  %v130_v7 = vld [vmem:[#allocation2 + $0xc8] sm:$0xff]  ;;  %vm1372_vm3 = vcmask 392192  }
  0x11   :  { %183 = vmatpush.msra.mxu0 %v133_v2  ;;  %3079 = vmatpush.msra.mxu2 %v133_v2  ;;  %v127_v8 = vld [vmem:[#allocation2 + $0xb0] sm:$0xff]  ;;  %v128_v9 = vld [vmem:[#allocation2 + $0xb8] sm:$0xff]  ;;  %v125_v10 = vld [vmem:[#allocation2 + $0xa0] sm:$0xff] }
  0x12   :  { %236 = vmatpush.msra.mxu1 %v134_v3  ;;  %3087 = vmatpush.msra.mxu3 %v134_v3  ;;  %v126_v11 = vld [vmem:[#allocation2 + $0xa8] sm:$0xff]  ;;  %v123_v12 = vld [vmem:[#allocation2 + $0x90] sm:$0xff]  ;;  %v124_v13 = vld [vmem:[#allocation2 + $0x98] sm:$0xff] }
  0x13   :  { %184 = vmatpush.msra.mxu0 %v131_v4  ;;  %3080 = vmatpush.msra.mxu2 %v131_v4  ;;  %v121_v14 = vld [vmem:[#allocation2 + $0x80] sm:$0xff]  ;;  %v122_v15 = vld [vmem:[#allocation2 + $0x88] sm:$0xff]  ;;  %v3281_v17 = vld [vmem:[%s4617_s0 + $0x58] sm:$0xff] }
  0x14   :  { %237 = vmatpush.msra.mxu1 %v132_v5  ;;  %3088 = vmatpush.msra.mxu3 %v132_v5  ;;  %v3276_v16 = vld [vmem:[%s4617_s0 + $0x8] sm:$0xff]  ;;  %v117_v18 = vld [vmem:[#allocation2 + $0x70] sm:$0xff]  ;;  %v118_v19 = vld [vmem:[#allocation2 + $0x78] sm:$0xff] }
  0x15   :  { %185 = vmatpush.msra.mxu0 %v129_v6  ;;  %3081 = vmatpush.msra.mxu2 %v129_v6  ;;  %v115_v20 = vld [vmem:[#allocation2 + $0x60] sm:$0xff]  ;;  %v116_v21 = vld [vmem:[#allocation2 + $0x68] sm:$0xff]  ;;  %v113_v22 = vld [vmem:[#allocation2 + $0x50] sm:$0xff] }
  0x16   :  { %238 = vmatpush.msra.mxu1 %v130_v7  ;;  %3089 = vmatpush.msra.mxu3 %v130_v7  ;;  %v114_v23 = vld [vmem:[#allocation2 + $0x58] sm:$0xff]  ;;  %v111_v24 = vld [vmem:[#allocation2 + $0x40] sm:$0xff]  ;;  %v112_v25 = vld [vmem:[#allocation2 + $0x48] sm:$0xff] }
  0x17   :  { %186 = vmatpush.msra.mxu0 %v127_v8  ;;  %3082 = vmatpush.msra.mxu2 %v127_v8  ;;  %v3294_v26 = vld [vmem:[%s4617_s0 + $0x10] sm:$0xff]  ;;  %v3299_v27 = vld [vmem:[%s4617_s0 + $0x60] sm:$0xff]  ;;  %v110_v29 = vld [vmem:[#allocation2 + $0x38] sm:$0xff] }
  0x18   :  { %239 = vmatpush.msra.mxu1 %v128_v9  ;;  %3090 = vmatpush.msra.mxu3 %v128_v9  ;;  %v109_v28 = vld [vmem:[#allocation2 + $0x30] sm:$0xff]  ;;  %v107_v30 = vld [vmem:[#allocation2 + $0x20] sm:$0xff]  ;;  %v108_v31 = vld [vmem:[#allocation2 + $0x28] sm:$0xff] }
  0x19   :  { %187 = vmatpush.msra.mxu0 %v125_v10  ;;  %3083 = vmatpush.msra.mxu2 %v125_v10  ;;  %v416_v32 = vld [vmem:[#allocation2 + $0x170] sm:$0xff]  ;;  %v417_v33 = vld [vmem:[#allocation2 + $0x178] sm:$0xff]  ;;  %v103_v36 = vld [vmem:[#allocation2] sm:$0xff] }
  0x1a   :  { %240 = vmatpush.msra.mxu1 %v126_v11  ;;  %3091 = vmatpush.msra.mxu3 %v126_v11  ;;  %v105_v34 = vld [vmem:[#allocation2 + $0x10] sm:$0xff]  ;;  %v106_v35 = vld [vmem:[#allocation2 + $0x18] sm:$0xff]  ;;  %v104_v37 = vld [vmem:[#allocation2 + $0x8] sm:$0xff] }
  0x1b   :  { %188 = vmatpush.msra.mxu0 %v123_v12  ;;  %3084 = vmatpush.msra.mxu2 %v123_v12  ;;  %v3312_v38 = vld [vmem:[%s4617_s0 + $0x18] sm:$0xff]  ;;  %v91_v39 = vld [vmem:[%s4617_s0] sm:$0xff]  ;;  %v415_v42 = vld [vmem:[#allocation2 + $0x168] sm:$0xff] }
  0x1c   :  { %241 = vmatpush.msra.mxu1 %v124_v13  ;;  %3092 = vmatpush.msra.mxu3 %v124_v13  ;;  %v3326_v40 = vld [vmem:[%s4617_s0 + $0x20] sm:$0xff]  ;;  %v3339_v43 = vld [vmem:[%s4617_s0 + $0x28] sm:$0xff]  ;;  %v412_v44 = vld [vmem:[#allocation2 + $0x150] sm:$0xff] }
  0x1d   :  { %189 = vmatpush.msra.mxu0 %v121_v14  ;;  %3085 = vmatpush.msra.mxu2 %v121_v14  ;;  %v414_v41 = vld [vmem:[#allocation2 + $0x160] sm:$0xff]  ;;  %v413_v45 = vld [vmem:[#allocation2 + $0x158] sm:$0xff]  ;;  %v411_v47 = vld [vmem:[#allocation2 + $0x148] sm:$0xff] }
  0x1e   :  { %242 = vmatpush.msra.mxu1 %v122_v15  ;;  %3093 = vmatpush.msra.mxu3 %v122_v15  ;;  %v410_v46 = vld [vmem:[#allocation2 + $0x140] sm:$0xff]  ;;  %v3352_v48 = vld [vmem:[%s4617_s0 + $0x30] sm:$0xff]  ;;  %v409_v50 = vld [vmem:[#allocation2 + $0x138] sm:$0xff] }
  0x1f   :  { %2954 = vmatmul.msk.f32.vlgmr.msra.gmra.mxu0 %vm137_vm0, %v3276_v16  ;;  %2964 = vmatmul.msk.f32.vlgmr.msra.gmra.mxu2 %vm137_vm0, %v3281_v17  ;;  %v408_v49 = vld [vmem:[#allocation2 + $0x130] sm:$0xff]  ;;  %v406_v51 = vld [vmem:[#allocation2 + $0x120] sm:$0xff]  ;;  %v407_v52 = vld [vmem:[#allocation2 + $0x128] sm:$0xff] }
  0x20   :  { %2966 = vmatmul.msk.f32.vlgmr.msra.gmra.mxu1 %vm137_vm0, %v3276_v16  ;;  %2976 = vmatmul.msk.f32.vlgmr.msra.gmra.mxu3 %vm137_vm0, %v3281_v17  ;;  %v404_v53 = vld [vmem:[#allocation2 + $0x110] sm:$0xff]  ;;  %v405_v54 = vld [vmem:[#allocation2 + $0x118] sm:$0xff]  ;;  %v402_v56 = vld [vmem:[#allocation2 + $0x100] sm:$0xff] }
  0x21   :  { %291 = vmatpush.msrb.mxu2 %v117_v18  ;;  %344 = vmatpush.msrb.mxu3 %v118_v19  ;;  %v3365_v55 = vld [vmem:[%s4617_s0 + $0x38] sm:$0xff]  ;;  %v403_v57 = vld [vmem:[#allocation2 + $0x108] sm:$0xff]  ;;  %v3378_v58 = vld [vmem:[%s4617_s0 + $0x40] sm:$0xff] }
  0x22   :  { %462 = vmatpush.msrb.mxu0 %v416_v32  ;;  %515 = vmatpush.msrb.mxu1 %v417_v33  ;;  %v3391_v59 = vld [vmem:[%s4617_s0 + $0x48] sm:$0xff]  ;;  %v611_v60 = vld [vmem:[#allocation2 + $0x1f0] sm:$0xff]  ;;  %v612_v61 = vld [vmem:[#allocation2 + $0x1f8] sm:$0xff] }
  0x23   :  { %292 = vmatpush.msrb.mxu2 %v115_v20  ;;  %345 = vmatpush.msrb.mxu3 %v116_v21  ;;  %v609_v62 = vld [vmem:[#allocation2 + $0x1e0] sm:$0xff]  ;;  %v610_v63 = vld [vmem:[#allocation2 + $0x1e8] sm:$0xff]  ;;  %v607_v0 = vld [vmem:[#allocation2 + $0x1d0] sm:$0xff] }
  0x24   :  { %463 = vmatpush.msrb.mxu0 %v414_v41  ;;  %516 = vmatpush.msrb.mxu1 %v415_v42  ;;  %v608_v1 = vld [vmem:[#allocation2 + $0x1d8] sm:$0xff]  ;;  %v3404_v2 = vld [vmem:[%s4617_s0 + $0x50] sm:$0xff]  ;;  %v605_v3 = vld [vmem:[#allocation2 + $0x1c0] sm:$0xff] }
  0x25   :  { %293 = vmatpush.msrb.mxu2 %v113_v22  ;;  %346 = vmatpush.msrb.mxu3 %v114_v23  ;;  %v606_v4 = vld [vmem:[#allocation2 + $0x1c8] sm:$0xff]  ;;  %v603_v5 = vld [vmem:[#allocation2 + $0x1b0] sm:$0xff]  ;;  %v604_v6 = vld [vmem:[#allocation2 + $0x1b8] sm:$0xff] }
  0x26   :  { %464 = vmatpush.msrb.mxu0 %v412_v44  ;;  %517 = vmatpush.msrb.mxu1 %v413_v45  ;;  %v601_v7 = vld [vmem:[#allocation2 + $0x1a0] sm:$0xff]  ;;  %v602_v8 = vld [vmem:[#allocation2 + $0x1a8] sm:$0xff]  ;;  %v599_v9 = vld [vmem:[#allocation2 + $0x190] sm:$0xff] }
  0x27   :  { %294 = vmatpush.msrb.mxu2 %v111_v24  ;;  %347 = vmatpush.msrb.mxu3 %v112_v25  ;;  %v600_v10 = vld [vmem:[#allocation2 + $0x198] sm:$0xff]  ;;  %v597_v11 = vld [vmem:[#allocation2 + $0x180] sm:$0xff]  ;;  %v598_v12 = vld [vmem:[#allocation2 + $0x188] sm:$0xff] }
  0x28   :  { %2955 = vmatmul.msk.f32.gmra.mxu0 %vm137_vm0, %v3294_v26  ;;  %2965 = vmatmul.msk.f32.gmra.mxu2 %vm137_vm0, %v3299_v27  ;;  %v806_v13 = vld [vmem:[#allocation2 + $0x270] sm:$0xff]  ;;  %v807_v14 = vld [vmem:[#allocation2 + $0x278] sm:$0xff]  ;;  %v804_v15 = vld [vmem:[#allocation2 + $0x260] sm:$0xff] }
  0x29   :  { %2967 = vmatmul.msk.f32.gmra.mxu1 %vm137_vm0, %v3294_v26  ;;  %2977 = vmatmul.msk.f32.gmra.mxu3 %vm137_vm0, %v3299_v27  ;;  %v802_v18 = vld [vmem:[#allocation2 + $0x250] sm:$0xff]  ;;  %v803_v19 = vld [vmem:[#allocation2 + $0x258] sm:$0xff]  ;;  %v800_v22 = vld [vmem:[#allocation2 + $0x240] sm:$0xff] }
  0x2a   :  { %295 = vmatpush.msrb.mxu2 %v109_v28  ;;  %348 = vmatpush.msrb.mxu3 %v110_v29  ;;  %v801_v23 = vld [vmem:[#allocation2 + $0x248] sm:$0xff]  ;;  %v799_v28 = vld [vmem:[#allocation2 + $0x238] sm:$0xff]  ;;  %v796_v29 = vld [vmem:[#allocation2 + $0x220] sm:$0xff] }
  0x2b   :  { %465 = vmatpush.msrb.mxu0 %v410_v46  ;;  %518 = vmatpush.msrb.mxu1 %v411_v47  ;;  %v794_v33 = vld [vmem:[#allocation2 + $0x210] sm:$0xff] }
  0x2c   :  { %296 = vmatpush.msrb.mxu2 %v107_v30  ;;  %349 = vmatpush.msrb.mxu3 %v108_v31  ;;  %v797_v30 = vld [vmem:[#allocation2 + $0x228] sm:$0xff] }
  0x2d   :  { %466 = vmatpush.msrb.mxu0 %v408_v49  ;;  %519 = vmatpush.msrb.mxu1 %v409_v50 }
  0x2e   :  { %297 = vmatpush.msrb.mxu2 %v105_v34  ;;  %350 = vmatpush.msrb.mxu3 %v106_v35  ;;  %v795_v34 = vld [vmem:[#allocation2 + $0x218] sm:$0xff] }
  0x2f   :  { %467 = vmatpush.msrb.mxu0 %v406_v51  ;;  %520 = vmatpush.msrb.mxu1 %v407_v52  ;;  %v3539_v51 = vld [vmem:[%s4617_s0 + $0x68] sm:$0xff] }
  0x30   :  { %298 = vmatpush.msrb.mxu2 %v103_v36  ;;  %351 = vmatpush.msrb.mxu3 %v104_v37  ;;  %v792_v36 = vld [vmem:[#allocation2 + $0x200] sm:$0xff]  ;;  %v793_v37 = vld [vmem:[#allocation2 + $0x208] sm:$0xff] }
  0x31   :  { %2956 = vmatmul.msk.f32.gmra.mxu0 %vm137_vm0, %v3312_v38  ;;  %2968 = vmatmul.msk.f32.gmra.mxu1 %vm137_vm0, %v3312_v38 }
  0x32   :  { %2978 = vmatmul.msk.f32.vlgmr.msrb.gmra.mxu2 %vm137_vm0, %v91_v39  ;;  %2990 = vmatmul.msk.f32.vlgmr.msrb.gmra.mxu3 %vm137_vm0, %v91_v39 }
  0x33   :  { %468 = vmatpush.msrb.mxu0 %v404_v53  ;;  %521 = vmatpush.msrb.mxu1 %v405_v54 }
  0x34   :  { %657 = vmatpush.msra.mxu2 %v611_v60  ;;  %710 = vmatpush.msra.mxu3 %v612_v61 }
  0x35   :  { %469 = vmatpush.msrb.mxu0 %v402_v56  ;;  %522 = vmatpush.msrb.mxu1 %v403_v57 }
  0x36   :  { %658 = vmatpush.msra.mxu2 %v609_v62  ;;  %711 = vmatpush.msra.mxu3 %v610_v63 }
  0x37   :  { %852 = vmatpush.msra.mxu0 %v806_v13  ;;  %905 = vmatpush.msra.mxu1 %v807_v14 }
  0x38   :  { %659 = vmatpush.msra.mxu2 %v607_v0  ;;  %712 = vmatpush.msra.mxu3 %v608_v1 }
  0x39   :  { %2957 = vmatmul.msk.f32.gmra.mxu0 %vm137_vm0, %v3326_v40  ;;  %2969 = vmatmul.msk.f32.gmra.mxu1 %vm137_vm0, %v3326_v40 }
  0x3a   :  { %2979 = vmatmul.msk.f32.gmra.mxu2 %vm137_vm0, %v3276_v16  ;;  %2991 = vmatmul.msk.f32.gmra.mxu3 %vm137_vm0, %v3276_v16  ;;  %v805_v16 = vld [vmem:[#allocation2 + $0x268] sm:$0xff] }
  0x3b   :  { %660 = vmatpush.msra.mxu2 %v605_v3  ;;  %713 = vmatpush.msra.mxu3 %v606_v4 }
  0x3c   :  { %853 = vmatpush.msra.mxu0 %v804_v15  ;;  %906 = vmatpush.msra.mxu1 %v805_v16 }
  0x3d   :  { %661 = vmatpush.msra.mxu2 %v603_v5  ;;  %714 = vmatpush.msra.mxu3 %v604_v6  ;;  %v595_v5 = vld [vmem:[%s4617_s0 + $0x70] sm:$0xff] }
  0x3e   :  { %854 = vmatpush.msra.mxu0 %v802_v18  ;;  %907 = vmatpush.msra.mxu1 %v803_v19 }
  0x3f   :  { %662 = vmatpush.msra.mxu2 %v601_v7  ;;  %715 = vmatpush.msra.mxu3 %v602_v8 }
  0x40   :  { %855 = vmatpush.msra.mxu0 %v800_v22  ;;  %908 = vmatpush.msra.mxu1 %v801_v23 }
  0x41   :  { %2958 = vmatmul.msk.f32.gmra.mxu0 %vm137_vm0, %v3339_v43  ;;  %2970 = vmatmul.msk.f32.gmra.mxu1 %vm137_vm0, %v3339_v43 }
  0x42   :  { %2980 = vmatmul.msk.f32.gmra.mxu2 %vm137_vm0, %v3294_v26  ;;  %2992 = vmatmul.msk.f32.gmra.mxu3 %vm137_vm0, %v3294_v26 }
  0x43   :  { %663 = vmatpush.msra.mxu2 %v599_v9  ;;  %716 = vmatpush.msra.mxu3 %v600_v10 }
  0x44   :  { %909 = vmatpush.msra.mxu1 %v799_v28 }
  0x45   :  { %664 = vmatpush.msra.mxu2 %v597_v11  ;;  %717 = vmatpush.msra.mxu3 %v598_v12 }
  0x46   :  { %910 = vmatpush.msra.mxu1 %v797_v30 }
  0x48   :  { %911 = vmatpush.msra.mxu1 %v795_v34 }
  0x49   :  { %2959 = vmatmul.msk.f32.gmra.mxu0 %vm137_vm0, %v3352_v48  ;;  %2971 = vmatmul.msk.f32.gmra.mxu1 %vm137_vm0, %v3352_v48 }
  0x4a   :  { %2981 = vmatmul.msk.f32.gmra.mxu2 %vm137_vm0, %v3312_v38  ;;  %2993 = vmatmul.msk.f32.gmra.mxu3 %vm137_vm0, %v3312_v38 }
  0x4b   :  { %912 = vmatpush.msra.mxu1 %v793_v37 }
  0x51   :  { %2960 = vmatmul.msk.f32.gmra.mxu0 %vm137_vm0, %v3365_v55  ;;  %2972 = vmatmul.msk.f32.gmra.mxu1 %vm137_vm0, %v3365_v55 }
  0x52   :  { %2982 = vmatmul.msk.f32.gmra.mxu2 %vm137_vm0, %v3326_v40  ;;  %2994 = vmatmul.msk.f32.gmra.mxu3 %vm137_vm0, %v3326_v40 }
  0x59   :  { %2961 = vmatmul.msk.f32.gmra.mxu0 %vm137_vm0, %v3378_v58  ;;  %2973 = vmatmul.msk.f32.gmra.mxu1 %vm137_vm0, %v3378_v58 }
  0x5a   :  { %2983 = vmatmul.msk.f32.gmra.mxu2 %vm137_vm0, %v3339_v43  ;;  %2995 = vmatmul.msk.f32.gmra.mxu3 %vm137_vm0, %v3339_v43 }
  0x61   :  { %2962 = vmatmul.msk.f32.gmra.mxu0 %vm137_vm0, %v3391_v59  ;;  %2974 = vmatmul.msk.f32.gmra.mxu1 %vm137_vm0, %v3391_v59 }
  0x62   :  { %2984 = vmatmul.msk.f32.gmra.mxu2 %vm137_vm0, %v3352_v48  ;;  %2996 = vmatmul.msk.f32.gmra.mxu3 %vm137_vm0, %v3352_v48 }
  0x69   :  { %2963 = vmatmul.msk.f32.gmra.mxu0 %vm137_vm0, %v3404_v2  ;;  %2975 = vmatmul.msk.f32.gmra.mxu1 %vm137_vm0, %v3404_v2 }
  0x6a   :  { %2985 = vmatmul.msk.f32.gmra.mxu2 %vm137_vm0, %v3365_v55  ;;  %2997 = vmatmul.msk.f32.gmra.mxu3 %vm137_vm0, %v3365_v55 }
  0x71   :  { %3002 = vmatmul.msk.f32.vlgmr.msrb.gmra.mxu0 %vm137_vm0, %v3294_v26  ;;  %3014 = vmatmul.msk.f32.vlgmr.msrb.gmra.mxu1 %vm137_vm0, %v3294_v26  ;;  %v798_v26 = vld [vmem:[#allocation2 + $0x230] sm:$0xff] }
  0x72   :  { %2986 = vmatmul.msk.f32.gmra.mxu2 %vm137_vm0, %v3378_v58  ;;  %2998 = vmatmul.msk.f32.gmra.mxu3 %vm137_vm0, %v3378_v58 }
  0x73   :  { %856 = vmatpush.msra.mxu0 %v798_v26 }
  0x75   :  { %857 = vmatpush.msra.mxu0 %v796_v29 }
  0x77   :  { %858 = vmatpush.msra.mxu0 %v794_v33 }
  0x79   :  { %3003 = vmatmul.msk.f32.gmra.mxu0 %vm137_vm0, %v3312_v38  ;;  %3015 = vmatmul.msk.f32.gmra.mxu1 %vm137_vm0, %v3312_v38 }
  0x7a   :  { %2987 = vmatmul.msk.f32.gmra.mxu2 %vm137_vm0, %v3391_v59  ;;  %2999 = vmatmul.msk.f32.gmra.mxu3 %vm137_vm0, %v3391_v59 }
  0x7b   :  { %859 = vmatpush.msra.mxu0 %v792_v36  ;;  %v790_v36 = vld [vmem:[%s4617_s0 + $0x78] sm:$0xff]  ;;  %s3189_s0 = smov 112  }
  0x81   :  { %3004 = vmatmul.msk.f32.gmra.mxu0 %vm137_vm0, %v3326_v40  ;;  %3016 = vmatmul.msk.f32.gmra.mxu1 %vm137_vm0, %v3326_v40 }
  0x82   :  { %2988 = vmatmul.msk.f32.gmra.mxu2 %vm137_vm0, %v3404_v2  ;;  %3000 = vmatmul.msk.f32.gmra.mxu3 %vm137_vm0, %v3404_v2 }
  0x89   :  { %3005 = vmatmul.msk.f32.gmra.mxu0 %vm137_vm0, %v3339_v43  ;;  %3017 = vmatmul.msk.f32.gmra.mxu1 %vm137_vm0, %v3339_v43 }
  0x8a   :  { %2989 = vmatmul.msk.f32.gmra.mxu2 %vm137_vm0, %v3281_v17  ;;  %3001 = vmatmul.msk.f32.gmra.mxu3 %vm137_vm0, %v3281_v17 }
  0x91   :  { %3006 = vmatmul.msk.f32.gmra.mxu0 %vm137_vm0, %v3352_v48  ;;  %3018 = vmatmul.msk.f32.gmra.mxu1 %vm137_vm0, %v3352_v48 }
  0x92   :  { %3026 = vmatmul.msk.f32.vlgmr.msra.gmra.mxu2 %vm137_vm0, %v3312_v38  ;;  %3038 = vmatmul.msk.f32.vlgmr.msra.gmra.mxu3 %vm137_vm0, %v3312_v38 }
  0x99   :  { %3007 = vmatmul.msk.f32.gmra.mxu0 %vm137_vm0, %v3365_v55  ;;  %3019 = vmatmul.msk.f32.gmra.mxu1 %vm137_vm0, %v3365_v55 }
  0x9a   :  { %3027 = vmatmul.msk.f32.gmra.mxu2 %vm137_vm0, %v3326_v40  ;;  %3039 = vmatmul.msk.f32.gmra.mxu3 %vm137_vm0, %v3326_v40 }
  0x9c   :  { %v3462_v20 = vpop.f32.mrf.mxu0 }
  0x9d   :  { %v3464_v21 = vpop.f32.mrf.mxu1 }
  0xa1   :  { %3008 = vmatmul.msk.f32.gmra.mxu0 %vm137_vm0, %v3378_v58  ;;  %3020 = vmatmul.msk.f32.gmra.mxu1 %vm137_vm0, %v3378_v58 }
  0xa2   :  { %3028 = vmatmul.msk.f32.gmra.mxu2 %vm137_vm0, %v3339_v43  ;;  %3040 = vmatmul.msk.f32.gmra.mxu3 %vm137_vm0, %v3339_v43  ;;  %v3490_v35 = vpop.f32.mrf.mxu2 }
  0xa3   :  { %4631 = vst [vmem:[#allocation9_spill] sm:$0xff] %v3490_v35  ;;  %v3500_v38 = vpop.f32.mrf.mxu3 }
  0xa4   :  { %4632 = vst [vmem:[#allocation10_spill] sm:$0xff] %v3500_v38 }
  0xa5   :  { %v3474_v24 = vpop.f32.mrf.mxu0 }
  0xa6   :  { %v3476_v25 = vpop.f32.mrf.mxu1 }
  0xa9   :  { %3009 = vmatmul.msk.f32.gmra.mxu0 %vm137_vm0, %v3391_v59  ;;  %3021 = vmatmul.msk.f32.gmra.mxu1 %vm137_vm0, %v3391_v59 }
  0xaa   :  { %3029 = vmatmul.msk.f32.gmra.mxu2 %vm137_vm0, %v3352_v48  ;;  %3041 = vmatmul.msk.f32.gmra.mxu3 %vm137_vm0, %v3352_v48 }
  0xab   :  { %v3506_v42 = vpop.f32.mrf.mxu2 }
  0xac   :  { %4633 = vst [vmem:[#allocation11_spill] sm:$0xff] %v3506_v42  ;;  %v3520_v46 = vpop.f32.mrf.mxu3 }
  0xad   :  { %4634 = vst [vmem:[#allocation12_spill] sm:$0xff] %v3520_v46 }
  0xae   :  { %v3486_v31 = vpop.f32.mrf.mxu0  ;;  %v3488_v32 = vpop.f32.mrf.mxu1 }
  0xb1   :  { %3010 = vmatmul.msk.f32.gmra.mxu0 %vm137_vm0, %v3404_v2  ;;  %3022 = vmatmul.msk.f32.gmra.mxu1 %vm137_vm0, %v3404_v2 }
  0xb2   :  { %3030 = vmatmul.msk.f32.gmra.mxu2 %vm137_vm0, %v3365_v55  ;;  %3042 = vmatmul.msk.f32.gmra.mxu3 %vm137_vm0, %v3365_v55 }
  0xb5   :  { %v3530_v47 = vpop.f32.mrf.mxu2  ;;  %v3541_v52 = vpop.f32.mrf.mxu3 }
  0xb6   :  { %v3502_v39 = vpop.f32.mrf.mxu0  ;;  %v3504_v41 = vpop.f32.mrf.mxu1 }
  0xb9   :  { %3011 = vmatmul.msk.f32.gmra.mxu0 %vm137_vm0, %v3281_v17  ;;  %3023 = vmatmul.msk.f32.gmra.mxu1 %vm137_vm0, %v3281_v17 }
  0xba   :  { %3031 = vmatmul.msk.f32.gmra.mxu2 %vm137_vm0, %v3378_v58  ;;  %3043 = vmatmul.msk.f32.gmra.mxu3 %vm137_vm0, %v3378_v58 }
  0xbd   :  { %v3551_v53 = vpop.f32.mrf.mxu2  ;;  %v3565_v57 = vpop.f32.mrf.mxu3 }
  0xbe   :  { %v3516_v44 = vpop.f32.mrf.mxu0  ;;  %v3518_v45 = vpop.f32.mrf.mxu1 }
  0xc1   :  { %3012 = vmatmul.msk.f32.gmra.mxu0 %vm137_vm0, %v3299_v27  ;;  %3024 = vmatmul.msk.f32.gmra.mxu1 %vm137_vm0, %v3299_v27 }
  0xc2   :  { %3032 = vmatmul.msk.f32.gmra.mxu2 %vm137_vm0, %v3391_v59  ;;  %3044 = vmatmul.msk.f32.gmra.mxu3 %vm137_vm0, %v3391_v59 }
  0xc5   :  { %v3571_v62 = vpop.f32.mrf.mxu2 }
  0xc6   :  { %v3532_v49 = vpop.f32.mrf.mxu0  ;;  %v3534_v50 = vpop.f32.mrf.mxu1 }
  0xc7   :  { %4635 = vst [vmem:[#allocation13_spill] sm:$0xff] %v3534_v50 }
  0xc9   :  { %3013 = vmatmul.msk.f32.gmra.mxu0 %vm137_vm0, %v3539_v51  ;;  %3025 = vmatmul.msk.f32.gmra.mxu1 %vm137_vm0, %v3539_v51 }
  0xca   :  { %3033 = vmatmul.msk.f32.gmra.mxu2 %vm137_vm0, %v3404_v2  ;;  %3045 = vmatmul.msk.f32.gmra.mxu3 %vm137_vm0, %v3404_v2 }
  0xcd   :  { %v3587_v1 = vpop.f32.mrf.mxu2 }
  0xce   :  { %v3553_v54 = vpop.f32.mrf.mxu0  ;;  %v3555_v56 = vpop.f32.mrf.mxu1 }
  0xd1   :  { %3050 = vmatmul.msk.f32.vlgmr.msra.gmra.mxu0 %vm137_vm0, %v3326_v40  ;;  %3062 = vmatmul.msk.f32.vlgmr.msra.gmra.mxu1 %vm137_vm0, %v3326_v40  ;;  %v3581_v40 = vpop.f32.mrf.mxu3 }
  0xd2   :  { %3034 = vmatmul.msk.f32.gmra.mxu2 %vm137_vm0, %v3281_v17  ;;  %3046 = vmatmul.msk.f32.gmra.mxu3 %vm137_vm0, %v3281_v17 }
  0xd6   :  { %v3567_v60 = vpop.f32.mrf.mxu0  ;;  %v3569_v61 = vpop.f32.mrf.mxu1 }
  0xd9   :  { %3051 = vmatmul.msk.f32.gmra.mxu0 %vm137_vm0, %v3339_v43  ;;  %3063 = vmatmul.msk.f32.gmra.mxu1 %vm137_vm0, %v3339_v43  ;;  %v3597_v4 = vpop.f32.mrf.mxu3 }
  0xda   :  { %3035 = vmatmul.msk.f32.gmra.mxu2 %vm137_vm0, %v3299_v27  ;;  %3047 = vmatmul.msk.f32.gmra.mxu3 %vm137_vm0, %v3299_v27 }
  0xde   :  { %v3583_v63 = vpop.f32.mrf.mxu0  ;;  %v3585_v0 = vpop.f32.mrf.mxu1 }
  0xdf   :  { %4636 = vst [vmem:[#allocation14_spill] sm:$0xff] %v3585_v0 }
  0xe1   :  { %3052 = vmatmul.msk.f32.gmra.mxu0 %vm137_vm0, %v3352_v48  ;;  %3064 = vmatmul.msk.f32.gmra.mxu1 %vm137_vm0, %v3352_v48  ;;  %v3608_v48 = vpop.f32.mrf.mxu2  ;;  %v3614_v8 = vpop.f32.mrf.mxu3 }
  0xe2   :  { %3036 = vmatmul.msk.f32.gmra.mxu2 %vm137_vm0, %v3539_v51  ;;  %3048 = vmatmul.msk.f32.gmra.mxu3 %vm137_vm0, %v3539_v51 }
  0xe6   :  { %v218_v43 = vpop.f32.mrf.mxu0  ;;  %v271_v3 = vpop.f32.mrf.mxu1 }
  0xe9   :  { %3053 = vmatmul.msk.f32.gmra.mxu0 %vm137_vm0, %v3365_v55  ;;  %3065 = vmatmul.msk.f32.gmra.mxu1 %vm137_vm0, %v3365_v55  ;;  %v3620_v9 = vpop.f32.mrf.mxu2  ;;  %v3630_v11 = vpop.f32.mrf.mxu3 }
  0xea   :  { %3037 = vmatmul.msk.f32.gmra.mxu2 %vm137_vm0, %v595_v5  ;;  %3049 = vmatmul.msk.f32.gmra.mxu3 %vm137_vm0, %v595_v5  ;;  %4637 = vst [vmem:[#allocation15_spill] sm:$0xff] %v3630_v11 }
  0xee   :  { %v3610_v6 = vpop.f32.mrf.mxu0  ;;  %v3612_v7 = vpop.f32.mrf.mxu1 }
  0xf1   :  { %3054 = vmatmul.msk.f32.gmra.mxu0 %vm137_vm0, %v3378_v58  ;;  %3066 = vmatmul.msk.f32.gmra.mxu1 %vm137_vm0, %v3378_v58  ;;  %v3636_v14 = vpop.f32.mrf.mxu2  ;;  %v3642_v58 = vpop.f32.mrf.mxu3 }
  0xf6   :  { %v3622_v55 = vpop.f32.mrf.mxu0  ;;  %v3624_v10 = vpop.f32.mrf.mxu1 }
  0xf9   :  { %3055 = vmatmul.msk.f32.gmra.mxu0 %vm137_vm0, %v3391_v59  ;;  %3067 = vmatmul.msk.f32.gmra.mxu1 %vm137_vm0, %v3391_v59  ;;  %v3648_v59 = vpop.f32.mrf.mxu2  ;;  %v3658_v22 = vpop.f32.mrf.mxu3 }
  0xfe   :  { %v3632_v12 = vpop.f32.mrf.mxu0  ;;  %v3634_v13 = vpop.f32.mrf.mxu1 }
 0x101   :  { %3056 = vmatmul.msk.f32.gmra.mxu0 %vm137_vm0, %v3404_v2  ;;  %3068 = vmatmul.msk.f32.gmra.mxu1 %vm137_vm0, %v3404_v2  ;;  %v3664_v2 = vpop.f32.mrf.mxu2  ;;  %v3670_v28 = vpop.f32.mrf.mxu3 }
 0x102   :  { %4638 = vst [vmem:[#allocation16_spill] sm:$0xff] %v3664_v2 }
 0x103   :  { %4640 = vst [vmem:[#allocation18_spill] sm:$0xff] %v3670_v28 }
 0x106   :  { %v3644_v15 = vpop.f32.mrf.mxu0  ;;  %v3646_v16 = vpop.f32.mrf.mxu1 }
 0x109   :  { %3057 = vmatmul.msk.f32.gmra.mxu0 %vm137_vm0, %v3281_v17  ;;  %3069 = vmatmul.msk.f32.gmra.mxu1 %vm137_vm0, %v3281_v17  ;;  %v327_v17 = vpop.f32.mrf.mxu2 }
 0x10a   :  { %v328_v38 = vadd.f32 %v327_v17, %v218_v43  ;;  %v301_v43 = vadd.f32 %v3530_v47, %v3462_v20  ;;  %v304_v20 = vadd.f32 %v3551_v53, %v3474_v24 }
 0x10e   :  { %v3654_v18 = vpop.f32.mrf.mxu0  ;;  %v3656_v19 = vpop.f32.mrf.mxu1 }
 0x111   :  { %3058 = vmatmul.msk.f32.gmra.mxu0 %vm137_vm0, %v3299_v27  ;;  %3070 = vmatmul.msk.f32.gmra.mxu1 %vm137_vm0, %v3299_v27  ;;  %v380_v27 = vpop.f32.mrf.mxu3  ;;  %v3689_v37 = vpop.f32.mrf.mxu2 }
 0x112   :  { %4641 = vst [vmem:[#allocation19_spill] sm:$0xff] %v3689_v37  ;;  %v381_v35 = vadd.f32 %v380_v27, %v271_v3 }
 0x116   :  { %v3666_v23 = vpop.f32.mrf.mxu0  ;;  %v3668_v26 = vpop.f32.mrf.mxu1 }
 0x117   :  { %4639 = vst [vmem:[#allocation17_spill] sm:$0xff] %v3668_v26 }
 0x119   :  { %3059 = vmatmul.msk.f32.gmra.mxu0 %vm137_vm0, %v3539_v51  ;;  %3071 = vmatmul.msk.f32.gmra.mxu1 %vm137_vm0, %v3539_v51  ;;  %v3693_v51 = vpop.f32.mrf.mxu3  ;;  %v3699_v42 = vpop.f32.mrf.mxu2 }
 0x11a   :  { %4642 = vst [vmem:[#allocation20_spill] sm:$0xff] %v3693_v51 }
 0x11b   :  { %4645 = vst [vmem:[#allocation23_spill] sm:$0xff] %v3699_v42 }
 0x11e   :  { %v3676_v29 = vpop.f32.mrf.mxu0  ;;  %v3678_v30 = vpop.f32.mrf.mxu1 }
 0x121   :  { %3060 = vmatmul.msk.f32.gmra.mxu0 %vm137_vm0, %v595_v5  ;;  %3072 = vmatmul.msk.f32.gmra.mxu1 %vm137_vm0, %v595_v5  ;;  %v3701_v50 = vpop.f32.mrf.mxu3  ;;  %v666_v0 = vpop.f32.mrf.mxu2 }
 0x122   :  { %4646 = vst [vmem:[#allocation24_spill] sm:$0xff] %v3701_v50 }
 0x126   :  { %v3682_v33 = vpop.f32.mrf.mxu0  ;;  %v3684_v34 = vpop.f32.mrf.mxu1 }
 0x129   :  { %3061 = vmatmul.msk.f32.gmra.mxu0 %vm137_vm0, %v790_v36  ;;  %3073 = vmatmul.msk.f32.gmra.mxu1 %vm137_vm0, %v790_v36  ;;  %v669_v2 = vpop.f32.mrf.mxu2 }
 0x12e   :  { %v3695_v46 = vpop.f32.mrf.mxu0  ;;  %v3697_v5 = vpop.f32.mrf.mxu1 }
 0x12f   :  { %4643 = vst [vmem:[#allocation21_spill] sm:$0xff] %v3695_v46  ;;  %v719_v46 = vpop.f32.mrf.mxu3 }
 0x130   :  { %4644 = vst [vmem:[#allocation22_spill] sm:$0xff] %v3697_v5 }
 0x136   :  { %v498_v26 = vpop.f32.mrf.mxu0  ;;  %v551_v11 = vpop.f32.mrf.mxu1 }
 0x137   :  { %v3703_v28 = vadd.f32 %v498_v26, %v328_v38  ;;  %v3705_v37 = vadd.f32 %v551_v11, %v381_v35  ;;  %v354_v38 = vadd.f32 %v3541_v52, %v3464_v21  ;;  %v560_v35 = vadd.f32 %v3610_v6, %v301_v43  ;;  %v722_v11 = vpop.f32.mrf.mxu3 }
 0x138   :  { %v357_v21 = vadd.f32 %v3565_v57, %v3476_v25  ;;  %v307_v6 = vadd.f32 %v3571_v62, %v3486_v31  ;;  %v360_v31 = vadd.f32 %v3581_v40, %v3488_v32  ;;  %v363_v62 = vadd.f32 %v3597_v4, %v3504_v41 }
 0x139   :  { %4647 = vst [vmem:[#allocation25_spill] sm:$0xff] %v3705_v37  ;;  %v561_v3 = vadd.f32 %v3612_v7, %v354_v38  ;;  %v755_v26 = vadd.f32 %v666_v0, %v560_v35  ;;  %v310_v4 = vadd.f32 %v3587_v1, %v3502_v39 }
 0x13a   :  { %v563_v47 = vadd.f32 %v3624_v10, %v357_v21 }
 0x13b   :  { %v756_v17 = vadd.f32 %v719_v46, %v561_v3  ;;  %v562_v46 = vadd.f32 %v3622_v55, %v304_v20  ;;  %v564_v55 = vadd.f32 %v3632_v12, %v307_v6  ;;  %v565_v12 = vadd.f32 %v3634_v13, %v360_v31 }
 0x13c   :  { %v758_v24 = vadd.f32 %v722_v11, %v563_v47 }
 0x13e   :  { %v3707_v36 = vpop.f32.mrf.mxu0  ;;  %v3709_v51 = vpop.f32.mrf.mxu1 }
 0x13f   :  { %4648 = vst [vmem:[#allocation26_spill] sm:$0xff] %v3709_v51  ;;  %v672_v51 = vpop.f32.mrf.mxu2  ;;  %v725_v52 = vpop.f32.mrf.mxu3 }
 0x140   :  { %v759_v10 = vadd.f32 %v672_v51, %v564_v55  ;;  %v567_v51 = vadd.f32 %v3646_v16, %v363_v62  ;;  %v760_v11 = vadd.f32 %v725_v52, %v565_v12  ;;  %v566_v16 = vadd.f32 %v3644_v15, %v310_v4 }
 0x146   :  { %v3711_v5 = vpop.f32.mrf.mxu0  ;;  %v3713_v42 = vpop.f32.mrf.mxu1 }
 0x147   :  { %4649 = vst [vmem:[#allocation27_spill] sm:$0xff] %v3711_v5  ;;  %v675_v7 = vpop.f32.mrf.mxu2  ;;  %v728_v35 = vpop.f32.mrf.mxu3 }
 0x148   :  { %v761_v21 = vadd.f32 %v675_v7, %v566_v16  ;;  %v4653_v16 = vld [vmem:[#allocation18_spill] sm:$0xff] }
 0x14e   :  { %v861_v27 = vpop.f32.mrf.mxu0  ;;  %v914_v50 = vpop.f32.mrf.mxu1 }
 0x14f   :  { %v3721_v37 = vadd.f32 %v861_v27, %v755_v26  ;;  %v3723_v5 = vadd.f32 %v914_v50, %v756_v17  ;;  %v757_v50 = vadd.f32 %v669_v2, %v562_v46  ;;  %v678_v3 = vpop.f32.mrf.mxu2  ;;  %v762_v26 = vadd.f32 %v728_v35, %v567_v51  ;;  %v731_v13 = vpop.f32.mrf.mxu3 }
 0x150   :  { %v366_v27 = vadd.f32 %v3614_v8, %v3518_v45 }
 0x151   :  { %1142 = vrot.lane.b32.xlu1 %v3723_v5, %s3189_s0  ;;  %1034 = vrot.lane.b32.xlu2 %v3721_v37, %s3190_s21 }
 0x152   :  { %986 = vrot.lane.b32.xlu0 %v3721_v37, %s3189_s0  ;;  %v569_v20 = vadd.f32 %v3656_v19, %v366_v27 }
 0x154   :  { %v764_v46 = vadd.f32 %v731_v13, %v569_v20  ;;  %v4652_v13 = vld [vmem:[#allocation14_spill] sm:$0xff] }
 0x155   :  { %v378_v20 = vadd.f32 %v4653_v16, %v4652_v13  ;;  %v4666_v13 = vld [vmem:[#allocation27_spill] sm:$0xff] }
 0x156   :  { %v864_v53 = vpop.f32.mrf.mxu0  ;;  %v917_v25 = vpop.f32.mrf.mxu1 }
 0x157   :  { %v3737_v57 = vadd.f32 %v864_v53, %v757_v50  ;;  %v3739_v0 = vadd.f32 %v917_v25, %v758_v24  ;;  %v681_v39 = vpop.f32.mrf.mxu2  ;;  %v316_v50 = vadd.f32 %v3620_v9, %v3532_v49  ;;  %v734_v24 = vpop.f32.mrf.mxu3  ;;  %v319_v49 = vadd.f32 %v3636_v14, %v3553_v54 }
 0x158   :  { %v322_v54 = vadd.f32 %v3648_v59, %v3567_v60  ;;  %v313_v14 = vadd.f32 %v3608_v48, %v3516_v44  ;;  %v375_v48 = vadd.f32 %v3658_v22, %v3569_v61  ;;  %v4651_v22 = vld [vmem:[#allocation21_spill] sm:$0xff] }
 0x159   :  { %988 = vrot.lane.b32.xlu1 %v3737_v57, %s3189_s0  ;;  %1144 = vrot.lane.b32.xlu2 %v3739_v0, %s3189_s0  ;;  %v570_v15 = vadd.f32 %v3666_v23, %v316_v50  ;;  %v572_v9 = vadd.f32 %v3676_v29, %v319_v49  ;;  %v4657_v50 = vld [vmem:[#allocation17_spill] sm:$0xff] }
 0x15a   :  { %1094 = vrot.lane.b32.xlu0 %v3723_v5, %s3190_s21  ;;  %v574_v31 = vadd.f32 %v3682_v33, %v322_v54  ;;  %v4659_v54 = vld [vmem:[#allocation19_spill] sm:$0xff] }
 0x15b   :  { %v765_v19 = vadd.f32 %v681_v39, %v570_v15 }
 0x15e   :  { %v867_v2 = vpop.f32.mrf.mxu0  ;;  %v920_v43 = vpop.f32.mrf.mxu1 }
 0x15f   :  { %v3750_v38 = vadd.f32 %v867_v2, %v759_v10  ;;  %v3764_v17 = vadd.f32 %v920_v43, %v760_v11  ;;  %v684_v25 = vpop.f32.mrf.mxu2  ;;  %v737_v10 = vpop.f32.mrf.mxu3  ;;  %v372_v2 = vadd.f32 %v3642_v58, %v3555_v56  ;;  %v568_v56 = vadd.f32 %v3654_v18, %v313_v14 }
 0x160   :  { %v767_v23 = vadd.f32 %v684_v25, %v572_v9 }
 0x161   :  { %1096 = vrot.lane.b32.xlu1 %v3739_v0, %s3190_s21  ;;  %990 = vrot.lane.b32.xlu2 %v3750_v38, %s3189_s0  ;;  %v573_v29 = vadd.f32 %v3678_v30, %v372_v2  ;;  %v763_v60 = vadd.f32 %v678_v3, %v568_v56  ;;  %v575_v30 = vadd.f32 %v3684_v34, %v375_v48 }
 0x162   :  { %1036 = vrot.lane.b32.xlu0 %v3737_v57, %s3190_s21 }
 0x163   :  { %v768_v58 = vadd.f32 %v737_v10, %v573_v29 }
 0x166   :  { %v870_v32 = vpop.f32.mrf.mxu0  ;;  %v923_v40 = vpop.f32.mrf.mxu1 }
 0x167   :  { %v3766_v41 = vadd.f32 %v923_v40, %v762_v26  ;;  %v3780_v45 = vadd.f32 %v870_v32, %v761_v21  ;;  %v687_v43 = vpop.f32.mrf.mxu2  ;;  %v740_v18 = vpop.f32.mrf.mxu3  ;;  %v4650_v26 = vld [vmem:[#allocation16_spill] sm:$0xff]  ;;  %v4655_v21 = vld [vmem:[#allocation15_spill] sm:$0xff] }
 0x168   :  { %v769_v62 = vadd.f32 %v687_v43, %v574_v31  ;;  %v770_v3 = vadd.f32 %v740_v18, %v575_v30  ;;  %v325_v32 = vadd.f32 %v4650_v26, %v3583_v63  ;;  %v4654_v63 = vld [vmem:[#allocation13_spill] sm:$0xff]  ;;  %v4661_v18 = vld [vmem:[#allocation10_spill] sm:$0xff]  ;;  %v4662_v30 = vld [vmem:[#allocation20_spill] sm:$0xff] }
 0x169   :  { %1148 = vrot.lane.b32.xlu1 %v3766_v41, %s3189_s0  ;;  %1098 = vrot.lane.b32.xlu2 %v3764_v17, %s3190_s21  ;;  %v4664_v26 = vld [vmem:[#allocation23_spill] sm:$0xff] }
 0x16a   :  { %1038 = vrot.lane.b32.xlu0 %v3750_v38, %s3190_s21  ;;  %v576_v40 = vadd.f32 %v4651_v22, %v325_v32  ;;  %v4665_v22 = vld [vmem:[#allocation26_spill] sm:$0xff] }
 0x16e   :  { %v873_v1 = vpop.f32.mrf.mxu0  ;;  %v926_v47 = vpop.f32.mrf.mxu1 }
 0x16f   :  { %v3782_v8 = vadd.f32 %v926_v47, %v764_v46  ;;  %v3823_v44 = vadd.f32 %v873_v1, %v763_v60  ;;  %v690_v61 = vpop.f32.mrf.mxu2  ;;  %v369_v46 = vadd.f32 %v4655_v21, %v4654_v63  ;;  %v743_v39 = vpop.f32.mrf.mxu3  ;;  %v4656_v1 = vld [vmem:[#allocation22_spill] sm:$0xff]  ;;  %v4660_v60 = vld [vmem:[#allocation25_spill] sm:$0xff] }
 0x170   :  { %v771_v4 = vadd.f32 %v690_v61, %v576_v40  ;;  %v577_v47 = vadd.f32 %v4656_v1, %v378_v20  ;;  %v4667_v1 = vld [vmem:[#allocation12_spill] sm:$0xff] }
 0x171   :  { %1102 = vrot.lane.b32.xlu1 %v3782_v8, %s3190_s21  ;;  %1040 = vrot.lane.b32.xlu2 %v3780_v45, %s3190_s21  ;;  %v571_v15 = vadd.f32 %v4657_v50, %v369_v46 }
 0x172   :  { %1146 = vrot.lane.b32.xlu0 %v3764_v17, %s3189_s0 }
 0x173   :  { %v766_v25 = vadd.f32 %v734_v24, %v571_v15  ;;  %v4658_v24 = vld [vmem:[#allocation9_spill] sm:$0xff] }
 0x174   :  { %v331_v14 = vadd.f32 %v4659_v54, %v4658_v24 }
 0x176   :  { %v876_v52 = vpop.f32.mrf.mxu0  ;;  %v929_v6 = vpop.f32.mrf.mxu1  ;;  %v580_v43 = vadd.f32 %v3707_v36, %v331_v14 }
 0x177   :  { %v3793_v53 = vadd.f32 %v876_v52, %v765_v19  ;;  %v772_v52 = vadd.f32 %v743_v39, %v577_v47  ;;  %v693_v9 = vpop.f32.mrf.mxu2  ;;  %v746_v31 = vpop.f32.mrf.mxu3  ;;  %v4668_v47 = vld [vmem:[#allocation24_spill] sm:$0xff] }
 0x178   :  { %v773_v10 = vadd.f32 %v693_v9, %v3703_v28  ;;  %v387_v50 = vadd.f32 %v4668_v47, %v4667_v1 }
 0x179   :  { %996 = vrot.lane.b32.xlu1 %v3793_v53, %s3189_s0  ;;  %1150 = vrot.lane.b32.xlu2 %v3782_v8, %s3189_s0 }
 0x17a   :  { %992 = vrot.lane.b32.xlu0 %v3780_v45, %s3189_s0 }
 0x17e   :  { %v879_v7 = vpop.f32.mrf.mxu0  ;;  %v932_v35 = vpop.f32.mrf.mxu1 }
 0x17f   :  { %v3804_v55 = vadd.f32 %v879_v7, %v767_v23  ;;  %v3819_v12 = vadd.f32 %v932_v35, %v768_v58  ;;  %v3861_v23 = vadd.f32 %v929_v6, %v766_v25  ;;  %v696_v6 = vpop.f32.mrf.mxu2  ;;  %v749_v48 = vpop.f32.mrf.mxu3 }
 0x180   :  { %v775_v28 = vadd.f32 %v696_v6, %v580_v43 }
 0x181   :  { %1046 = vrot.lane.b32.xlu1 %v3804_v55, %s3190_s21 }
 0x182   :  { %1100 = vrot.lane.b32.xlu0 %v3766_v41, %s3190_s21 }
 0x186   :  { %v882_v59 = vpop.f32.mrf.mxu0  ;;  %v935_v33 = vpop.f32.mrf.mxu1 }
 0x187   :  { %v3821_v51 = vadd.f32 %v882_v59, %v769_v62  ;;  %v3834_v11 = vadd.f32 %v935_v33, %v770_v3  ;;  %v774_v59 = vadd.f32 %v746_v31, %v4660_v60  ;;  %v384_v33 = vadd.f32 %v4662_v30, %v4661_v18  ;;  %v4663_v3 = vld [vmem:[#allocation11_spill] sm:$0xff]  ;;  %v752_v15 = vpop.f32.mrf.mxu3 }
 0x188   :  { %v334_v32 = vadd.f32 %v4664_v26, %v4663_v3 }
 0x189   :  { %1154 = vrot.lane.b32.xlu1 %v3819_v12, %s3189_s0  ;;  %1048 = vrot.lane.b32.xlu2 %v3821_v51, %s3190_s21  ;;  %v581_v40 = vadd.f32 %v4665_v22, %v384_v33 }
 0x18a   :  { %994 = vrot.lane.b32.xlu0 %v3823_v44, %s3189_s0  ;;  %v582_v16 = vadd.f32 %v4666_v13, %v334_v32 }
 0x18b   :  { %v776_v20 = vadd.f32 %v749_v48, %v581_v40 }
 0x18e   :  { %v885_v34 = vpop.f32.mrf.mxu0  ;;  %v938_v19 = vpop.f32.mrf.mxu1 }
 0x18f   :  { %v3845_v27 = vadd.f32 %v885_v34, %v771_v4  ;;  %v3859_v49 = vadd.f32 %v938_v19, %v772_v52  ;;  %v699_v34 = vpop.f32.mrf.mxu2  ;;  %v583_v52 = vadd.f32 %v3713_v42, %v387_v50 }
 0x190   :  { %v777_v21 = vadd.f32 %v699_v34, %v582_v16 }
 0x191   :  { %1000 = vrot.lane.b32.xlu1 %v3821_v51, %s3189_s0  ;;  %1156 = vrot.lane.b32.xlu2 %v3834_v11, %s3189_s0  ;;  %v778_v54 = vadd.f32 %v752_v15, %v583_v52 }
 0x192   :  { %1042 = vrot.lane.b32.xlu0 %v3823_v44, %s3190_s21 }
 0x196   :  { %v888_v7 = vpop.f32.mrf.mxu0  ;;  %v941_v58 = vpop.f32.mrf.mxu1 }
 0x197   :  { %v3870_v2 = vadd.f32 %v888_v7, %v773_v10  ;;  %v3890_v36 = vadd.f32 %v941_v58, %v774_v59 }
 0x199   :  { %1108 = vrot.lane.b32.xlu1 %v3834_v11, %s3190_s21  ;;  %1002 = vrot.lane.b32.xlu2 %v3845_v27, %s3189_s0 }
 0x19a   :  { %1044 = vrot.lane.b32.xlu0 %v3793_v53, %s3190_s21 }
 0x19e   :  { %v891_v29 = vpop.f32.mrf.mxu0  ;;  %v944_v61 = vpop.f32.mrf.mxu1 }
 0x19f   :  { %v3881_v56 = vadd.f32 %v891_v29, %v775_v28  ;;  %v3904_v46 = vadd.f32 %v944_v61, %v776_v20 }
 0x1a1   :  { %1050 = vrot.lane.b32.xlu1 %v3845_v27, %s3190_s21  ;;  %1158 = vrot.lane.b32.xlu2 %v3859_v49, %s3189_s0 }
 0x1a2   :  { %1152 = vrot.lane.b32.xlu0 %v3861_v23, %s3189_s0 }
 0x1a6   :  { %v894_v63 = vpop.f32.mrf.mxu0  ;;  %v947_v7 = vpop.f32.mrf.mxu1 }
 0x1a7   :  { %v3906_v39 = vadd.f32 %v894_v63, %v777_v21  ;;  %v3925_v6 = vadd.f32 %v947_v7, %v778_v54 }
 0x1a9   :  { %1004 = vrot.lane.b32.xlu1 %v3870_v2, %s3189_s0  ;;  %1110 = vrot.lane.b32.xlu2 %v3859_v49, %s3190_s21 }
 0x1aa   :  { %1104 = vrot.lane.b32.xlu0 %v3861_v23, %s3190_s21 }
 0x1ab   :  { %v1035_v35 = vpop.permute.xlu2 %1034 }
 0x1b1   :  { %1052 = vrot.lane.b32.xlu1 %v3870_v2, %s3190_s21  ;;  %1006 = vrot.lane.b32.xlu2 %v3881_v56, %s3189_s0 }
 0x1b2   :  { %998 = vrot.lane.b32.xlu0 %v3804_v55, %s3189_s0 }
 0x1b3   :  { %v1145_v62 = vpop.permute.xlu2 %1144 }
 0x1b9   :  { %1160 = vrot.lane.b32.xlu1 %v3890_v36, %s3189_s0  ;;  %1054 = vrot.lane.b32.xlu2 %v3881_v56, %s3190_s21 }
 0x1ba   :  { %1106 = vrot.lane.b32.xlu0 %v3819_v12, %s3190_s21 }
 0x1bb   :  { %v991_v4 = vpop.permute.xlu2 %990 }
 0x1bc   :  { %v3915_v19 = vmax.f32 %v3750_v38, %v991_v4 }
 0x1c1   :  { %1112 = vrot.lane.b32.xlu1 %v3890_v36, %s3190_s21  ;;  %1162 = vrot.lane.b32.xlu2 %v3904_v46, %s3189_s0 }
 0x1c2   :  { %1056 = vrot.lane.b32.xlu0 %v3906_v39, %s3190_s21 }
 0x1c3   :  { %v1143_v25 = vpop.permute.xlu1 %1142  ;;  %v3920_v9 = vpop.permute.xlu2 %1098 }
 0x1c4   :  { %v1132_v10 = vmax.f32 %v3915_v19, %v3920_v9  ;;  %v987_v24 = vpop.permute.xlu0 %986  ;;  %v1178_v42 = vmax.f32 %v3723_v5, %v1143_v25 }
 0x1c5   :  { %v1022_v14 = vmax.f32 %v3721_v37, %v987_v24 }
 0x1c7   :  { %v3927_v38 = vmax.f32 %v1022_v14, %v1035_v35  ;;  %v1179_v35 = vmax.f32 %v3739_v0, %v1145_v62 }
 0x1c9   :  { %1164 = vrot.lane.b32.xlu1 %v3925_v6, %s3189_s0  ;;  %1114 = vrot.lane.b32.xlu2 %v3904_v46, %s3190_s21 }
 0x1ca   :  { %1214 = vrot.lane.b32.xlu0 %v3927_v38, %s3190_s21 }
 0x1cb   :  { %v989_v43 = vpop.permute.xlu1 %988  ;;  %v1041_v37 = vpop.permute.xlu2 %1040 }
 0x1cc   :  { %v1095_v29 = vpop.permute.xlu0 %1094  ;;  %v3942_v31 = vmax.f32 %v3737_v57, %v989_v43 }
 0x1cd   :  { %v3936_v28 = vmax.f32 %v1178_v42, %v1095_v29  ;;  %v1130_v30 = vmax.f32 %v1022_v14, %v1095_v29 }
 0x1d1   :  { %1008 = vrot.lane.b32.xlu2 %v3906_v39, %s3189_s0 }
 0x1d3   :  { %v3944_v58 = vpop.permute.xlu1 %1096  ;;  %v1151_v57 = vpop.permute.xlu2 %1150 }
 0x1d4   :  { %v1131_v60 = vmax.f32 %v3942_v31, %v3944_v58  ;;  %v1037_v59 = vpop.permute.xlu0 %1036  ;;  %v3949_v5 = vmax.f32 %v1179_v35, %v3944_v58 }
 0x1d5   :  { %v3952_v48 = vmax.f32 %v3942_v31, %v1037_v59 }
 0x1d7   :  { %1216 = vrot.lane.b32.xlu1 %v3952_v48, %s3190_s21 }
 0x1d9   :  { %1116 = vrot.lane.b32.xlu2 %v3925_v6, %s3190_s21 }
 0x1db   :  { %v1149_v0 = vpop.permute.xlu1 %1148 }
 0x1dc   :  { %v1039_v62 = vpop.permute.xlu0 %1038  ;;  %v1181_v21 = vmax.f32 %v3766_v41, %v1149_v0 }
 0x1dd   :  { %v3959_v18 = vmax.f32 %v3915_v19, %v1039_v62 }
 0x1e1   :  { %1262 = vrot.lane.b32.xlu2 %v1130_v30, %s3191_s7 }
 0x1e3   :  { %v1103_v33 = vpop.permute.xlu1 %1102  ;;  %v3962_v3 = vpop.permute.xlu2 %1048 }
 0x1e4   :  { %v1147_v26 = vpop.permute.xlu0 %1146 }
 0x1e5   :  { %v1180_v32 = vmax.f32 %v3764_v17, %v1147_v26 }
 0x1e7   :  { %v3966_v61 = vmax.f32 %v1180_v32, %v3920_v9 }
 0x1eb   :  { %v997_v22 = vpop.permute.xlu1 %996  ;;  %v1157_v40 = vpop.permute.xlu2 %1156 }
 0x1ec   :  { %v993_v34 = vpop.permute.xlu0 %992  ;;  %v1027_v43 = vmax.f32 %v3793_v53, %v997_v22 }
 0x1ed   :  { %v1025_v4 = vmax.f32 %v3780_v45, %v993_v34 }
 0x1ef   :  { %v3969_v13 = vmax.f32 %v1025_v4, %v1041_v37 }
 0x1f1   :  { %1220 = vrot.lane.b32.xlu0 %v3969_v13, %s3190_s21 }
 0x1f3   :  { %v3973_v16 = vpop.permute.xlu1 %1046  ;;  %v1003_v20 = vpop.permute.xlu2 %1002 }
 0x1f4   :  { %v1101_v63 = vpop.permute.xlu0 %1100  ;;  %v3983_v25 = vmax.f32 %v3845_v27, %v1003_v20  ;;  %v1185_v27 = vmax.f32 %v3834_v11, %v1157_v40 }
 0x1f5   :  { %v1133_v17 = vmax.f32 %v1025_v4, %v1101_v63  ;;  %v1193_v1 = vmax.f32 %v1181_v21, %v1101_v63 }
 0x1f7   :  { %1268 = vrot.lane.b32.xlu2 %v1133_v17, %s3191_s7 }
 0x1f9   :  { %1316 = vrot.lane.b32.xlu0 %v1193_v1, %s3184_s17 }
 0x1fb   :  { %v3978_v47 = vpop.permute.xlu1 %1154  ;;  %v1159_v45 = vpop.permute.xlu2 %1158 }
 0x1fc   :  { %v995_v50 = vpop.permute.xlu0 %994  ;;  %v1186_v41 = vmax.f32 %v3859_v49, %v1159_v45  ;;  %v1182_v49 = vmax.f32 %v3782_v8, %v1151_v57  ;;  %v1184_v19 = vmax.f32 %v3819_v12, %v3978_v47 }
 0x1fd   :  { %v1026_v15 = vmax.f32 %v3823_v44, %v995_v50 }
 0x1fe   :  { %v1194_v62 = vmax.f32 %v1182_v49, %v1103_v33 }
 0x1ff   :  { %v1134_v52 = vmax.f32 %v1026_v15, %v1103_v33 }
 0x201   :  { %1270 = vrot.lane.b32.xlu0 %v1134_v52, %s3191_s7 }
 0x203   :  { %v3986_v7 = vpop.permute.xlu1 %1000  ;;  %v3988_v24 = vpop.permute.xlu2 %1110 }
 0x204   :  { %v1138_v54 = vmax.f32 %v3983_v25, %v3988_v24  ;;  %v1043_v14 = vpop.permute.xlu0 %1042  ;;  %v3993_v42 = vmax.f32 %v1186_v41, %v3988_v24 }
 0x205   :  { %v3995_v44 = vmax.f32 %v1026_v15, %v1043_v14 }
 0x207   :  { %1222 = vrot.lane.b32.xlu1 %v3995_v44, %s3190_s21 }
 0x20b   :  { %v4002_v29 = vpop.permute.xlu1 %1108  ;;  %v1007_v37 = vpop.permute.xlu2 %1006 }
 0x20c   :  { %v1045_v35 = vpop.permute.xlu0 %1044  ;;  %v4005_v59 = vmax.f32 %v1185_v27, %v4002_v29 }
 0x20d   :  { %v4007_v0 = vmax.f32 %v1027_v43, %v1045_v35 }
 0x20f   :  { %1318 = vrot.lane.b32.xlu1 %v1194_v62, %s3184_s17  ;;  %1224 = vrot.lane.b32.xlu0 %v4007_v0, %s3190_s21 }
 0x213   :  { %v1051_v11 = vpop.permute.xlu1 %1050  ;;  %v1055_v30 = vpop.permute.xlu2 %1054 }
 0x214   :  { %v4013_v8 = vmax.f32 %v3983_v25, %v1051_v11  ;;  %v1153_v53 = vpop.permute.xlu0 %1152 }
 0x215   :  { %v1183_v57 = vmax.f32 %v3861_v23, %v1153_v53 }
 0x21b   :  { %v1005_v26 = vpop.permute.xlu1 %1004  ;;  %v1163_v32 = vpop.permute.xlu2 %1162 }
 0x21c   :  { %v1105_v22 = vpop.permute.xlu0 %1104  ;;  %v1031_v33 = vmax.f32 %v3870_v2, %v1005_v26  ;;  %v1188_v4 = vmax.f32 %v3904_v46, %v1163_v32 }
 0x21d   :  { %v1135_v40 = vmax.f32 %v1027_v43, %v1105_v22  ;;  %v1195_v34 = vmax.f32 %v1183_v57, %v1105_v22  ;;  %v1032_v43 = vmax.f32 %v3881_v56, %v1007_v37  ;;  %v1029_v56 = vmax.f32 %v3821_v51, %v3986_v7 }
 0x21f   :  { %1320 = vrot.lane.b32.xlu1 %v1195_v34, %s3184_s17  ;;  %1272 = vrot.lane.b32.xlu0 %v1135_v40, %s3191_s7 }
 0x223   :  { %v1053_v20 = vpop.permute.xlu1 %1052  ;;  %v1115_v63 = vpop.permute.xlu2 %1114 }
 0x224   :  { %v4020_v21 = vmax.f32 %v1031_v33, %v1053_v20  ;;  %v999_v17 = vpop.permute.xlu0 %998  ;;  %v1200_v1 = vmax.f32 %v1188_v4, %v1115_v63  ;;  %v1140_v37 = vmax.f32 %v1032_v43, %v1115_v63 }
 0x225   :  { %v1028_v51 = vmax.f32 %v3804_v55, %v999_v17  ;;  %v1137_v55 = vmax.f32 %v1029_v56, %v4002_v29 }
 0x227   :  { %1232 = vrot.lane.b32.xlu1 %v4020_v21, %s3190_s21  ;;  %1330 = vrot.lane.b32.xlu0 %v1200_v1, %s3184_s17  ;;  %v4068_v58 = vmax.f32 %v1028_v51, %v3973_v16 }
 0x22b   :  { %v1161_v23 = vpop.permute.xlu1 %1160  ;;  %v1009_v45 = vpop.permute.xlu2 %1008 }
 0x22c   :  { %v1107_v50 = vpop.permute.xlu0 %1106  ;;  %v1187_v15 = vmax.f32 %v3890_v36, %v1161_v23  ;;  %v1033_v2 = vmax.f32 %v3906_v39, %v1009_v45  ;;  %v4034_v39 = vmax.f32 %v1032_v43, %v1055_v30  ;;  %v4051_v30 = vmax.f32 %v1029_v56, %v3962_v3 }
 0x22d   :  { %v1196_v9 = vmax.f32 %v1184_v19, %v1107_v50 }
 0x233   :  { %v1113_v52 = vpop.permute.xlu1 %1112  ;;  %v1117_v46 = vpop.permute.xlu2 %1116 }
 0x234   :  { %v1139_v41 = vmax.f32 %v1031_v33, %v1113_v52  ;;  %v1057_v14 = vpop.permute.xlu0 %1056  ;;  %v1199_v27 = vmax.f32 %v1187_v15, %v1113_v52  ;;  %v1141_v35 = vmax.f32 %v1033_v2, %v1117_v46 }
 0x235   :  { %v4027_v49 = vmax.f32 %v1033_v2, %v1057_v14 }
 0x236   :  { %1328 = vrot.lane.b32.xlu2 %v1199_v27, %s3184_s17  ;;  %1280 = vrot.lane.b32.xlu1 %v1139_v41, %s3191_s7 }
 0x237   :  { %1236 = vrot.lane.b32.xlu0 %v4027_v49, %s3190_s21 }
 0x23b   :  { %v1263_v36 = vpop.permute.xlu2 %1262 }
 0x23c   :  { %v1215_v62 = vpop.permute.xlu0 %1214 }
 0x23d   :  { %v1347_v11 = vsel %vm1346_vm1, %v3927_v38, %v1215_v62  ;;  %v1165_v38 = vpop.permute.xlu1 %1164  ;;  %v1426_v62 = vld [vmem:[%s4620_s3 + $0x68] sm:$0xff] }
 0x23e   :  { %1234 = vrot.lane.b32.xlu2 %v4034_v39, %s3190_s21  ;;  %1284 = vrot.lane.b32.xlu1 %v1141_v35, %s3191_s7  ;;  %v4042_v53 = vsel %vm1359_vm2, %v1347_v11, %v1263_v36  ;;  %v1189_v57 = vmax.f32 %v3925_v6, %v1165_v38  ;;  %v1444_v11 = vld [vmem:[%s4620_s3 + $0xf8] sm:$0xff] }
 0x23f   :  { %1264 = vrot.lane.b32.xlu0 %v1131_v60, %s3191_s7  ;;  %v1136_v60 = vmax.f32 %v1028_v51, %v1107_v50  ;;  %1469 = vmatpush.msrb.mxu3 %v1444_v11 }
 0x240   :  { %v1201_v31 = vmax.f32 %v1189_v57, %v1117_v46  ;;  %v1425_v57 = vld [vmem:[%s4620_s3 + $0x60] sm:$0xff] }
 0x246   :  { %1282 = vrot.lane.b32.xlu2 %v1140_v37, %s3191_s7  ;;  %1218 = vrot.lane.b32.xlu1 %v3959_v18, %s3190_s21  ;;  %v1443_v37 = vld [vmem:[%s4620_s3 + $0xf0] sm:$0xff] }
 0x247   :  { %1228 = vrot.lane.b32.xlu0 %v4051_v30, %s3190_s21  ;;  %1470 = vmatpush.msrb.mxu3 %v1443_v37 }
 0x249   :  { %v1217_v6 = vpop.permute.xlu1 %1216 }
 0x24a   :  { %v1348_v38 = vsel %vm1346_vm1, %v3952_v48, %v1217_v6  ;;  %v1424_v48 = vld [vmem:[%s4620_s3 + $0x58] sm:$0xff]  ;;  %v1422_v6 = vld [vmem:[%s4620_s3 + $0x48] sm:$0xff] }
 0x24e   :  { %1332 = vrot.lane.b32.xlu2 %v1201_v31, %s3184_s17  ;;  %1310 = vrot.lane.b32.xlu1 %v3936_v28, %s3184_s17 }
 0x24f   :  { %1266 = vrot.lane.b32.xlu0 %v1132_v10, %s3191_s7 }
 0x256   :  { %1226 = vrot.lane.b32.xlu2 %v4068_v58, %s3190_s21  ;;  %1274 = vrot.lane.b32.xlu1 %v1136_v60, %s3191_s7  ;;  %v1442_v60 = vld [vmem:[%s4620_s3 + $0xe8] sm:$0xff] }
 0x257   :  { %1230 = vrot.lane.b32.xlu0 %v4013_v8, %s3190_s21  ;;  %1471 = vmatpush.msrb.mxu3 %v1442_v60 }
 0x25e   :  { %1312 = vrot.lane.b32.xlu2 %v3949_v5, %s3184_s17  ;;  %1314 = vrot.lane.b32.xlu1 %v3966_v61, %s3184_s17  ;;  %v1269_v61 = vpop.permute.xlu2 %1268 }
 0x25f   :  { %1324 = vrot.lane.b32.xlu0 %v4005_v59, %s3184_s17 }
 0x263   :  { %v1221_v10 = vpop.permute.xlu0 %1220 }
 0x264   :  { %v1350_v12 = vsel %vm1346_vm1, %v3969_v13, %v1221_v10  ;;  %v1423_v10 = vld [vmem:[%s4620_s3 + $0x50] sm:$0xff] }
 0x266   :  { %1276 = vrot.lane.b32.xlu2 %v1137_v55, %s3191_s7  ;;  %1278 = vrot.lane.b32.xlu1 %v1138_v54, %s3191_s7  ;;  %v1363_v54 = vsel %vm1359_vm2, %v1350_v12, %v1269_v61  ;;  %v1417_v61 = vld [vmem:[%s4620_s3 + $0x20] sm:$0xff]  ;;  %v1414_v12 = vld [vmem:[%s4620_s3 + $0x8] sm:$0xff] }
 0x26b   :  { %v1317_v28 = vpop.permute.xlu0 %1316 }
 0x26c   :  { %v1376_v29 = vsel %vm1372_vm3, %v1363_v54, %v1317_v28  ;;  %v1420_v28 = vld [vmem:[%s4620_s3 + $0x38] sm:$0xff]  ;;  %v1441_v54 = vld [vmem:[%s4620_s3 + $0xe0] sm:$0xff] }
 0x26d   :  { %1472 = vmatpush.msrb.mxu3 %v1441_v54  ;;  %v1521_v54 = vld [vmem:[%s4622_s5 + $0xf8] sm:$0xff] }
 0x26e   :  { %1322 = vrot.lane.b32.xlu2 %v1196_v9, %s3184_s17 }
 0x273   :  { %v1271_v3 = vpop.permute.xlu0 %1270 }
 0x276   :  { %1326 = vrot.lane.b32.xlu2 %v3993_v42, %s3184_s17 }
 0x279   :  { %v1223_v5 = vpop.permute.xlu1 %1222 }
 0x27a   :  { %v1351_v25 = vsel %vm1346_vm1, %v3995_v44, %v1223_v5  ;;  %v1419_v5 = vld [vmem:[%s4620_s3 + $0x30] sm:$0xff] }
 0x27b   :  { %v1364_v47 = vsel %vm1359_vm2, %v1351_v25, %v1271_v3  ;;  %v1418_v3 = vld [vmem:[%s4620_s3 + $0x28] sm:$0xff]  ;;  %v1415_v25 = vld [vmem:[%s4620_s3 + $0x10] sm:$0xff] }
 0x281   :  { %v1319_v16 = vpop.permute.xlu1 %1318  ;;  %v1225_v7 = vpop.permute.xlu0 %1224 }
 0x282   :  { %v1377_v24 = vsel %vm1372_vm3, %v1364_v47, %v1319_v16  ;;  %v1352_v59 = vsel %vm1346_vm1, %v4007_v0, %v1225_v7  ;;  %v1416_v16 = vld [vmem:[%s4620_s3 + $0x18] sm:$0xff] }
 0x283   :  { %v1387_v22 = vmax.f32 %v1376_v29, %v1377_v24  ;;  %v1413_v24 = vld [vmem:[%s4620_s3] sm:$0xff]  ;;  %v1439_v29 = vld [vmem:[%s4620_s3 + $0xd0] sm:$0xff] }
 0x290   :  { %v1329_v42 = vpop.permute.xlu2 %1328 }
 0x291   :  { %v1321_v26 = vpop.permute.xlu1 %1320  ;;  %v1273_v32 = vpop.permute.xlu0 %1272 }
 0x292   :  { %v1365_v44 = vsel %vm1359_vm2, %v1352_v59, %v1273_v32  ;;  %v1438_v59 = vld [vmem:[%s4620_s3 + $0xc8] sm:$0xff] }
 0x293   :  { %v1378_v13 = vsel %vm1372_vm3, %v1365_v44, %v1321_v26  ;;  %v1437_v26 = vld [vmem:[%s4620_s3 + $0xc0] sm:$0xff] }
 0x294   :  { %v1388_v40 = vmax.f32 %v1387_v22, %v1378_v13  ;;  %v1436_v22 = vld [vmem:[%s4620_s3 + $0xb8] sm:$0xff]  ;;  %v1435_v13 = vld [vmem:[%s4620_s3 + $0xb0] sm:$0xff] }
 0x296   :  { %1394 = vrot.lane.b32.xlu0 %v1388_v40, %s3191_s7  ;;  %v1434_v40 = vld [vmem:[%s4620_s3 + $0xa8] sm:$0xff] }
 0x298   :  { %v1235_v34 = vpop.permute.xlu2 %1234 }
 0x299   :  { %v1233_v33 = vpop.permute.xlu1 %1232  ;;  %v1331_v20 = vpop.permute.xlu0 %1330  ;;  %v1357_v23 = vsel %vm1346_vm1, %v4034_v39, %v1235_v34  ;;  %v1428_v39 = vld [vmem:[%s4620_s3 + $0x78] sm:$0xff]  ;;  %v1433_v34 = vld [vmem:[%s4620_s3 + $0xa0] sm:$0xff] }
 0x29a   :  { %v1356_v17 = vsel %vm1346_vm1, %v4020_v21, %v1233_v33  ;;  %1449 = vmatpush.msrb.mxu2 %v1428_v39  ;;  %v1432_v33 = vld [vmem:[%s4620_s3 + $0x98] sm:$0xff] }
 0x2a0   :  { %v1283_v4 = vpop.permute.xlu2 %1282 }
 0x2a1   :  { %v1370_v45 = vsel %vm1359_vm2, %v1357_v23, %v1283_v4 }
 0x2a2   :  { %v1383_v2 = vsel %vm1372_vm3, %v1370_v45, %v1331_v20 }
 0x2a8   :  { %v1281_v63 = vpop.permute.xlu1 %1280  ;;  %v1333_v1 = vpop.permute.xlu2 %1332 }
 0x2a9   :  { %v1369_v0 = vsel %vm1359_vm2, %v1356_v17, %v1281_v63  ;;  %v1237_v50 = vpop.permute.xlu0 %1236 }
 0x2aa   :  { %v1382_v15 = vsel %vm1372_vm3, %v1369_v0, %v1329_v42  ;;  %v1358_v52 = vsel %vm1346_vm1, %v4027_v49, %v1237_v50  ;;  %v1427_v49 = vld [vmem:[%s4620_s3 + $0x70] sm:$0xff]  ;;  %v1440_v42 = vld [vmem:[%s4620_s3 + $0xd8] sm:$0xff] }
 0x2ab   :  { %v1391_v41 = vmax.f32 %v1382_v15, %v1383_v2  ;;  %1450 = vmatpush.msrb.mxu2 %v1427_v49  ;;  %1473 = vmatpush.msrb.mxu3 %v1440_v42  ;;  %v1431_v15 = vld [vmem:[%s4620_s3 + $0x90] sm:$0xff] }
 0x2ac   :  { %v1516_v42 = vld [vmem:[%s4622_s5 + $0xd0] sm:$0xff] }
 0x2ad   :  { %1451 = vmatpush.msrb.mxu2 %v1426_v62  ;;  %1474 = vmatpush.msrb.mxu3 %v1439_v29  ;;  %v1517_v29 = vld [vmem:[%s4622_s5 + $0xd8] sm:$0xff] }
 0x2af   :  { %1452 = vmatpush.msrb.mxu2 %v1425_v57  ;;  %1475 = vmatpush.msrb.mxu3 %v1438_v59  ;;  %v1512_v59 = vld [vmem:[%s4622_s5 + $0xb0] sm:$0xff] }
 0x2b0   :  { %v1285_v46 = vpop.permute.xlu1 %1284  ;;  %v4117_v43 = vpop.permute.xlu2 %1226 }
 0x2b1   :  { %v1371_v21 = vsel %vm1359_vm2, %v1358_v52, %v1285_v46  ;;  %v1265_v35 = vpop.permute.xlu0 %1264  ;;  %1453 = vmatpush.msrb.mxu2 %v1424_v48  ;;  %1476 = vmatpush.msrb.mxu3 %v1437_v26  ;;  %v1429_v46 = vld [vmem:[%s4620_s3 + $0x80] sm:$0xff]  ;;  %v1513_v26 = vld [vmem:[%s4622_s5 + $0xb8] sm:$0xff] }
 0x2b2   :  { %v1384_v14 = vsel %vm1372_vm3, %v1371_v21, %v1333_v1  ;;  %v1361_v31 = vsel %vm1359_vm2, %v1348_v38, %v1265_v35  ;;  %v1403_v1 = vld [vmem:[%s4619_s2] sm:$0x3] }
 0x2b3   :  { %v1392_v27 = vmax.f32 %v1391_v41, %v1384_v14  ;;  %1454 = vmatpush.msrb.mxu2 %v1423_v10  ;;  %1477 = vmatpush.msrb.mxu3 %v1436_v22  ;;  %v1405_v23 = vperm.slane %v1403_v1, 0  ;;  %v1514_v48 = vld [vmem:[%s4622_s5 + $0xc0] sm:$0xff]  ;;  %v1509_v22 = vld [vmem:[%s4622_s5 + $0x98] sm:$0xff] }
 0x2b4   :  { %v1510_v10 = vld [vmem:[%s4622_s5 + $0xa0] sm:$0xff] }
 0x2b5   :  { %1398 = vrot.lane.b32.xlu1 %v1392_v27, %s3191_s7  ;;  %1455 = vmatpush.msrb.mxu2 %v1422_v6  ;;  %v1511_v6 = vld [vmem:[%s4622_s5 + $0xa8] sm:$0xff] }
 0x2b6   :  { %1478 = vmatpush.msrb.mxu3 %v1435_v13  ;;  %v1505_v13 = vld [vmem:[%s4622_s5 + $0x78] sm:$0xff] }
 0x2b8   :  { %v4120_v36 = vpop.permute.xlu1 %1218  ;;  %v1313_v56 = vpop.permute.xlu2 %1312  ;;  %1479 = vmatpush.msrb.mxu3 %v1434_v40  ;;  %v1500_v40 = vld [vmem:[%s4622_s5 + $0x50] sm:$0xff] }
 0x2b9   :  { %v1374_v55 = vsel %vm1372_vm3, %v1361_v31, %v1313_v56  ;;  %v1229_v7 = vpop.permute.xlu0 %1228  ;;  %v1349_v63 = vsel %vm1346_vm1, %v3959_v18, %v4120_v36  ;;  %v1430_v18 = vld [vmem:[%s4620_s3 + $0x88] sm:$0xff]  ;;  %v1353_v36 = vsel %vm1346_vm1, %v4068_v58, %v4117_v43  ;;  %v1406_v43 = vperm.slane %v1403_v1, 1  ;;  %v1871_v1 = vld [vmem:[#allocation4 + $0x7e0] sm:$0xff] }
 0x2ba   :  { %1480 = vmatpush.msrb.mxu3 %v1433_v34  ;;  %v1354_v39 = vsel %vm1346_vm1, %v4051_v30, %v1229_v7  ;;  %v1494_v7 = vld [vmem:[%s4622_s5 + $0x20] sm:$0xff]  ;;  %v1501_v34 = vld [vmem:[%s4622_s5 + $0x58] sm:$0xff]  ;;  %1945 = vmatpush.msrb.mxu1 %v1871_v1 }
 0x2bb   :  { %v1703_v1 = vld [vmem:[#allocation4 + $0x2a0] sm:$0xff] }
 0x2bc   :  { %1481 = vmatpush.msrb.mxu3 %v1432_v33  ;;  %v1496_v33 = vld [vmem:[%s4622_s5 + $0x30] sm:$0xff] }
 0x2be   :  { %1482 = vmatpush.msrb.mxu3 %v1431_v15  ;;  %v1795_v15 = vld [vmem:[#allocation4 + $0x580] sm:$0xff] }
 0x2c0   :  { %v1311_v51 = vpop.permute.xlu1 %1310  ;;  %1483 = vmatpush.msrb.mxu3 %v1430_v18  ;;  %v1277_v21 = vpop.permute.xlu2 %1276  ;;  %v1855_v18 = vld [vmem:[#allocation4 + $0x760] sm:$0xff] }
 0x2c1   :  { %v1373_v19 = vsel %vm1372_vm3, %v4042_v53, %v1311_v51  ;;  %v1421_v53 = vld [vmem:[%s4620_s3 + $0x40] sm:$0xff]  ;;  %v1267_v47 = vpop.permute.xlu0 %1266  ;;  %v1367_v35 = vsel %vm1359_vm2, %v1354_v39, %v1277_v21 }
 0x2c2   :  { %v1385_v9 = vmax.f32 %v1373_v19, %v1374_v55  ;;  %1456 = vmatpush.msrb.mxu2 %v1421_v53  ;;  %v1362_v17 = vsel %vm1359_vm2, %v1349_v63, %v1267_v47  ;;  %1484 = vmatpush.msrb.mxu3 %v1429_v46  ;;  %v1518_v55 = vld [vmem:[%s4622_s5 + $0xe0] sm:$0xff]  ;;  %v1519_v19 = vld [vmem:[%s4622_s5 + $0xe8] sm:$0xff]  ;;  %v1493_v63 = vld [vmem:[%s4622_s5 + $0x18] sm:$0xff] }
 0x2c3   :  { %v1506_v53 = vld [vmem:[%s4622_s5 + $0x80] sm:$0xff]  ;;  %v1491_v47 = vld [vmem:[%s4622_s5 + $0x8] sm:$0xff] }
 0x2c4   :  { %1457 = vmatpush.msrb.mxu2 %v1420_v28  ;;  %1563 = vmatpush.msra.mxu3 %v1519_v19  ;;  %v1507_v28 = vld [vmem:[%s4622_s5 + $0x88] sm:$0xff]  ;;  %v1787_v46 = vld [vmem:[#allocation4 + $0x540] sm:$0xff] }
 0x2c5   :  { %v1783_v21 = vld [vmem:[#allocation4 + $0x520] sm:$0xff] }
 0x2c6   :  { %1458 = vmatpush.msrb.mxu2 %v1419_v5  ;;  %v1502_v5 = vld [vmem:[%s4622_s5 + $0x60] sm:$0xff] }
 0x2c7   :  { %v1779_v39 = vld [vmem:[#allocation4 + $0x500] sm:$0xff] }
 0x2c8   :  { %1459 = vmatpush.msrb.mxu2 %v1418_v3  ;;  %v1275_v44 = vpop.permute.xlu1 %1274  ;;  %v1323_v14 = vpop.permute.xlu2 %1322  ;;  %v1503_v3 = vld [vmem:[%s4622_s5 + $0x68] sm:$0xff]  ;;  %v1827_v19 = vld [vmem:[#allocation4 + $0x680] sm:$0xff] }
 0x2c9   :  { %v1231_v32 = vpop.permute.xlu0 %1230  ;;  %v1366_v62 = vsel %vm1359_vm2, %v1353_v36, %v1275_v44  ;;  %v1504_v44 = vld [vmem:[%s4622_s5 + $0x70] sm:$0xff] }
 0x2ca   :  { %1460 = vmatpush.msrb.mxu2 %v1417_v61  ;;  %v1355_v49 = vsel %vm1346_vm1, %v4013_v8, %v1231_v32  ;;  %v1379_v38 = vsel %vm1372_vm3, %v1366_v62, %v1323_v14  ;;  %v1498_v61 = vld [vmem:[%s4622_s5 + $0x40] sm:$0xff]  ;;  %v1508_v32 = vld [vmem:[%s4622_s5 + $0x90] sm:$0xff] }
 0x2cb   :  { %v1847_v14 = vld [vmem:[#allocation4 + $0x720] sm:$0xff] }
 0x2cc   :  { %1461 = vmatpush.msrb.mxu2 %v1416_v16  ;;  %v1499_v16 = vld [vmem:[%s4622_s5 + $0x48] sm:$0xff]  ;;  %v1839_v62 = vld [vmem:[#allocation4 + $0x6e0] sm:$0xff] }
 0x2ce   :  { %1462 = vmatpush.msrb.mxu2 %v1415_v25  ;;  %v1495_v25 = vld [vmem:[%s4622_s5 + $0x28] sm:$0xff] }
 0x2d0   :  { %1463 = vmatpush.msrb.mxu2 %v1414_v12  ;;  %v1315_v20 = vpop.permute.xlu1 %1314  ;;  %v1327_v37 = vpop.permute.xlu2 %1326  ;;  %v1490_v12 = vld [vmem:[%s4622_s5] sm:$0xff] }
 0x2d1   :  { %v1325_v4 = vpop.permute.xlu0 %1324  ;;  %v1375_v0 = vsel %vm1372_vm3, %v1362_v17, %v1315_v20  ;;  %v1492_v20 = vld [vmem:[%s4622_s5 + $0x10] sm:$0xff]  ;;  %v1807_v17 = vld [vmem:[#allocation4 + $0x5e0] sm:$0xff] }
 0x2d2   :  { %1464 = vmatpush.msrb.mxu2 %v1413_v24  ;;  %v1386_v45 = vmax.f32 %v1385_v9, %v1375_v0  ;;  %v1380_v56 = vsel %vm1372_vm3, %v1367_v35, %v1325_v4  ;;  %v1515_v9 = vld [vmem:[%s4622_s5 + $0xc8] sm:$0xff]  ;;  %v1520_v24 = vld [vmem:[%s4622_s5 + $0xf0] sm:$0xff]  ;;  %v1497_v4 = vld [vmem:[%s4622_s5 + $0x38] sm:$0xff]  ;;  %1925 = vmatpush.msrb.mxu0 %v1807_v17 }
 0x2d3   :  { %v1389_v58 = vmax.f32 %v1379_v38, %v1380_v56  ;;  %1564 = vmatpush.msra.mxu3 %v1515_v9  ;;  %v1803_v0 = vld [vmem:[#allocation4 + $0x5c0] sm:$0xff] }
 0x2d4   :  { %1543 = vmatpush.msra.mxu2 %v1518_v55  ;;  %1926 = vmatpush.msrb.mxu0 %v1803_v0  ;;  %v1775_v35 = vld [vmem:[#allocation4 + $0x4e0] sm:$0xff]  ;;  %v1796_v0 = vld [vmem:[#allocation4 + $0x588] sm:$0xff] }
 0x2d5   :  { %1565 = vmatpush.msra.mxu3 %v1511_v6  ;;  %v1835_v38 = vld [vmem:[#allocation4 + $0x6c0] sm:$0xff] }
 0x2d6   :  { %1544 = vmatpush.msra.mxu2 %v1514_v48  ;;  %v1763_v55 = vld [vmem:[#allocation4 + $0x480] sm:$0xff] }
 0x2d7   :  { %1566 = vmatpush.msra.mxu3 %v1507_v28  ;;  %v1671_v48 = vld [vmem:[#allocation4 + $0x1a0] sm:$0xff] }
 0x2d8   :  { %v1279_v27 = vpop.permute.xlu1 %1278  ;;  %1545 = vmatpush.msra.mxu2 %v1510_v10  ;;  %v1735_v9 = vld [vmem:[#allocation4 + $0x3a0] sm:$0xff] }
 0x2d9   :  { %v1368_v11 = vsel %vm1359_vm2, %v1355_v49, %v1279_v27  ;;  %1567 = vmatpush.msra.mxu3 %v1503_v3  ;;  %v3104_v27 = vld [vmem:[%s4621_s4] ss:$0 sm:$0xff] }
 0x2da   :  { %v1381_v57 = vsel %vm1372_vm3, %v1368_v11, %v1327_v37  ;;  %1546 = vmatpush.msra.mxu2 %v1506_v53  ;;  %v1843_v49 = vld [vmem:[#allocation4 + $0x700] sm:$0xff] }
 0x2db   :  { %v1390_v31 = vmax.f32 %v1389_v58, %v1381_v57  ;;  %1568 = vmatpush.msra.mxu3 %v1499_v16  ;;  %v1771_v37 = vld [vmem:[#allocation4 + $0x4c0] sm:$0xff] }
 0x2dc   :  { %1547 = vmatpush.msra.mxu2 %v1502_v5  ;;  %v1759_v10 = vld [vmem:[#allocation4 + $0x460] sm:$0xff] }
 0x2dd   :  { %1569 = vmatpush.msra.mxu3 %v1495_v25  ;;  %v1823_v6 = vld [vmem:[#allocation4 + $0x660] sm:$0xff] }
 0x2de   :  { %1548 = vmatpush.msra.mxu2 %v1498_v61  ;;  %v1667_v53 = vld [vmem:[#allocation4 + $0x180] sm:$0xff] }
 0x2df   :  { %1570 = vmatpush.msra.mxu3 %v1491_v47  ;;  %v1731_v28 = vld [vmem:[#allocation4 + $0x380] sm:$0xff] }
 0x2e0   :  { %1549 = vmatpush.msra.mxu2 %v1494_v7  ;;  %v1663_v5 = vld [vmem:[#allocation4 + $0x160] sm:$0xff] }
 0x2e1   :  { %v1727_v3 = vld [vmem:[#allocation4 + $0x360] sm:$0xff] }
 0x2e2   :  { %1550 = vmatpush.msra.mxu2 %v1490_v12  ;;  %v1755_v61 = vld [vmem:[#allocation4 + $0x440] sm:$0xff] }
 0x2e3   :  { %v1819_v16 = vld [vmem:[#allocation4 + $0x640] sm:$0xff] }
 0x2e4   :  { %v1659_v7 = vld [vmem:[#allocation4 + $0x140] sm:$0xff] }
 0x2e5   :  { %v1723_v25 = vld [vmem:[#allocation4 + $0x340] sm:$0xff] }
 0x2e6   :  { %v1751_v12 = vld [vmem:[#allocation4 + $0x420] sm:$0xff] }
 0x2e7   :  { %v1815_v47 = vld [vmem:[#allocation4 + $0x620] sm:$0xff] }
 0x2e8   :  { %v1639_v17 = vld [vmem:[#allocation4 + $0xa0] sm:$0xff] }
 0x308   :  { %v1395_v50 = vpop.permute.xlu0 %1394 }
 0x309   :  { %v1401_v2 = vsel %vm137_vm0, %v1386_v45, %v1395_v50  ;;  %v1799_v45 = vld [vmem:[#allocation4 + $0x5a0] sm:$0xff] }
 0x30a   :  { %v1409_v52 = vadd.f32 %v1405_v23, %v1401_v2  ;;  %v1867_v23 = vld [vmem:[#allocation4 + $0x7c0] sm:$0xff]  ;;  %1927 = vmatpush.msrb.mxu0 %v1799_v45 }
 0x30b   :  { %1946 = vmatpush.msrb.mxu1 %v1867_v23  ;;  %v1863_v50 = vld [vmem:[#allocation4 + $0x7a0] sm:$0xff]  ;;  %v1860_v23 = vld [vmem:[#allocation4 + $0x788] sm:$0xff] }
 0x30c   :  { %v1411_v41 = vmax.f32 %v1409_v52, 0.0  ;;  %v1859_v2 = vld [vmem:[#allocation4 + $0x780] sm:$0xff]  ;;  %1928 = vmatpush.msrb.mxu0 %v1795_v15  ;;  %v1792_v15 = vld [vmem:[#allocation4 + $0x568] sm:$0xff] }
 0x30d   :  { %1947 = vmatpush.msrb.mxu1 %v1863_v50  ;;  %v1791_v52 = vld [vmem:[#allocation4 + $0x560] sm:$0xff] }
 0x30e   :  { %1465 = vmatmul.f32.vlgmr.msrb.gmra.mxu2 %v1411_v41  ;;  %v1851_v41 = vld [vmem:[#allocation4 + $0x740] sm:$0xff]  ;;  %1929 = vmatpush.msrb.mxu0 %v1791_v52 }
 0x30f   :  { %1583 = vmatpush.msrb.mxu2 %v1520_v24  ;;  %1948 = vmatpush.msrb.mxu1 %v1859_v2  ;;  %v1655_v24 = vld [vmem:[#allocation4 + $0x120] sm:$0xff]  ;;  %v1856_v2 = vld [vmem:[#allocation4 + $0x768] sm:$0xff] }
 0x310   :  { %1930 = vmatpush.msrb.mxu0 %v1787_v46  ;;  %v1635_v45 = vld [vmem:[#allocation4 + $0x80] sm:$0xff]  ;;  %v1788_v46 = vld [vmem:[#allocation4 + $0x548] sm:$0xff] }
 0x311   :  { %1584 = vmatpush.msrb.mxu2 %v1516_v42  ;;  %1949 = vmatpush.msrb.mxu1 %v1855_v18  ;;  %v1747_v42 = vld [vmem:[#allocation4 + $0x400] sm:$0xff] }
 0x312   :  { %1931 = vmatpush.msrb.mxu0 %v1783_v21  ;;  %v1699_v50 = vld [vmem:[#allocation4 + $0x280] sm:$0xff] }
 0x313   :  { %1585 = vmatpush.msrb.mxu2 %v1512_v59  ;;  %1950 = vmatpush.msrb.mxu1 %v1851_v41  ;;  %v1651_v59 = vld [vmem:[#allocation4 + $0x100] sm:$0xff]  ;;  %v1852_v41 = vld [vmem:[#allocation4 + $0x748] sm:$0xff] }
 0x314   :  { %1932 = vmatpush.msrb.mxu0 %v1779_v39  ;;  %v1631_v52 = vld [vmem:[#allocation4 + $0x60] sm:$0xff] }
 0x315   :  { %1586 = vmatpush.msrb.mxu2 %v1508_v32  ;;  %1951 = vmatpush.msrb.mxu1 %v1847_v14  ;;  %v1808_v32 = vld [vmem:[#allocation4 + $0x5e8] sm:$0xff]  ;;  %v1695_v18 = vld [vmem:[#allocation4 + $0x260] sm:$0xff] }
 0x316   :  { %1933 = vmatpush.msrb.mxu0 %v1775_v35  ;;  %v1627_v21 = vld [vmem:[#allocation4 + $0x40] sm:$0xff]  ;;  %v1780_v35 = vld [vmem:[#allocation4 + $0x508] sm:$0xff] }
 0x317   :  { %1587 = vmatpush.msrb.mxu2 %v1504_v44  ;;  %1952 = vmatpush.msrb.mxu1 %v1843_v49  ;;  %v1647_v44 = vld [vmem:[#allocation4 + $0xe0] sm:$0xff] }
 0x318   :  { %1934 = vmatpush.msrb.mxu0 %v1771_v37  ;;  %v1691_v14 = vld [vmem:[#allocation4 + $0x240] sm:$0xff]  ;;  %v1680_v37 = vld [vmem:[#allocation4 + $0x1e8] sm:$0xff] }
 0x319   :  { %1588 = vmatpush.msrb.mxu2 %v1500_v40  ;;  %1953 = vmatpush.msrb.mxu1 %v1839_v62  ;;  %v1804_v40 = vld [vmem:[#allocation4 + $0x5c8] sm:$0xff]  ;;  %v1623_v39 = vld [vmem:[#allocation4 + $0x20] sm:$0xff] }
 0x31a   :  { %v1687_v49 = vld [vmem:[#allocation4 + $0x220] sm:$0xff]  ;;  %v1844_v62 = vld [vmem:[#allocation4 + $0x708] sm:$0xff] }
 0x31b   :  { %1589 = vmatpush.msrb.mxu2 %v1496_v33  ;;  %1954 = vmatpush.msrb.mxu1 %v1835_v38  ;;  %v1643_v33 = vld [vmem:[#allocation4 + $0xc0] sm:$0xff]  ;;  %v1744_v38 = vld [vmem:[#allocation4 + $0x3e8] sm:$0xff] }
 0x31d   :  { %1590 = vmatpush.msrb.mxu2 %v1492_v20  ;;  %v1800_v20 = vld [vmem:[#allocation4 + $0x5a8] sm:$0xff] }
 0x327   :  { %v1399_v30 = vpop.permute.xlu1 %1398 }
 0x328   :  { %v1402_v51 = vsel %vm137_vm0, %v1390_v31, %v1399_v30  ;;  %v1743_v31 = vld [vmem:[#allocation4 + $0x3e0] sm:$0xff] }
 0x329   :  { %v1410_v8 = vadd.f32 %v1406_v43, %v1402_v51  ;;  %v1679_v43 = vld [vmem:[#allocation4 + $0x1e0] sm:$0xff] }
 0x32a   :  { %v1767_v30 = vld [vmem:[#allocation4 + $0x4a0] sm:$0xff] }
 0x32b   :  { %v1412_v60 = vmax.f32 %v1410_v8, 0.0  ;;  %v1831_v51 = vld [vmem:[#allocation4 + $0x6a0] sm:$0xff]  ;;  %1935 = vmatpush.msrb.mxu0 %v1767_v30  ;;  %v1672_v30 = vld [vmem:[#allocation4 + $0x1a8] sm:$0xff] }
 0x32c   :  { %v1675_v8 = vld [vmem:[#allocation4 + $0x1c0] sm:$0xff]  ;;  %1955 = vmatpush.msrb.mxu1 %v1831_v51  ;;  %v1736_v51 = vld [vmem:[#allocation4 + $0x3a8] sm:$0xff] }
 0x32d   :  { %1485 = vmatmul.f32.vlgmr.msrb.gmra.mxu3 %v1412_v60  ;;  %v1739_v60 = vld [vmem:[#allocation4 + $0x3c0] sm:$0xff]  ;;  %1936 = vmatpush.msrb.mxu0 %v1763_v55  ;;  %v1664_v55 = vld [vmem:[#allocation4 + $0x168] sm:$0xff] }
 0x32e   :  { %1603 = vmatpush.msrb.mxu3 %v1521_v54  ;;  %1956 = vmatpush.msrb.mxu1 %v1827_v19  ;;  %v1719_v54 = vld [vmem:[#allocation4 + $0x320] sm:$0xff]  ;;  %v1728_v19 = vld [vmem:[#allocation4 + $0x368] sm:$0xff] }
 0x32f   :  { %1937 = vmatpush.msrb.mxu0 %v1759_v10  ;;  %v1656_v10 = vld [vmem:[#allocation4 + $0x128] sm:$0xff] }
 0x330   :  { %1604 = vmatpush.msrb.mxu3 %v1517_v29  ;;  %1957 = vmatpush.msrb.mxu1 %v1823_v6  ;;  %v1811_v29 = vld [vmem:[#allocation4 + $0x600] sm:$0xff]  ;;  %v1720_v6 = vld [vmem:[#allocation4 + $0x328] sm:$0xff] }
 0x331   :  { %1938 = vmatpush.msrb.mxu0 %v1755_v61  ;;  %v1644_v61 = vld [vmem:[#allocation4 + $0xc8] sm:$0xff] }
 0x332   :  { %1605 = vmatpush.msrb.mxu3 %v1513_v26  ;;  %1958 = vmatpush.msrb.mxu1 %v1819_v16  ;;  %v1715_v26 = vld [vmem:[#allocation4 + $0x300] sm:$0xff]  ;;  %v1708_v16 = vld [vmem:[#allocation4 + $0x2c8] sm:$0xff] }
 0x333   :  { %1939 = vmatpush.msrb.mxu0 %v1751_v12  ;;  %v1636_v12 = vld [vmem:[#allocation4 + $0x88] sm:$0xff] }
 0x334   :  { %1606 = vmatpush.msrb.mxu3 %v1509_v22  ;;  %1959 = vmatpush.msrb.mxu1 %v1815_v47  ;;  %v1872_v22 = vld [vmem:[#allocation4 + $0x7e8] sm:$0xff] }
 0x335   :  { %1940 = vmatpush.msrb.mxu0 %v1747_v42  ;;  %v1700_v47 = vld [vmem:[#allocation4 + $0x288] sm:$0xff] }
 0x336   :  { %1607 = vmatpush.msrb.mxu3 %v1505_v13  ;;  %v1711_v13 = vld [vmem:[#allocation4 + $0x2e0] sm:$0xff]  ;;  %1960 = vmatpush.msrb.mxu1 %v1811_v29  ;;  %v1628_v42 = vld [vmem:[#allocation4 + $0x48] sm:$0xff] }
 0x337   :  { %2005 = vmatpush.msra.mxu0 %v1808_v32  ;;  %v1692_v29 = vld [vmem:[#allocation4 + $0x248] sm:$0xff] }
 0x338   :  { %1608 = vmatpush.msrb.mxu3 %v1501_v34  ;;  %v1868_v34 = vld [vmem:[#allocation4 + $0x7c8] sm:$0xff]  ;;  %2025 = vmatpush.msra.mxu1 %v1872_v22 }
 0x339   :  { %2006 = vmatpush.msra.mxu0 %v1804_v40  ;;  %v1624_v32 = vld [vmem:[#allocation4 + $0x28] sm:$0xff] }
 0x33a   :  { %1609 = vmatpush.msrb.mxu3 %v1497_v4  ;;  %v1707_v4 = vld [vmem:[#allocation4 + $0x2c0] sm:$0xff]  ;;  %2026 = vmatpush.msra.mxu1 %v1868_v34  ;;  %v1688_v22 = vld [vmem:[#allocation4 + $0x228] sm:$0xff] }
 0x33b   :  { %2007 = vmatpush.msra.mxu0 %v1800_v20  ;;  %v1620_v40 = vld [vmem:[#allocation4 + $0x8] sm:$0xff] }
 0x33c   :  { %1610 = vmatpush.msrb.mxu3 %v1493_v63  ;;  %v1864_v63 = vld [vmem:[#allocation4 + $0x7a8] sm:$0xff] }
 0x33d   :  { %2027 = vmatpush.msra.mxu1 %v1864_v63  ;;  %2008 = vmatpush.msra.mxu0 %v1796_v0  ;;  %v1684_v34 = vld [vmem:[#allocation4 + $0x208] sm:$0xff] }
 0x33e   :  { %v1760_v20 = vld [vmem:[#allocation4 + $0x468] sm:$0xff] }
 0x33f   :  { %2028 = vmatpush.msra.mxu1 %v1860_v23  ;;  %2009 = vmatpush.msra.mxu0 %v1792_v15  ;;  %v1824_v63 = vld [vmem:[#allocation4 + $0x668] sm:$0xff]  ;;  %v1522_v15 = vld [vmem:[%s4623_s6] sm:$0xf] }
 0x340   :  { %v1752_v0 = vld [vmem:[#allocation4 + $0x428] sm:$0xff] }
 0x341   :  { %2029 = vmatpush.msra.mxu1 %v1856_v2  ;;  %2010 = vmatpush.msra.mxu0 %v1788_v46  ;;  %v1816_v23 = vld [vmem:[#allocation4 + $0x628] sm:$0xff]  ;;  %v1524_v2 = vperm.slane %v1522_v15, 0 }
 0x343   :  { %2030 = vmatpush.msra.mxu1 %v1852_v41 }
 0x391   :  { %v1466_v36 = vpop.f32.mrf.mxu2 }
 0x392   :  { %v1467_v11 = vadd.f32 %v3104_v27, %v1466_v36  ;;  %v1784_v27 = vld [vmem:[#allocation4 + $0x528] sm:$0xff] }
 0x393   :  { %v1848_v36 = vld [vmem:[#allocation4 + $0x728] sm:$0xff]  ;;  %2011 = vmatpush.msra.mxu0 %v1784_v27 }
 0x394   :  { %2031 = vmatpush.msra.mxu1 %v1848_v36  ;;  %v1681_v36 = vld [vmem:[#allocation4 + $0x1f0] sm:$0xff] }
 0x395   :  { %2012 = vmatpush.msra.mxu0 %v1780_v35  ;;  %v1741_v35 = vld [vmem:[#allocation4 + $0x3d0] sm:$0xff] }
 0x396   :  { %2032 = vmatpush.msra.mxu1 %v1844_v62  ;;  %v1526_v62 = vperm.slane %v1522_v15, 2 }
 0x3b0   :  { %v1486_v56 = vpop.f32.mrf.mxu3 }
 0x3b1   :  { %v1487_v57 = vadd.f32 %v1486_v56, %v1467_v11  ;;  %v1619_v11 = vld [vmem:[#allocation4] sm:$0xff] }
 0x3b2   :  { %v1683_v56 = vld [vmem:[#allocation4 + $0x200] sm:$0xff] }
 0x3b3   :  { %v1489_v58 = vmax.f32 %v1487_v57, 0.0  ;;  %v1776_v57 = vld [vmem:[#allocation4 + $0x4e8] sm:$0xff] }
 0x3b4   :  { %2013 = vmatpush.msra.mxu0 %v1776_v57 }
 0x3b5   :  { %3074 = vmatmul.msk.f32.vlgmr.msra.gmra.mxu2 %vm137_vm0, %v1489_v58  ;;  %3075 = vmatmul.msk.f32.vlgmr.msra.gmra.mxu3 %vm137_vm0, %v1489_v58 }
 0x3b6   :  { %1885 = vmatpush.msra.mxu2 %v1679_v43  ;;  %1905 = vmatpush.msra.mxu3 %v1743_v31  ;;  %v1676_v43 = vld [vmem:[#allocation4 + $0x1c8] sm:$0xff] }
 0x3b7   :  { %v1740_v31 = vld [vmem:[#allocation4 + $0x3c8] sm:$0xff] }
 0x3b8   :  { %1886 = vmatpush.msra.mxu2 %v1675_v8  ;;  %1906 = vmatpush.msra.mxu3 %v1739_v60  ;;  %v1668_v8 = vld [vmem:[#allocation4 + $0x188] sm:$0xff] }
 0x3b9   :  { %v1732_v60 = vld [vmem:[#allocation4 + $0x388] sm:$0xff] }
 0x3ba   :  { %1887 = vmatpush.msra.mxu2 %v1671_v48  ;;  %1907 = vmatpush.msra.mxu3 %v1735_v9  ;;  %v1660_v48 = vld [vmem:[#allocation4 + $0x148] sm:$0xff] }
 0x3bb   :  { %v1724_v9 = vld [vmem:[#allocation4 + $0x348] sm:$0xff] }
 0x3bc   :  { %1888 = vmatpush.msra.mxu2 %v1667_v53  ;;  %1908 = vmatpush.msra.mxu3 %v1731_v28  ;;  %v1652_v53 = vld [vmem:[#allocation4 + $0x108] sm:$0xff] }
 0x3bd   :  { %3076 = vmatmul.msk.f32.vlgmr.msrb.gmra.mxu2 %vm137_vm0, %v1489_v58  ;;  %3077 = vmatmul.msk.f32.vlgmr.msrb.gmra.mxu3 %vm137_vm0, %v1489_v58  ;;  %v1840_v58 = vld [vmem:[#allocation4 + $0x6e8] sm:$0xff] }
 0x3be   :  { %1889 = vmatpush.msra.mxu2 %v1663_v5  ;;  %1909 = vmatpush.msra.mxu3 %v1727_v3  ;;  %v1716_v28 = vld [vmem:[#allocation4 + $0x308] sm:$0xff] }
 0x3bf   :  { %2033 = vmatpush.msra.mxu1 %v1840_v58  ;;  %v1648_v5 = vld [vmem:[#allocation4 + $0xe8] sm:$0xff] }
 0x3c0   :  { %1890 = vmatpush.msra.mxu2 %v1659_v7  ;;  %1910 = vmatpush.msra.mxu3 %v1723_v25  ;;  %v1712_v3 = vld [vmem:[#allocation4 + $0x2e8] sm:$0xff] }
 0x3c1   :  { %v1640_v7 = vld [vmem:[#allocation4 + $0xa8] sm:$0xff] }
 0x3c2   :  { %1891 = vmatpush.msra.mxu2 %v1655_v24  ;;  %1911 = vmatpush.msra.mxu3 %v1719_v54  ;;  %v1704_v25 = vld [vmem:[#allocation4 + $0x2a8] sm:$0xff] }
 0x3c3   :  { %v1632_v24 = vld [vmem:[#allocation4 + $0x68] sm:$0xff] }
 0x3c4   :  { %1892 = vmatpush.msra.mxu2 %v1651_v59  ;;  %1912 = vmatpush.msra.mxu3 %v1715_v26  ;;  %v1696_v54 = vld [vmem:[#allocation4 + $0x268] sm:$0xff] }
 0x3c5   :  { %v1772_v59 = vld [vmem:[#allocation4 + $0x4c8] sm:$0xff] }
 0x3c6   :  { %1893 = vmatpush.msra.mxu2 %v1647_v44  ;;  %1913 = vmatpush.msra.mxu3 %v1711_v13  ;;  %v1836_v26 = vld [vmem:[#allocation4 + $0x6c8] sm:$0xff] }
 0x3c7   :  { %2014 = vmatpush.msra.mxu0 %v1772_v59  ;;  %2034 = vmatpush.msra.mxu1 %v1836_v26  ;;  %v1768_v44 = vld [vmem:[#allocation4 + $0x4a8] sm:$0xff]  ;;  %v1709_v59 = vld [vmem:[#allocation4 + $0x2d0] sm:$0xff] }
 0x3c8   :  { %1894 = vmatpush.msra.mxu2 %v1643_v33  ;;  %1914 = vmatpush.msra.mxu3 %v1707_v4  ;;  %v1832_v13 = vld [vmem:[#allocation4 + $0x6a8] sm:$0xff]  ;;  %v1789_v26 = vld [vmem:[#allocation4 + $0x550] sm:$0xff] }
 0x3c9   :  { %2015 = vmatpush.msra.mxu0 %v1768_v44  ;;  %2035 = vmatpush.msra.mxu1 %v1832_v13  ;;  %v1764_v33 = vld [vmem:[#allocation4 + $0x488] sm:$0xff]  ;;  %v1705_v44 = vld [vmem:[#allocation4 + $0x2b0] sm:$0xff] }
 0x3ca   :  { %1895 = vmatpush.msra.mxu2 %v1639_v17  ;;  %1915 = vmatpush.msra.mxu3 %v1703_v1  ;;  %v1828_v4 = vld [vmem:[#allocation4 + $0x688] sm:$0xff]  ;;  %v1785_v13 = vld [vmem:[#allocation4 + $0x530] sm:$0xff] }
 0x3cb   :  { %2016 = vmatpush.msra.mxu0 %v1764_v33  ;;  %2036 = vmatpush.msra.mxu1 %v1828_v4  ;;  %v1756_v17 = vld [vmem:[#allocation4 + $0x448] sm:$0xff]  ;;  %v1701_v33 = vld [vmem:[#allocation4 + $0x290] sm:$0xff] }
 0x3cc   :  { %1896 = vmatpush.msra.mxu2 %v1635_v45  ;;  %1916 = vmatpush.msra.mxu3 %v1699_v50  ;;  %v1820_v1 = vld [vmem:[#allocation4 + $0x648] sm:$0xff]  ;;  %v1781_v4 = vld [vmem:[#allocation4 + $0x510] sm:$0xff] }
 0x3cd   :  { %2017 = vmatpush.msra.mxu0 %v1760_v20  ;;  %2037 = vmatpush.msra.mxu1 %v1824_v63  ;;  %v1748_v45 = vld [vmem:[#allocation4 + $0x408] sm:$0xff]  ;;  %v1845_v20 = vld [vmem:[#allocation4 + $0x710] sm:$0xff] }
 0x3ce   :  { %1897 = vmatpush.msra.mxu2 %v1631_v52  ;;  %1917 = vmatpush.msra.mxu3 %v1695_v18  ;;  %v1812_v50 = vld [vmem:[#allocation4 + $0x608] sm:$0xff]  ;;  %v1525_v52 = vperm.slane %v1522_v15, 1  ;;  %v1633_v63 = vld [vmem:[#allocation4 + $0x70] sm:$0xff] }
 0x3cf   :  { %2018 = vmatpush.msra.mxu0 %v1756_v17  ;;  %2038 = vmatpush.msra.mxu1 %v1820_v1  ;;  %v1697_v17 = vld [vmem:[#allocation4 + $0x270] sm:$0xff] }
 0x3d0   :  { %1898 = vmatpush.msra.mxu2 %v1627_v21  ;;  %1918 = vmatpush.msra.mxu3 %v1691_v14  ;;  %v1777_v1 = vld [vmem:[#allocation4 + $0x4f0] sm:$0xff] }
 0x3d1   :  { %2019 = vmatpush.msra.mxu0 %v1752_v0  ;;  %2039 = vmatpush.msra.mxu1 %v1816_v23  ;;  %v1841_v0 = vld [vmem:[#allocation4 + $0x6f0] sm:$0xff] }
 0x3d2   :  { %1899 = vmatpush.msra.mxu2 %v1623_v39  ;;  %1919 = vmatpush.msra.mxu3 %v1687_v49  ;;  %v1745_v39 = vld [vmem:[#allocation4 + $0x3f0] sm:$0xff] }
 0x3d3   :  { %2020 = vmatpush.msra.mxu0 %v1748_v45  ;;  %2040 = vmatpush.msra.mxu1 %v1812_v50  ;;  %v1677_v49 = vld [vmem:[#allocation4 + $0x1d0] sm:$0xff] }
 0x3d4   :  { %1900 = vmatpush.msra.mxu2 %v1619_v11  ;;  %1920 = vmatpush.msra.mxu3 %v1683_v56  ;;  %v1527_v11 = vperm.slane %v1522_v15, 3  ;;  %v1673_v56 = vld [vmem:[#allocation4 + $0x1b0] sm:$0xff] }
 0x3d5   :  { %v1629_v23 = vld [vmem:[#allocation4 + $0x50] sm:$0xff] }
 0x3d6   :  { %1965 = vmatpush.msrb.mxu2 %v1680_v37  ;;  %1985 = vmatpush.msrb.mxu3 %v1744_v38  ;;  %v1737_v37 = vld [vmem:[#allocation4 + $0x3b0] sm:$0xff] }
 0x3d7   :  { %v1693_v45 = vld [vmem:[#allocation4 + $0x250] sm:$0xff] }
 0x3d8   :  { %1966 = vmatpush.msrb.mxu2 %v1676_v43  ;;  %1986 = vmatpush.msrb.mxu3 %v1740_v31  ;;  %v1669_v31 = vld [vmem:[#allocation4 + $0x190] sm:$0xff] }
 0x3d9   :  { %v1773_v50 = vld [vmem:[#allocation4 + $0x4d0] sm:$0xff] }
 0x3da   :  { %1967 = vmatpush.msrb.mxu2 %v1672_v30  ;;  %1987 = vmatpush.msrb.mxu3 %v1736_v51  ;;  %v1733_v30 = vld [vmem:[#allocation4 + $0x390] sm:$0xff] }
 0x3db   :  { %v1837_v15 = vld [vmem:[#allocation4 + $0x6d0] sm:$0xff] }
 0x3dc   :  { %1968 = vmatpush.msrb.mxu2 %v1668_v8  ;;  %1988 = vmatpush.msrb.mxu3 %v1732_v60  ;;  %v1665_v60 = vld [vmem:[#allocation4 + $0x170] sm:$0xff] }
 0x3de   :  { %1969 = vmatpush.msrb.mxu2 %v1664_v55  ;;  %1989 = vmatpush.msrb.mxu3 %v1728_v19  ;;  %v1729_v55 = vld [vmem:[#allocation4 + $0x370] sm:$0xff] }
 0x3df   :  { %v1809_v19 = vld [vmem:[#allocation4 + $0x5f0] sm:$0xff] }
 0x3e0   :  { %1970 = vmatpush.msrb.mxu2 %v1660_v48  ;;  %1990 = vmatpush.msrb.mxu3 %v1724_v9  ;;  %v1873_v48 = vld [vmem:[#allocation4 + $0x7f0] sm:$0xff] }
 0x3e1   :  { %v1661_v9 = vld [vmem:[#allocation4 + $0x150] sm:$0xff] }
 0x3e2   :  { %1971 = vmatpush.msrb.mxu2 %v1656_v10  ;;  %1991 = vmatpush.msrb.mxu3 %v1720_v6  ;;  %v1725_v10 = vld [vmem:[#allocation4 + $0x350] sm:$0xff] }
 0x3e3   :  { %v1805_v6 = vld [vmem:[#allocation4 + $0x5d0] sm:$0xff] }
 0x3e4   :  { %1972 = vmatpush.msrb.mxu2 %v1652_v53  ;;  %1992 = vmatpush.msrb.mxu3 %v1716_v28  ;;  %v1869_v53 = vld [vmem:[#allocation4 + $0x7d0] sm:$0xff] }
 0x3e5   :  { %v1657_v28 = vld [vmem:[#allocation4 + $0x130] sm:$0xff] }
 0x3e6   :  { %1973 = vmatpush.msrb.mxu2 %v1648_v5  ;;  %1993 = vmatpush.msrb.mxu3 %v1712_v3  ;;  %v1721_v5 = vld [vmem:[#allocation4 + $0x330] sm:$0xff] }
 0x3e7   :  { %v1801_v3 = vld [vmem:[#allocation4 + $0x5b0] sm:$0xff] }
 0x3e8   :  { %1974 = vmatpush.msrb.mxu2 %v1644_v61  ;;  %1994 = vmatpush.msrb.mxu3 %v1708_v16  ;;  %v1865_v61 = vld [vmem:[#allocation4 + $0x7b0] sm:$0xff] }
 0x3e9   :  { %v1653_v16 = vld [vmem:[#allocation4 + $0x110] sm:$0xff] }
 0x3ea   :  { %1975 = vmatpush.msrb.mxu2 %v1640_v7  ;;  %1995 = vmatpush.msrb.mxu3 %v1704_v25  ;;  %v1717_v7 = vld [vmem:[#allocation4 + $0x310] sm:$0xff] }
 0x3eb   :  { %v1797_v25 = vld [vmem:[#allocation4 + $0x590] sm:$0xff] }
 0x3ec   :  { %1976 = vmatpush.msrb.mxu2 %v1636_v12  ;;  %1996 = vmatpush.msrb.mxu3 %v1700_v47  ;;  %v1861_v12 = vld [vmem:[#allocation4 + $0x790] sm:$0xff] }
 0x3ed   :  { %v1649_v47 = vld [vmem:[#allocation4 + $0xf0] sm:$0xff] }
 0x3ee   :  { %1977 = vmatpush.msrb.mxu2 %v1632_v24  ;;  %1997 = vmatpush.msrb.mxu3 %v1696_v54  ;;  %v1713_v24 = vld [vmem:[#allocation4 + $0x2f0] sm:$0xff] }
 0x3ef   :  { %v1793_v54 = vld [vmem:[#allocation4 + $0x570] sm:$0xff] }
 0x3f0   :  { %1978 = vmatpush.msrb.mxu2 %v1628_v42  ;;  %1998 = vmatpush.msrb.mxu3 %v1692_v29  ;;  %v1857_v42 = vld [vmem:[#allocation4 + $0x770] sm:$0xff] }
 0x3f1   :  { %v1645_v29 = vld [vmem:[#allocation4 + $0xd0] sm:$0xff] }
 0x3f2   :  { %1979 = vmatpush.msrb.mxu2 %v1624_v32  ;;  %1999 = vmatpush.msrb.mxu3 %v1688_v22  ;;  %v1853_v32 = vld [vmem:[#allocation4 + $0x750] sm:$0xff] }
 0x3f3   :  { %v1641_v22 = vld [vmem:[#allocation4 + $0xb0] sm:$0xff] }
 0x3f4   :  { %1980 = vmatpush.msrb.mxu2 %v1620_v40  ;;  %2000 = vmatpush.msrb.mxu3 %v1684_v34  ;;  %v1849_v40 = vld [vmem:[#allocation4 + $0x730] sm:$0xff] }
 0x3f5   :  { %v1637_v34 = vld [vmem:[#allocation4 + $0x90] sm:$0xff] }
 0x438   :  { %v1552_v18 = vpop.f32.mrf.mxu2  ;;  %v1572_v46 = vpop.f32.mrf.mxu3 }
 0x439   :  { %v1553_v41 = vadd.f32 %v1552_v18, %v1524_v2  ;;  %v1573_v21 = vadd.f32 %v1572_v46, %v1525_v52  ;;  %v1625_v2 = vld [vmem:[#allocation4 + $0x30] sm:$0xff] }
 0x43a   :  { %v1689_v52 = vld [vmem:[#allocation4 + $0x230] sm:$0xff] }
 0x43b   :  { %v4353_v14 = vmax.f32 %v1553_v41, 0.0  ;;  %v4355_v27 = vmax.f32 %v1573_v21, 0.0  ;;  %v1769_v18 = vld [vmem:[#allocation4 + $0x4b0] sm:$0xff] }
 0x43c   :  { %v1833_v46 = vld [vmem:[#allocation4 + $0x6b0] sm:$0xff] }
 0x43d   :  { %1901 = vmatmul.f32.vlgmr.msra.gmra.mxu2 %v4353_v14  ;;  %1921 = vmatmul.f32.vlgmr.msra.gmra.mxu3 %v4355_v27  ;;  %v1621_v41 = vld [vmem:[#allocation4 + $0x10] sm:$0xff] }
 0x43e   :  { %2045 = vmatpush.msra.mxu2 %v1681_v36  ;;  %2065 = vmatpush.msra.mxu3 %v1745_v39  ;;  %v1685_v21 = vld [vmem:[#allocation4 + $0x210] sm:$0xff] }
 0x43f   :  { %v1765_v36 = vld [vmem:[#allocation4 + $0x490] sm:$0xff] }
 0x440   :  { %2046 = vmatpush.msra.mxu2 %v1677_v49  ;;  %2066 = vmatpush.msra.mxu3 %v1741_v35  ;;  %v1592_v38 = vpop.f32.mrf.mxu2  ;;  %v1612_v57 = vpop.f32.mrf.mxu3  ;;  %v1829_v39 = vld [vmem:[#allocation4 + $0x690] sm:$0xff]  ;;  %v1682_v49 = vld [vmem:[#allocation4 + $0x1f8] sm:$0xff] }
 0x441   :  { %v1593_v58 = vadd.f32 %v1592_v38, %v1526_v62  ;;  %v1613_v43 = vadd.f32 %v1612_v57, %v1527_v11  ;;  %v1746_v35 = vld [vmem:[#allocation4 + $0x3f8] sm:$0xff]  ;;  %v1761_v62 = vld [vmem:[#allocation4 + $0x470] sm:$0xff] }
 0x442   :  { %2047 = vmatpush.msra.mxu2 %v1673_v56  ;;  %2067 = vmatpush.msra.mxu3 %v1737_v37  ;;  %v1825_v11 = vld [vmem:[#allocation4 + $0x670] sm:$0xff]  ;;  %v1678_v56 = vld [vmem:[#allocation4 + $0x1d8] sm:$0xff] }
 0x443   :  { %v4359_v51 = vmax.f32 %v1593_v58, 0.0  ;;  %v4361_v8 = vmax.f32 %v1613_v43, 0.0  ;;  %v1742_v37 = vld [vmem:[#allocation4 + $0x3d8] sm:$0xff]  ;;  %v1757_v38 = vld [vmem:[#allocation4 + $0x450] sm:$0xff] }
 0x444   :  { %2048 = vmatpush.msra.mxu2 %v1669_v31  ;;  %2068 = vmatpush.msra.mxu3 %v1733_v30  ;;  %v1821_v57 = vld [vmem:[#allocation4 + $0x650] sm:$0xff]  ;;  %v1674_v58 = vld [vmem:[#allocation4 + $0x1b8] sm:$0xff] }
 0x445   :  { %1941 = vmatmul.f32.vlgmr.msrb.gmra.mxu0 %v4359_v51  ;;  %1961 = vmatmul.f32.vlgmr.msrb.gmra.mxu1 %v4361_v8  ;;  %v1738_v43 = vld [vmem:[#allocation4 + $0x3b8] sm:$0xff]  ;;  %v1753_v31 = vld [vmem:[#allocation4 + $0x430] sm:$0xff] }
 0x446   :  { %1981 = vmatmul.f32.vlgmr.msrb.gmra.mxu2 %v4353_v14  ;;  %2001 = vmatmul.f32.vlgmr.msrb.gmra.mxu3 %v4355_v27  ;;  %v1817_v30 = vld [vmem:[#allocation4 + $0x630] sm:$0xff] }
 0x447   :  { %2049 = vmatpush.msra.mxu2 %v1665_v60  ;;  %2069 = vmatpush.msra.mxu3 %v1729_v55  ;;  %v1670_v60 = vld [vmem:[#allocation4 + $0x198] sm:$0xff] }
 0x448   :  { %2085 = vmatpush.msrb.mxu0 %v1809_v19  ;;  %2105 = vmatpush.msrb.mxu1 %v1873_v48  ;;  %v1734_v55 = vld [vmem:[#allocation4 + $0x398] sm:$0xff]  ;;  %v1749_v19 = vld [vmem:[#allocation4 + $0x410] sm:$0xff] }
 0x449   :  { %2050 = vmatpush.msra.mxu2 %v1661_v9  ;;  %2070 = vmatpush.msra.mxu3 %v1725_v10  ;;  %v1813_v48 = vld [vmem:[#allocation4 + $0x610] sm:$0xff]  ;;  %v1666_v9 = vld [vmem:[#allocation4 + $0x178] sm:$0xff] }
 0x44a   :  { %2086 = vmatpush.msrb.mxu0 %v1805_v6  ;;  %2106 = vmatpush.msrb.mxu1 %v1869_v53  ;;  %v1730_v10 = vld [vmem:[#allocation4 + $0x378] sm:$0xff] }
 0x44b   :  { %2051 = vmatpush.msra.mxu2 %v1657_v28  ;;  %2071 = vmatpush.msra.mxu3 %v1721_v5  ;;  %v1810_v6 = vld [vmem:[#allocation4 + $0x5f8] sm:$0xff] }
 0x44c   :  { %2087 = vmatpush.msrb.mxu0 %v1801_v3  ;;  %2107 = vmatpush.msrb.mxu1 %v1865_v61  ;;  %v1874_v53 = vld [vmem:[#allocation4 + $0x7f8] sm:$0xff] }
 0x44d   :  { %2052 = vmatpush.msra.mxu2 %v1653_v16  ;;  %2072 = vmatpush.msra.mxu3 %v1717_v7  ;;  %v1662_v28 = vld [vmem:[#allocation4 + $0x158] sm:$0xff] }
 0x44e   :  { %2088 = vmatpush.msrb.mxu0 %v1797_v25  ;;  %2108 = vmatpush.msrb.mxu1 %v1861_v12  ;;  %v1726_v5 = vld [vmem:[#allocation4 + $0x358] sm:$0xff] }
 0x44f   :  { %2021 = vmatmul.f32.vlgmr.msra.gmra.mxu0 %v4359_v51  ;;  %2041 = vmatmul.f32.vlgmr.msra.gmra.mxu1 %v4361_v8  ;;  %v1806_v3 = vld [vmem:[#allocation4 + $0x5d8] sm:$0xff] }
 0x450   :  { %2053 = vmatpush.msra.mxu2 %v1649_v47  ;;  %2073 = vmatpush.msra.mxu3 %v1713_v24  ;;  %v1870_v61 = vld [vmem:[#allocation4 + $0x7d8] sm:$0xff] }
 0x451   :  { %2089 = vmatpush.msrb.mxu0 %v1793_v54  ;;  %2109 = vmatpush.msrb.mxu1 %v1857_v42  ;;  %v1658_v16 = vld [vmem:[#allocation4 + $0x138] sm:$0xff] }
 0x452   :  { %2054 = vmatpush.msra.mxu2 %v1645_v29  ;;  %2074 = vmatpush.msra.mxu3 %v1709_v59  ;;  %v1722_v7 = vld [vmem:[#allocation4 + $0x338] sm:$0xff] }
 0x453   :  { %2090 = vmatpush.msrb.mxu0 %v1789_v26  ;;  %2110 = vmatpush.msrb.mxu1 %v1853_v32  ;;  %v1802_v25 = vld [vmem:[#allocation4 + $0x5b8] sm:$0xff] }
 0x454   :  { %2055 = vmatpush.msra.mxu2 %v1641_v22  ;;  %2075 = vmatpush.msra.mxu3 %v1705_v44  ;;  %v1866_v12 = vld [vmem:[#allocation4 + $0x7b8] sm:$0xff] }
 0x455   :  { %2091 = vmatpush.msrb.mxu0 %v1785_v13  ;;  %2111 = vmatpush.msrb.mxu1 %v1849_v40  ;;  %v1654_v47 = vld [vmem:[#allocation4 + $0x118] sm:$0xff] }
 0x456   :  { %2056 = vmatpush.msra.mxu2 %v1637_v34  ;;  %2076 = vmatpush.msra.mxu3 %v1701_v33  ;;  %v1718_v24 = vld [vmem:[#allocation4 + $0x318] sm:$0xff] }
 0x457   :  { %2092 = vmatpush.msrb.mxu0 %v1781_v4  ;;  %2112 = vmatpush.msrb.mxu1 %v1845_v20  ;;  %v1798_v54 = vld [vmem:[#allocation4 + $0x598] sm:$0xff] }
 0x458   :  { %2057 = vmatpush.msra.mxu2 %v1633_v63  ;;  %2077 = vmatpush.msra.mxu3 %v1697_v17  ;;  %v1862_v42 = vld [vmem:[#allocation4 + $0x798] sm:$0xff] }
 0x459   :  { %2093 = vmatpush.msrb.mxu0 %v1777_v1  ;;  %2113 = vmatpush.msrb.mxu1 %v1841_v0  ;;  %v1650_v29 = vld [vmem:[#allocation4 + $0xf8] sm:$0xff] }
 0x45a   :  { %2058 = vmatpush.msra.mxu2 %v1629_v23  ;;  %2078 = vmatpush.msra.mxu3 %v1693_v45  ;;  %v1714_v59 = vld [vmem:[#allocation4 + $0x2f8] sm:$0xff] }
 0x45b   :  { %2094 = vmatpush.msrb.mxu0 %v1773_v50  ;;  %2114 = vmatpush.msrb.mxu1 %v1837_v15  ;;  %v1794_v26 = vld [vmem:[#allocation4 + $0x578] sm:$0xff] }
 0x45c   :  { %2059 = vmatpush.msra.mxu2 %v1625_v2  ;;  %2079 = vmatpush.msra.mxu3 %v1689_v52  ;;  %v1858_v32 = vld [vmem:[#allocation4 + $0x778] sm:$0xff] }
 0x45d   :  { %2095 = vmatpush.msrb.mxu0 %v1769_v18  ;;  %2115 = vmatpush.msrb.mxu1 %v1833_v46  ;;  %v1646_v22 = vld [vmem:[#allocation4 + $0xd8] sm:$0xff] }
 0x45e   :  { %2060 = vmatpush.msra.mxu2 %v1621_v41  ;;  %2080 = vmatpush.msra.mxu3 %v1685_v21  ;;  %v1710_v44 = vld [vmem:[#allocation4 + $0x2d8] sm:$0xff] }
 0x45f   :  { %2096 = vmatpush.msrb.mxu0 %v1765_v36  ;;  %2116 = vmatpush.msrb.mxu1 %v1829_v39  ;;  %v1790_v13 = vld [vmem:[#allocation4 + $0x558] sm:$0xff] }
 0x460   :  { %2061 = vmatmul.f32.vlgmr.msra.gmra.mxu2 %v4353_v14  ;;  %2081 = vmatmul.f32.vlgmr.msra.gmra.mxu3 %v4355_v27  ;;  %v1854_v40 = vld [vmem:[#allocation4 + $0x758] sm:$0xff] }
 0x461   :  { %2125 = vmatpush.msrb.mxu2 %v1682_v49  ;;  %2145 = vmatpush.msrb.mxu3 %v1746_v35  ;;  %v1642_v34 = vld [vmem:[#allocation4 + $0xb8] sm:$0xff] }
 0x462   :  { %2097 = vmatpush.msrb.mxu0 %v1761_v62  ;;  %2117 = vmatpush.msrb.mxu1 %v1825_v11  ;;  %v1706_v33 = vld [vmem:[#allocation4 + $0x2b8] sm:$0xff] }
 0x463   :  { %2126 = vmatpush.msrb.mxu2 %v1678_v56  ;;  %2146 = vmatpush.msrb.mxu3 %v1742_v37  ;;  %v1786_v4 = vld [vmem:[#allocation4 + $0x538] sm:$0xff] }
 0x464   :  { %2098 = vmatpush.msrb.mxu0 %v1757_v38  ;;  %2118 = vmatpush.msrb.mxu1 %v1821_v57  ;;  %v1850_v20 = vld [vmem:[#allocation4 + $0x738] sm:$0xff]  ;;  %v2269_v38 = vld [vmem:[#allocation6 + $0x1e0] sm:$0xff] }
 0x465   :  { %2127 = vmatpush.msrb.mxu2 %v1674_v58  ;;  %2147 = vmatpush.msrb.mxu3 %v1738_v43  ;;  %v1638_v63 = vld [vmem:[#allocation4 + $0x98] sm:$0xff]  ;;  %v2333_v57 = vld [vmem:[#allocation6 + $0x3e0] sm:$0xff] }
 0x466   :  { %2099 = vmatpush.msrb.mxu0 %v1753_v31  ;;  %2119 = vmatpush.msrb.mxu1 %v1817_v30  ;;  %v1702_v17 = vld [vmem:[#allocation4 + $0x298] sm:$0xff]  ;;  %v2265_v31 = vld [vmem:[#allocation6 + $0x1c0] sm:$0xff] }
 0x467   :  { %2128 = vmatpush.msrb.mxu2 %v1670_v60  ;;  %2148 = vmatpush.msrb.mxu3 %v1734_v55  ;;  %v1782_v1 = vld [vmem:[#allocation4 + $0x518] sm:$0xff]  ;;  %v2329_v30 = vld [vmem:[#allocation6 + $0x3c0] sm:$0xff] }
 0x468   :  { %2100 = vmatpush.msrb.mxu0 %v1749_v19  ;;  %2120 = vmatpush.msrb.mxu1 %v1813_v48  ;;  %v1846_v0 = vld [vmem:[#allocation4 + $0x718] sm:$0xff]  ;;  %v2261_v19 = vld [vmem:[#allocation6 + $0x1a0] sm:$0xff] }
 0x469   :  { %2101 = vmatmul.f32.vlgmr.msrb.gmra.mxu0 %v4359_v51  ;;  %2121 = vmatmul.f32.vlgmr.msrb.gmra.mxu1 %v4361_v8  ;;  %v1634_v23 = vld [vmem:[#allocation4 + $0x78] sm:$0xff]  ;;  %v2325_v48 = vld [vmem:[#allocation6 + $0x3a0] sm:$0xff] }
 0x46a   :  { %2129 = vmatpush.msrb.mxu2 %v1666_v9  ;;  %2149 = vmatpush.msrb.mxu3 %v1730_v10  ;;  %v1698_v45 = vld [vmem:[#allocation4 + $0x278] sm:$0xff] }
 0x46b   :  { %2165 = vmatpush.msra.mxu0 %v1810_v6  ;;  %2185 = vmatpush.msra.mxu1 %v1874_v53  ;;  %v1778_v50 = vld [vmem:[#allocation4 + $0x4f8] sm:$0xff]  ;;  %v2397_v6 = vld [vmem:[#allocation6 + $0x5e0] sm:$0xff] }
 0x46c   :  { %2130 = vmatpush.msrb.mxu2 %v1662_v28  ;;  %2150 = vmatpush.msrb.mxu3 %v1726_v5  ;;  %v1842_v15 = vld [vmem:[#allocation4 + $0x6f8] sm:$0xff]  ;;  %v2253_v53 = vld [vmem:[#allocation6 + $0x160] sm:$0xff] }
 0x46d   :  { %2166 = vmatpush.msra.mxu0 %v1806_v3  ;;  %2186 = vmatpush.msra.mxu1 %v1870_v61  ;;  %v1630_v2 = vld [vmem:[#allocation4 + $0x58] sm:$0xff]  ;;  %v2317_v28 = vld [vmem:[#allocation6 + $0x360] sm:$0xff] }
 0x46e   :  { %2131 = vmatpush.msrb.mxu2 %v1658_v16  ;;  %2151 = vmatpush.msrb.mxu3 %v1722_v7  ;;  %v1694_v52 = vld [vmem:[#allocation4 + $0x258] sm:$0xff]  ;;  %v2393_v5 = vld [vmem:[#allocation6 + $0x5c0] sm:$0xff] }
 0x46f   :  { %2167 = vmatpush.msra.mxu0 %v1802_v25  ;;  %2187 = vmatpush.msra.mxu1 %v1866_v12  ;;  %v1774_v18 = vld [vmem:[#allocation4 + $0x4d8] sm:$0xff]  ;;  %v2249_v3 = vld [vmem:[#allocation6 + $0x140] sm:$0xff] }
 0x470   :  { %2132 = vmatpush.msrb.mxu2 %v1654_v47  ;;  %2152 = vmatpush.msrb.mxu3 %v1718_v24  ;;  %v1838_v46 = vld [vmem:[#allocation4 + $0x6d8] sm:$0xff]  ;;  %v2313_v61 = vld [vmem:[#allocation6 + $0x340] sm:$0xff] }
 0x471   :  { %2168 = vmatpush.msra.mxu0 %v1798_v54  ;;  %2188 = vmatpush.msra.mxu1 %v1862_v42  ;;  %v1626_v41 = vld [vmem:[#allocation4 + $0x38] sm:$0xff]  ;;  %v2389_v16 = vld [vmem:[#allocation6 + $0x5a0] sm:$0xff] }
 0x472   :  { %2133 = vmatpush.msrb.mxu2 %v1650_v29  ;;  %2153 = vmatpush.msrb.mxu3 %v1714_v59  ;;  %v1690_v21 = vld [vmem:[#allocation4 + $0x238] sm:$0xff]  ;;  %v2245_v7 = vld [vmem:[#allocation6 + $0x120] sm:$0xff] }
 0x473   :  { %2169 = vmatpush.msra.mxu0 %v1794_v26  ;;  %2189 = vmatpush.msra.mxu1 %v1858_v32  ;;  %v1770_v36 = vld [vmem:[#allocation4 + $0x4b8] sm:$0xff]  ;;  %v2309_v25 = vld [vmem:[#allocation6 + $0x320] sm:$0xff] }
 0x474   :  { %2134 = vmatpush.msrb.mxu2 %v1646_v22  ;;  %2154 = vmatpush.msrb.mxu3 %v1710_v44  ;;  %v1834_v39 = vld [vmem:[#allocation4 + $0x6b8] sm:$0xff]  ;;  %v2385_v12 = vld [vmem:[#allocation6 + $0x580] sm:$0xff] }
 0x475   :  { %2170 = vmatpush.msra.mxu0 %v1790_v13  ;;  %2190 = vmatpush.msra.mxu1 %v1854_v40  ;;  %v1622_v49 = vld [vmem:[#allocation4 + $0x18] sm:$0xff]  ;;  %v2305_v47 = vld [vmem:[#allocation6 + $0x300] sm:$0xff] }
 0x476   :  { %2135 = vmatpush.msrb.mxu2 %v1642_v34  ;;  %2155 = vmatpush.msrb.mxu3 %v1706_v33  ;;  %v1686_v35 = vld [vmem:[#allocation4 + $0x218] sm:$0xff]  ;;  %v2237_v24 = vld [vmem:[#allocation6 + $0xe0] sm:$0xff] }
 0x477   :  { %2171 = vmatpush.msra.mxu0 %v1786_v4  ;;  %2191 = vmatpush.msra.mxu1 %v1850_v20  ;;  %v1766_v62 = vld [vmem:[#allocation4 + $0x498] sm:$0xff]  ;;  %v2301_v54 = vld [vmem:[#allocation6 + $0x2e0] sm:$0xff] }
 0x478   :  { %2136 = vmatpush.msrb.mxu2 %v1638_v63  ;;  %2156 = vmatpush.msrb.mxu3 %v1702_v17  ;;  %v1830_v11 = vld [vmem:[#allocation4 + $0x698] sm:$0xff]  ;;  %v2377_v42 = vld [vmem:[#allocation6 + $0x540] sm:$0xff] }
 0x479   :  { %2172 = vmatpush.msra.mxu0 %v1782_v1  ;;  %2192 = vmatpush.msra.mxu1 %v1846_v0  ;;  %v1762_v56 = vld [vmem:[#allocation4 + $0x478] sm:$0xff]  ;;  %v2233_v29 = vld [vmem:[#allocation6 + $0xc0] sm:$0xff] }
 0x47a   :  { %2137 = vmatpush.msrb.mxu2 %v1634_v23  ;;  %2157 = vmatpush.msrb.mxu3 %v1698_v45  ;;  %v1826_v37 = vld [vmem:[#allocation4 + $0x678] sm:$0xff]  ;;  %v2297_v59 = vld [vmem:[#allocation6 + $0x2c0] sm:$0xff] }
 0x47b   :  { %2173 = vmatpush.msra.mxu0 %v1778_v50  ;;  %2193 = vmatpush.msra.mxu1 %v1842_v15  ;;  %v1758_v58 = vld [vmem:[#allocation4 + $0x458] sm:$0xff]  ;;  %v2373_v26 = vld [vmem:[#allocation6 + $0x520] sm:$0xff]  ;;  %v2270_v50 = vld [vmem:[#allocation6 + $0x1e8] sm:$0xff] }
 0x47c   :  { %2138 = vmatpush.msrb.mxu2 %v1630_v2  ;;  %2158 = vmatpush.msrb.mxu3 %v1694_v52  ;;  %v1822_v43 = vld [vmem:[#allocation4 + $0x658] sm:$0xff]  ;;  %v2229_v32 = vld [vmem:[#allocation6 + $0xa0] sm:$0xff]  ;;  %v2334_v15 = vld [vmem:[#allocation6 + $0x3e8] sm:$0xff] }
 0x47d   :  { %2174 = vmatpush.msra.mxu0 %v1774_v18  ;;  %2194 = vmatpush.msra.mxu1 %v1838_v46  ;;  %v1754_v60 = vld [vmem:[#allocation4 + $0x438] sm:$0xff]  ;;  %v2293_v22 = vld [vmem:[#allocation6 + $0x2a0] sm:$0xff]  ;;  %v2266_v2 = vld [vmem:[#allocation6 + $0x1c8] sm:$0xff] }
 0x47e   :  { %2139 = vmatpush.msrb.mxu2 %v1626_v41  ;;  %2159 = vmatpush.msrb.mxu3 %v1690_v21  ;;  %v1818_v55 = vld [vmem:[#allocation4 + $0x638] sm:$0xff]  ;;  %v2369_v44 = vld [vmem:[#allocation6 + $0x500] sm:$0xff]  ;;  %v2330_v52 = vld [vmem:[#allocation6 + $0x3c8] sm:$0xff] }
 0x47f   :  { %2175 = vmatpush.msra.mxu0 %v1770_v36  ;;  %2195 = vmatpush.msra.mxu1 %v1834_v39  ;;  %v1750_v9 = vld [vmem:[#allocation4 + $0x418] sm:$0xff]  ;;  %v2225_v13 = vld [vmem:[#allocation6 + $0x80] sm:$0xff]  ;;  %v2262_v46 = vld [vmem:[#allocation6 + $0x1a8] sm:$0xff] }
 0x480   :  { %2140 = vmatpush.msrb.mxu2 %v1622_v49  ;;  %2160 = vmatpush.msrb.mxu3 %v1686_v35  ;;  %v1814_v10 = vld [vmem:[#allocation4 + $0x618] sm:$0xff]  ;;  %v2289_v40 = vld [vmem:[#allocation6 + $0x280] sm:$0xff]  ;;  %v2326_v41 = vld [vmem:[#allocation6 + $0x3a8] sm:$0xff] }
 0x481   :  { %2176 = vmatpush.msra.mxu0 %v1766_v62  ;;  %2196 = vmatpush.msra.mxu1 %v1830_v11  ;;  %v2365_v34 = vld [vmem:[#allocation6 + $0x4e0] sm:$0xff]  ;;  %v2258_v21 = vld [vmem:[#allocation6 + $0x188] sm:$0xff] }
 0x482   :  { %2141 = vmatmul.f32.vlgmr.msrb.gmra.mxu2 %v4353_v14  ;;  %2161 = vmatmul.f32.vlgmr.msrb.gmra.mxu3 %v4355_v27  ;;  %v2257_v14 = vld [vmem:[#allocation6 + $0x180] sm:$0xff]  ;;  %v2322_v36 = vld [vmem:[#allocation6 + $0x388] sm:$0xff] }
 0x483   :  { %2177 = vmatpush.msra.mxu0 %v1762_v56  ;;  %2197 = vmatpush.msra.mxu1 %v1826_v37  ;;  %v2321_v27 = vld [vmem:[#allocation6 + $0x380] sm:$0xff]  ;;  %v2254_v49 = vld [vmem:[#allocation6 + $0x168] sm:$0xff] }
 0x484   :  { %2475 = vmatpush.msra.mxu2 %v2269_v38  ;;  %2495 = vmatpush.msra.mxu3 %v2333_v57  ;;  %v2221_v33 = vld [vmem:[#allocation6 + $0x60] sm:$0xff]  ;;  %v2318_v35 = vld [vmem:[#allocation6 + $0x368] sm:$0xff] }
 0x485   :  { %2178 = vmatpush.msra.mxu0 %v1758_v58  ;;  %2198 = vmatpush.msra.mxu1 %v1822_v43  ;;  %v2285_v4 = vld [vmem:[#allocation6 + $0x260] sm:$0xff]  ;;  %v2250_v56 = vld [vmem:[#allocation6 + $0x148] sm:$0xff] }
 0x486   :  { %2476 = vmatpush.msra.mxu2 %v2265_v31  ;;  %2496 = vmatpush.msra.mxu3 %v2329_v30  ;;  %v2361_v20 = vld [vmem:[#allocation6 + $0x4c0] sm:$0xff]  ;;  %v2314_v37 = vld [vmem:[#allocation6 + $0x348] sm:$0xff] }
 0x487   :  { %2179 = vmatpush.msra.mxu0 %v1754_v60  ;;  %2199 = vmatpush.msra.mxu1 %v1818_v55  ;;  %v2217_v63 = vld [vmem:[#allocation6 + $0x40] sm:$0xff]  ;;  %v2246_v57 = vld [vmem:[#allocation6 + $0x128] sm:$0xff] }
 0x488   :  { %2477 = vmatpush.msra.mxu2 %v2261_v19  ;;  %2497 = vmatpush.msra.mxu3 %v2325_v48  ;;  %v2281_v17 = vld [vmem:[#allocation6 + $0x240] sm:$0xff]  ;;  %v2310_v58 = vld [vmem:[#allocation6 + $0x328] sm:$0xff] }
 0x489   :  { %2180 = vmatpush.msra.mxu0 %v1750_v9  ;;  %2200 = vmatpush.msra.mxu1 %v1814_v10  ;;  %v2213_v1 = vld [vmem:[#allocation6 + $0x20] sm:$0xff]  ;;  %v2242_v43 = vld [vmem:[#allocation6 + $0x108] sm:$0xff] }
 0x48a   :  { %2181 = vmatmul.f32.vlgmr.msra.gmra.mxu0 %v4359_v51  ;;  %2201 = vmatmul.f32.vlgmr.msra.gmra.mxu1 %v4361_v8  ;;  %v2241_v51 = vld [vmem:[#allocation6 + $0x100] sm:$0xff]  ;;  %v2306_v31 = vld [vmem:[#allocation6 + $0x308] sm:$0xff] }
 0x48b   :  { %2478 = vmatpush.msra.mxu2 %v2257_v14  ;;  %2498 = vmatpush.msra.mxu3 %v2321_v27  ;;  %v2381_v8 = vld [vmem:[#allocation6 + $0x560] sm:$0xff]  ;;  %v2238_v30 = vld [vmem:[#allocation6 + $0xe8] sm:$0xff] }
 0x48c   :  { %2515 = vmatpush.msrb.mxu0 %v2397_v6  ;;  %v2277_v0 = vld [vmem:[#allocation6 + $0x220] sm:$0xff]  ;;  %v2302_v55 = vld [vmem:[#allocation6 + $0x2e8] sm:$0xff] }
 0x48d   :  { %2479 = vmatpush.msra.mxu2 %v2253_v53  ;;  %2499 = vmatpush.msra.mxu3 %v2317_v28  ;;  %v2209_v23 = vld [vmem:[#allocation6] sm:$0xff]  ;;  %v2398_v48 = vld [vmem:[#allocation6 + $0x5e8] sm:$0xff] }
 0x48e   :  { %2516 = vmatpush.msrb.mxu0 %v2393_v5  ;;  %v2273_v45 = vld [vmem:[#allocation6 + $0x200] sm:$0xff]  ;;  %v2394_v10 = vld [vmem:[#allocation6 + $0x5c8] sm:$0xff] }
 0x48f   :  { %2480 = vmatpush.msra.mxu2 %v2249_v3  ;;  %2500 = vmatpush.msra.mxu3 %v2313_v61  ;;  %v2357_v18 = vld [vmem:[#allocation6 + $0x4a0] sm:$0xff]  ;;  %v2234_v14 = vld [vmem:[#allocation6 + $0xc8] sm:$0xff] }
 0x490   :  { %2517 = vmatpush.msrb.mxu0 %v2389_v16  ;;  %v2353_v39 = vld [vmem:[#allocation6 + $0x480] sm:$0xff]  ;;  %v2298_v27 = vld [vmem:[#allocation6 + $0x2c8] sm:$0xff] }
 0x491   :  { %2481 = vmatpush.msra.mxu2 %v2245_v7  ;;  %2501 = vmatpush.msra.mxu3 %v2309_v25  ;;  %v2349_v62 = vld [vmem:[#allocation6 + $0x460] sm:$0xff]  ;;  %v2390_v53 = vld [vmem:[#allocation6 + $0x5a8] sm:$0xff] }
 0x492   :  { %2518 = vmatpush.msrb.mxu0 %v2385_v12  ;;  %v2345_v11 = vld [vmem:[#allocation6 + $0x440] sm:$0xff]  ;;  %v2230_v28 = vld [vmem:[#allocation6 + $0xa8] sm:$0xff] }
 0x493   :  { %2482 = vmatpush.msra.mxu2 %v2241_v51  ;;  %2502 = vmatpush.msra.mxu3 %v2305_v47  ;;  %v2341_v38 = vld [vmem:[#allocation6 + $0x420] sm:$0xff]  ;;  %v2294_v5 = vld [vmem:[#allocation6 + $0x2a8] sm:$0xff] }
 0x494   :  { %2519 = vmatpush.msrb.mxu0 %v2381_v8  ;;  %v2337_v60 = vld [vmem:[#allocation6 + $0x400] sm:$0xff]  ;;  %v2386_v61 = vld [vmem:[#allocation6 + $0x588] sm:$0xff] }
 0x495   :  { %2483 = vmatpush.msra.mxu2 %v2237_v24  ;;  %2503 = vmatpush.msra.mxu3 %v2301_v54  ;;  %v2461_v19 = vld [vmem:[#allocation6 + $0x7e0] sm:$0xff]  ;;  %v2226_v16 = vld [vmem:[#allocation6 + $0x88] sm:$0xff] }
 0x496   :  { %2520 = vmatpush.msrb.mxu0 %v2377_v42  ;;  %v2457_v9 = vld [vmem:[#allocation6 + $0x7c0] sm:$0xff]  ;;  %2535 = vmatpush.msrb.mxu1 %v2461_v19  ;;  %v2290_v7 = vld [vmem:[#allocation6 + $0x288] sm:$0xff] }
 0x497   :  { %2484 = vmatpush.msra.mxu2 %v2233_v29  ;;  %2504 = vmatpush.msra.mxu3 %v2297_v59  ;;  %v2453_v6 = vld [vmem:[#allocation6 + $0x7a0] sm:$0xff]  ;;  %v2382_v12 = vld [vmem:[#allocation6 + $0x568] sm:$0xff] }
 0x498   :  { %2521 = vmatpush.msrb.mxu0 %v2373_v26  ;;  %2536 = vmatpush.msrb.mxu1 %v2457_v9  ;;  %v2449_v3 = vld [vmem:[#allocation6 + $0x780] sm:$0xff]  ;;  %v2222_v51 = vld [vmem:[#allocation6 + $0x68] sm:$0xff] }
 0x499   :  { %2485 = vmatpush.msra.mxu2 %v2229_v32  ;;  %2505 = vmatpush.msra.mxu3 %v2293_v22  ;;  %v2445_v25 = vld [vmem:[#allocation6 + $0x760] sm:$0xff]  ;;  %v2286_v47 = vld [vmem:[#allocation6 + $0x268] sm:$0xff] }
 0x49a   :  { %2522 = vmatpush.msrb.mxu0 %v2369_v44  ;;  %2537 = vmatpush.msrb.mxu1 %v2453_v6  ;;  %v4380_v8 = vld [vmem:[%s4625_s8] sm:$0xf]  ;;  %v2378_v54 = vld [vmem:[#allocation6 + $0x548] sm:$0xff] }
 0x49b   :  { %2486 = vmatpush.msra.mxu2 %v2225_v13  ;;  %2506 = vmatpush.msra.mxu3 %v2289_v40  ;;  %v2441_v24 = vld [vmem:[#allocation6 + $0x740] sm:$0xff]  ;;  %v2218_v42 = vld [vmem:[#allocation6 + $0x48] sm:$0xff]  ;;  %v1877_v32 = vperm.slane %v4380_v8, 0 }
 0x49c   :  { %2523 = vmatpush.msrb.mxu0 %v2365_v34  ;;  %2538 = vmatpush.msrb.mxu1 %v2449_v3  ;;  %v2282_v29 = vld [vmem:[#allocation6 + $0x248] sm:$0xff]  ;;  %v2437_v59 = vld [vmem:[#allocation6 + $0x720] sm:$0xff] }
 0x49d   :  { %2487 = vmatpush.msra.mxu2 %v2221_v33  ;;  %2507 = vmatpush.msra.mxu3 %v2285_v4  ;;  %v2374_v26 = vld [vmem:[#allocation6 + $0x528] sm:$0xff]  ;;  %v2433_v13 = vld [vmem:[#allocation6 + $0x700] sm:$0xff] }
 0x49e   :  { %2524 = vmatpush.msrb.mxu0 %v2361_v20  ;;  %2539 = vmatpush.msrb.mxu1 %v2445_v25  ;;  %v2214_v22 = vld [vmem:[#allocation6 + $0x28] sm:$0xff]  ;;  %v2429_v20 = vld [vmem:[#allocation6 + $0x6e0] sm:$0xff]  ;;  %v2247_v25 = vld [vmem:[#allocation6 + $0x130] sm:$0xff] }
 0x49f   :  { %2488 = vmatpush.msra.mxu2 %v2217_v63  ;;  %2508 = vmatpush.msra.mxu3 %v2281_v17  ;;  %v2278_v44 = vld [vmem:[#allocation6 + $0x228] sm:$0xff] }
 0x4a0   :  { %2525 = vmatpush.msrb.mxu0 %v2357_v18  ;;  %2540 = vmatpush.msrb.mxu1 %v2441_v24  ;;  %v2370_v40 = vld [vmem:[#allocation6 + $0x508] sm:$0xff]  ;;  %v2323_v24 = vld [vmem:[#allocation6 + $0x390] sm:$0xff] }
 0x4a1   :  { %2489 = vmatpush.msra.mxu2 %v2213_v1  ;;  %2509 = vmatpush.msra.mxu3 %v2277_v0  ;;  %v2210_v34 = vld [vmem:[#allocation6 + $0x8] sm:$0xff]  ;;  %v2425_v0 = vld [vmem:[#allocation6 + $0x6c0] sm:$0xff] }
 0x4a2   :  { %2526 = vmatpush.msrb.mxu0 %v2353_v39  ;;  %v2274_v33 = vld [vmem:[#allocation6 + $0x208] sm:$0xff]  ;;  %2541 = vmatpush.msrb.mxu1 %v2437_v59 }
 0x4a3   :  { %2490 = vmatpush.msra.mxu2 %v2209_v23  ;;  %2510 = vmatpush.msra.mxu3 %v2273_v45  ;;  %v2366_v63 = vld [vmem:[#allocation6 + $0x4e8] sm:$0xff] }
 0x4a4   :  { %2527 = vmatpush.msrb.mxu0 %v2349_v62  ;;  %2542 = vmatpush.msrb.mxu1 %v2433_v13  ;;  %v2362_v23 = vld [vmem:[#allocation6 + $0x4c8] sm:$0xff]  ;;  %v2413_v62 = vld [vmem:[#allocation6 + $0x660] sm:$0xff]  ;;  %v2311_v13 = vld [vmem:[#allocation6 + $0x330] sm:$0xff] }
 0x4a5   :  { %2555 = vmatpush.msrb.mxu2 %v2270_v50  ;;  %2575 = vmatpush.msrb.mxu3 %v2334_v15  ;;  %v2358_v18 = vld [vmem:[#allocation6 + $0x4a8] sm:$0xff] }
 0x4a6   :  { %2528 = vmatpush.msrb.mxu0 %v2345_v11  ;;  %2543 = vmatpush.msrb.mxu1 %v2429_v20  ;;  %v2350_v11 = vld [vmem:[#allocation6 + $0x468] sm:$0xff] }
 0x4a7   :  { %2556 = vmatpush.msrb.mxu2 %v2266_v2  ;;  %2576 = vmatpush.msrb.mxu3 %v2330_v52  ;;  %v2421_v52 = vld [vmem:[#allocation6 + $0x6a0] sm:$0xff]  ;;  %v2462_v6 = vld [vmem:[#allocation6 + $0x7e8] sm:$0xff] }
 0x4a8   :  { %2529 = vmatpush.msrb.mxu0 %v2341_v38  ;;  %2544 = vmatpush.msrb.mxu1 %v2425_v0  ;;  %v2267_v38 = vld [vmem:[#allocation6 + $0x1d0] sm:$0xff]  ;;  %v2458_v3 = vld [vmem:[#allocation6 + $0x7c8] sm:$0xff] }
 0x4a9   :  { %2557 = vmatpush.msrb.mxu2 %v2262_v46  ;;  %2577 = vmatpush.msrb.mxu3 %v2326_v41  ;;  %v1878_v46 = vperm.slane %v4380_v8, 1  ;;  %v2442_v59 = vld [vmem:[#allocation6 + $0x748] sm:$0xff] }
 0x4aa   :  { %2530 = vmatpush.msrb.mxu0 %v2337_v60  ;;  %2545 = vmatpush.msrb.mxu1 %v2421_v52  ;;  %v2263_v60 = vld [vmem:[#allocation6 + $0x1b0] sm:$0xff]  ;;  %v2430_v20 = vld [vmem:[#allocation6 + $0x6e8] sm:$0xff] }
 0x4ab   :  { %2558 = vmatpush.msrb.mxu2 %v2258_v21  ;;  %2578 = vmatpush.msrb.mxu3 %v2322_v36  ;;  %v2417_v21 = vld [vmem:[#allocation6 + $0x680] sm:$0xff]  ;;  %v2354_v36 = vld [vmem:[#allocation6 + $0x488] sm:$0xff]  ;;  %v2215_v52 = vld [vmem:[#allocation6 + $0x30] sm:$0xff] }
 0x4ac   :  { %2595 = vmatpush.msra.mxu0 %v2398_v48  ;;  %2546 = vmatpush.msrb.mxu1 %v2417_v21  ;;  %v2401_v48 = vld [vmem:[#allocation6 + $0x600] sm:$0xff] }
 0x4ad   :  { %2559 = vmatpush.msrb.mxu2 %v2254_v49  ;;  %2579 = vmatpush.msrb.mxu3 %v2318_v35  ;;  %v2271_v35 = vld [vmem:[#allocation6 + $0x1f0] sm:$0xff] }
 0x4ae   :  { %2596 = vmatpush.msra.mxu0 %v2394_v10  ;;  %2547 = vmatpush.msrb.mxu1 %v2413_v62  ;;  %v2259_v10 = vld [vmem:[#allocation6 + $0x190] sm:$0xff] }
 0x4af   :  { %2560 = vmatpush.msrb.mxu2 %v2250_v56  ;;  %2580 = vmatpush.msrb.mxu3 %v2314_v37 }
 0x4b0   :  { %2597 = vmatpush.msra.mxu0 %v2390_v53  ;;  %v2255_v53 = vld [vmem:[#allocation6 + $0x170] sm:$0xff] }
 0x4b1   :  { %2561 = vmatpush.msrb.mxu2 %v2246_v57  ;;  %2581 = vmatpush.msrb.mxu3 %v2310_v58  ;;  %v2409_v57 = vld [vmem:[#allocation6 + $0x640] sm:$0xff]  ;;  %v2346_v58 = vld [vmem:[#allocation6 + $0x448] sm:$0xff] }
 0x4b2   :  { %2598 = vmatpush.msra.mxu0 %v2386_v61  ;;  %2548 = vmatpush.msrb.mxu1 %v2409_v57  ;;  %v2251_v61 = vld [vmem:[#allocation6 + $0x150] sm:$0xff]  ;;  %v2268_v57 = vld [vmem:[#allocation6 + $0x1d8] sm:$0xff] }
 0x4b3   :  { %2562 = vmatpush.msrb.mxu2 %v2242_v43  ;;  %2582 = vmatpush.msrb.mxu3 %v2306_v31  ;;  %v2405_v31 = vld [vmem:[#allocation6 + $0x620] sm:$0xff] }
 0x4b4   :  { %2599 = vmatpush.msra.mxu0 %v2382_v12  ;;  %2549 = vmatpush.msrb.mxu1 %v2405_v31  ;;  %v2327_v12 = vld [vmem:[#allocation6 + $0x3b0] sm:$0xff] }
 0x4b5   :  { %2563 = vmatpush.msrb.mxu2 %v2238_v30  ;;  %2583 = vmatpush.msrb.mxu3 %v2302_v55  ;;  %v2342_v55 = vld [vmem:[#allocation6 + $0x428] sm:$0xff]  ;;  %v2283_v31 = vld [vmem:[#allocation6 + $0x250] sm:$0xff] }
 0x4b6   :  { %2600 = vmatpush.msra.mxu0 %v2378_v54  ;;  %2550 = vmatpush.msrb.mxu1 %v2401_v48  ;;  %v2446_v54 = vld [vmem:[#allocation6 + $0x768] sm:$0xff]  ;;  %v2260_v48 = vld [vmem:[#allocation6 + $0x198] sm:$0xff] }
 0x4b7   :  { %2564 = vmatpush.msrb.mxu2 %v2234_v14  ;;  %2584 = vmatpush.msrb.mxu3 %v2298_v27  ;;  %v2338_v14 = vld [vmem:[#allocation6 + $0x408] sm:$0xff] }
 0x4b8   :  { %2601 = vmatpush.msra.mxu0 %v2374_v26  ;;  %2615 = vmatpush.msra.mxu1 %v2462_v6  ;;  %v2235_v26 = vld [vmem:[#allocation6 + $0xd0] sm:$0xff] }
 0x4b9   :  { %2565 = vmatpush.msrb.mxu2 %v2230_v28  ;;  %2585 = vmatpush.msrb.mxu3 %v2294_v5  ;;  %v2335_v5 = vld [vmem:[#allocation6 + $0x3f0] sm:$0xff] }
 0x4ba   :  { %2602 = vmatpush.msra.mxu0 %v2370_v40  ;;  %2616 = vmatpush.msra.mxu1 %v2458_v3  ;;  %v2434_v40 = vld [vmem:[#allocation6 + $0x708] sm:$0xff]  ;;  %v2387_v6 = vld [vmem:[#allocation6 + $0x590] sm:$0xff] }
 0x4bb   :  { %2566 = vmatpush.msrb.mxu2 %v2226_v16  ;;  %2586 = vmatpush.msrb.mxu3 %v2290_v7  ;;  %v2331_v16 = vld [vmem:[#allocation6 + $0x3d0] sm:$0xff]  ;;  %v2454_v7 = vld [vmem:[#allocation6 + $0x7a8] sm:$0xff] }
 0x4bc   :  { %2603 = vmatpush.msra.mxu0 %v2366_v63  ;;  %2617 = vmatpush.msra.mxu1 %v2454_v7  ;;  %v2223_v63 = vld [vmem:[#allocation6 + $0x70] sm:$0xff]  ;;  %v2402_v7 = vld [vmem:[#allocation6 + $0x608] sm:$0xff] }
 0x4bd   :  { %2567 = vmatpush.msrb.mxu2 %v2222_v51  ;;  %2587 = vmatpush.msrb.mxu3 %v2286_v47  ;;  %v2450_v51 = vld [vmem:[#allocation6 + $0x788] sm:$0xff]  ;;  %v2243_v47 = vld [vmem:[#allocation6 + $0x110] sm:$0xff] }
 0x4be   :  { %2604 = vmatpush.msra.mxu0 %v2362_v23  ;;  %2618 = vmatpush.msra.mxu1 %v2450_v51  ;;  %v2219_v23 = vld [vmem:[#allocation6 + $0x50] sm:$0xff]  ;;  %v2244_v51 = vld [vmem:[#allocation6 + $0x118] sm:$0xff] }
 0x4bf   :  { %2568 = vmatpush.msrb.mxu2 %v2218_v42  ;;  %2588 = vmatpush.msrb.mxu3 %v2282_v29  ;;  %v2239_v42 = vld [vmem:[#allocation6 + $0xf0] sm:$0xff] }
 0x4c0   :  { %v1902_v4 = vpop.f32.mrf.mxu2  ;;  %v1922_v1 = vpop.f32.mrf.mxu3  ;;  %2605 = vmatpush.msra.mxu0 %v2358_v18  ;;  %v2319_v29 = vld [vmem:[#allocation6 + $0x370] sm:$0xff]  ;;  %2619 = vmatpush.msra.mxu1 %v2446_v54  ;;  %v2240_v54 = vld [vmem:[#allocation6 + $0xf8] sm:$0xff] }
 0x4c1   :  { %2569 = vmatpush.msrb.mxu2 %v2214_v22  ;;  %2589 = vmatpush.msrb.mxu3 %v2278_v44  ;;  %v1903_v17 = vadd.f32 %v1902_v4, %v1877_v32  ;;  %v2315_v32 = vld [vmem:[#allocation6 + $0x350] sm:$0xff]  ;;  %v2438_v22 = vld [vmem:[#allocation6 + $0x728] sm:$0xff] }
 0x4c2   :  { %v1942_v50 = vpop.f32.mrf.mxu0  ;;  %v1962_v2 = vpop.f32.mrf.mxu1  ;;  %2606 = vmatpush.msra.mxu0 %v2354_v36  ;;  %v2231_v44 = vld [vmem:[#allocation6 + $0xb0] sm:$0xff]  ;;  %2620 = vmatpush.msra.mxu1 %v2442_v59  ;;  %v2236_v59 = vld [vmem:[#allocation6 + $0xd8] sm:$0xff] }
 0x4c3   :  { %2570 = vmatpush.msrb.mxu2 %v2210_v34  ;;  %2590 = vmatpush.msrb.mxu3 %v2274_v33  ;;  %v1923_v45 = vadd.f32 %v1922_v1, %v1903_v17  ;;  %v2227_v34 = vld [vmem:[#allocation6 + $0x90] sm:$0xff]  ;;  %v1879_v33 = vperm.slane %v4380_v8, 2  ;;  %v2426_v1 = vld [vmem:[#allocation6 + $0x6c8] sm:$0xff] }
 0x4c4   :  { %2607 = vmatpush.msra.mxu0 %v2350_v11  ;;  %2621 = vmatpush.msra.mxu1 %v2438_v22  ;;  %v2307_v4 = vld [vmem:[#allocation6 + $0x310] sm:$0xff]  ;;  %v2272_v11 = vld [vmem:[#allocation6 + $0x1f8] sm:$0xff] }
 0x4c5   :  { %v1943_v15 = vadd.f32 %v1942_v50, %v1923_v45  ;;  %v2303_v17 = vld [vmem:[#allocation6 + $0x2f0] sm:$0xff]  ;;  %v2232_v22 = vld [vmem:[#allocation6 + $0xb8] sm:$0xff] }
 0x4c6   :  { %2608 = vmatpush.msra.mxu0 %v2346_v58  ;;  %2622 = vmatpush.msra.mxu1 %v2434_v40  ;;  %v2299_v50 = vld [vmem:[#allocation6 + $0x2d0] sm:$0xff]  ;;  %v2228_v40 = vld [vmem:[#allocation6 + $0x98] sm:$0xff] }
 0x4c7   :  { %v1963_v41 = vadd.f32 %v1962_v2, %v1943_v15  ;;  %v2422_v15 = vld [vmem:[#allocation6 + $0x6a8] sm:$0xff]  ;;  %v2211_v36 = vld [vmem:[#allocation6 + $0x10] sm:$0xff] }
 0x4c8   :  { %2609 = vmatpush.msra.mxu0 %v2342_v55  ;;  %2623 = vmatpush.msra.mxu1 %v2430_v20  ;;  %v2395_v55 = vld [vmem:[#allocation6 + $0x5d0] sm:$0xff]  ;;  %v1880_v20 = vperm.slane %v4380_v8, 3  ;;  %v2212_v8 = vld [vmem:[#allocation6 + $0x18] sm:$0xff] }
 0x4c9   :  { %v4384_v39 = vmax.f32 %v1963_v41, 0.0  ;;  %v1982_v49 = vpop.f32.mrf.mxu2  ;;  %v2002_v37 = vpop.f32.mrf.mxu3  ;;  %v2418_v41 = vld [vmem:[#allocation6 + $0x688] sm:$0xff]  ;;  %v2383_v3 = vld [vmem:[#allocation6 + $0x570] sm:$0xff] }
 0x4ca   :  { %v1983_v56 = vadd.f32 %v1982_v49, %v1878_v46  ;;  %2610 = vmatpush.msra.mxu0 %v2338_v14  ;;  %2624 = vmatpush.msra.mxu1 %v2426_v1  ;;  %v2295_v46 = vld [vmem:[#allocation6 + $0x2b0] sm:$0xff]  ;;  %v2220_v1 = vld [vmem:[#allocation6 + $0x58] sm:$0xff] }
 0x4cb   :  { %2491 = vmatmul.f32.vlgmr.msra.gmra.mxu2 %v4384_v39  ;;  %v2275_v14 = vld [vmem:[#allocation6 + $0x210] sm:$0xff] }
 0x4cc   :  { %v2003_v43 = vadd.f32 %v2002_v37, %v1983_v56  ;;  %2635 = vmatpush.msra.mxu2 %v2271_v35  ;;  %v2022_v30 = vpop.f32.mrf.mxu0  ;;  %v2042_v9 = vpop.f32.mrf.mxu1  ;;  %2625 = vmatpush.msra.mxu1 %v2422_v15  ;;  %v2291_v35 = vld [vmem:[#allocation6 + $0x290] sm:$0xff]  ;;  %v2414_v56 = vld [vmem:[#allocation6 + $0x668] sm:$0xff] }
 0x4ce   :  { %v2023_v19 = vadd.f32 %v2022_v30, %v2003_v43  ;;  %2636 = vmatpush.msra.mxu2 %v2267_v38  ;;  %2626 = vmatpush.msra.mxu1 %v2418_v41  ;;  %v2287_v38 = vld [vmem:[#allocation6 + $0x270] sm:$0xff]  ;;  %v2264_v30 = vld [vmem:[#allocation6 + $0x1b8] sm:$0xff] }
 0x4cf   :  { %v2399_v43 = vld [vmem:[#allocation6 + $0x5f0] sm:$0xff] }
 0x4d0   :  { %v2043_v27 = vadd.f32 %v2042_v9, %v2023_v19  ;;  %2637 = vmatpush.msra.mxu2 %v2263_v60  ;;  %2627 = vmatpush.msra.mxu1 %v2414_v56  ;;  %v2410_v60 = vld [vmem:[#allocation6 + $0x648] sm:$0xff]  ;;  %v2279_v19 = vld [vmem:[#allocation6 + $0x230] sm:$0xff] }
 0x4d1   :  { %v2406_v9 = vld [vmem:[#allocation6 + $0x628] sm:$0xff]  ;;  %v2343_v41 = vld [vmem:[#allocation6 + $0x430] sm:$0xff] }
 0x4d2   :  { %v4387_v28 = vmax.f32 %v2043_v27, 0.0  ;;  %2638 = vmatpush.msra.mxu2 %v2259_v10  ;;  %v2391_v10 = vld [vmem:[#allocation6 + $0x5b0] sm:$0xff]  ;;  %2628 = vmatpush.msra.mxu1 %v2410_v60  ;;  %v2256_v27 = vld [vmem:[#allocation6 + $0x178] sm:$0xff] }
 0x4d3   :  { %2571 = vmatmul.f32.vlgmr.msrb.gmra.mxu2 %v4384_v39  ;;  %v2459_v60 = vld [vmem:[#allocation6 + $0x7d0] sm:$0xff] }
 0x4d4   :  { %2511 = vmatmul.f32.vlgmr.msra.gmra.mxu3 %v4387_v28  ;;  %2639 = vmatpush.msra.mxu2 %v2255_v53  ;;  %v2336_v53 = vld [vmem:[#allocation6 + $0x3f8] sm:$0xff] }
 0x4d5   :  { %2655 = vmatpush.msra.mxu3 %v2335_v5  ;;  %2629 = vmatpush.msra.mxu1 %v2406_v9  ;;  %v2252_v5 = vld [vmem:[#allocation6 + $0x158] sm:$0xff]  ;;  %v2451_v9 = vld [vmem:[#allocation6 + $0x790] sm:$0xff] }
 0x4d6   :  { %2640 = vmatpush.msra.mxu2 %v2251_v61  ;;  %v2332_v61 = vld [vmem:[#allocation6 + $0x3d8] sm:$0xff] }
 0x4d7   :  { %2656 = vmatpush.msra.mxu3 %v2331_v16  ;;  %v2248_v16 = vld [vmem:[#allocation6 + $0x138] sm:$0xff]  ;;  %2630 = vmatpush.msra.mxu1 %v2402_v7  ;;  %v2431_v7 = vld [vmem:[#allocation6 + $0x6f0] sm:$0xff] }
 0x4d8   :  { %2641 = vmatpush.msra.mxu2 %v2247_v25  ;;  %v2379_v25 = vld [vmem:[#allocation6 + $0x550] sm:$0xff] }
 0x4d9   :  { %2657 = vmatpush.msra.mxu3 %v2327_v12  ;;  %v2328_v12 = vld [vmem:[#allocation6 + $0x3b8] sm:$0xff] }
 0x4da   :  { %2642 = vmatpush.msra.mxu2 %v2243_v47  ;;  %v2375_v47 = vld [vmem:[#allocation6 + $0x530] sm:$0xff] }
 0x4db   :  { %2658 = vmatpush.msra.mxu3 %v2323_v24  ;;  %v2324_v24 = vld [vmem:[#allocation6 + $0x398] sm:$0xff] }
 0x4dc   :  { %2591 = vmatmul.f32.vlgmr.msrb.gmra.mxu3 %v4387_v28  ;;  %2643 = vmatpush.msra.mxu2 %v2239_v42  ;;  %v2371_v42 = vld [vmem:[#allocation6 + $0x510] sm:$0xff] }
 0x4dd   :  { %2659 = vmatpush.msra.mxu3 %v2319_v29  ;;  %v2320_v29 = vld [vmem:[#allocation6 + $0x378] sm:$0xff] }
 0x4de   :  { %2644 = vmatpush.msra.mxu2 %v2235_v26  ;;  %v2367_v26 = vld [vmem:[#allocation6 + $0x4f0] sm:$0xff] }
 0x4df   :  { %2660 = vmatpush.msra.mxu3 %v2315_v32  ;;  %v2316_v32 = vld [vmem:[#allocation6 + $0x358] sm:$0xff] }
 0x4e0   :  { %2645 = vmatpush.msra.mxu2 %v2231_v44  ;;  %v2363_v44 = vld [vmem:[#allocation6 + $0x4d0] sm:$0xff] }
 0x4e1   :  { %2661 = vmatpush.msra.mxu3 %v2311_v13  ;;  %v2312_v13 = vld [vmem:[#allocation6 + $0x338] sm:$0xff] }
 0x4e2   :  { %2646 = vmatpush.msra.mxu2 %v2227_v34  ;;  %v2359_v34 = vld [vmem:[#allocation6 + $0x4b0] sm:$0xff] }
 0x4e3   :  { %v2062_v0 = vpop.f32.mrf.mxu2  ;;  %2662 = vmatpush.msra.mxu3 %v2307_v4  ;;  %v2082_v2 = vpop.f32.mrf.mxu3  ;;  %v2224_v4 = vld [vmem:[#allocation6 + $0x78] sm:$0xff] }
 0x4e4   :  { %v2063_v45 = vadd.f32 %v2062_v0, %v1879_v33  ;;  %2647 = vmatpush.msra.mxu2 %v2223_v63  ;;  %v2308_v33 = vld [vmem:[#allocation6 + $0x318] sm:$0xff]  ;;  %v2355_v63 = vld [vmem:[#allocation6 + $0x490] sm:$0xff] }
 0x4e5   :  { %2663 = vmatpush.msra.mxu3 %v2303_v17  ;;  %v2304_v17 = vld [vmem:[#allocation6 + $0x2f8] sm:$0xff]  ;;  %v2351_v0 = vld [vmem:[#allocation6 + $0x470] sm:$0xff] }
 0x4e6   :  { %v2083_v18 = vadd.f32 %v2082_v2, %v2063_v45  ;;  %2648 = vmatpush.msra.mxu2 %v2219_v23  ;;  %v2102_v21 = vpop.f32.mrf.mxu0  ;;  %v2122_v62 = vpop.f32.mrf.mxu1  ;;  %v2300_v23 = vld [vmem:[#allocation6 + $0x2d8] sm:$0xff]  ;;  %v2347_v2 = vld [vmem:[#allocation6 + $0x450] sm:$0xff] }
 0x4e7   :  { %2664 = vmatpush.msra.mxu3 %v2299_v50  ;;  %v2216_v50 = vld [vmem:[#allocation6 + $0x38] sm:$0xff] }
 0x4e8   :  { %v2103_v49 = vadd.f32 %v2102_v21, %v2083_v18  ;;  %2649 = vmatpush.msra.mxu2 %v2215_v52  ;;  %v2296_v52 = vld [vmem:[#allocation6 + $0x2b8] sm:$0xff] }
 0x4e9   :  { %2665 = vmatpush.msra.mxu3 %v2295_v46  ;;  %v2292_v21 = vld [vmem:[#allocation6 + $0x298] sm:$0xff] }
 0x4ea   :  { %v2123_v37 = vadd.f32 %v2122_v62, %v2103_v49  ;;  %2650 = vmatpush.msra.mxu2 %v2211_v36  ;;  %v2288_v62 = vld [vmem:[#allocation6 + $0x278] sm:$0xff] }
 0x4eb   :  { %2666 = vmatpush.msra.mxu3 %v2291_v35  ;;  %2651 = vmatmul.f32.vlgmr.msra.gmra.mxu2 %v4384_v39  ;;  %v2339_v35 = vld [vmem:[#allocation6 + $0x410] sm:$0xff] }
 0x4ec   :  { %v4394_v58 = vmax.f32 %v2123_v37, 0.0  ;;  %2715 = vmatpush.msrb.mxu2 %v2272_v11  ;;  %v2400_v37 = vld [vmem:[#allocation6 + $0x5f8] sm:$0xff] }
 0x4ed   :  { %2667 = vmatpush.msra.mxu3 %v2287_v38  ;;  %v2284_v38 = vld [vmem:[#allocation6 + $0x258] sm:$0xff] }
 0x4ee   :  { %2531 = vmatmul.f32.vlgmr.msrb.gmra.mxu0 %v4394_v58  ;;  %2716 = vmatpush.msrb.mxu2 %v2268_v57 }
 0x4ef   :  { %2675 = vmatpush.msrb.mxu0 %v2399_v43  ;;  %2668 = vmatpush.msra.mxu3 %v2283_v31  ;;  %v2463_v43 = vld [vmem:[#allocation6 + $0x7f0] sm:$0xff]  ;;  %v2396_v31 = vld [vmem:[#allocation6 + $0x5d8] sm:$0xff] }
 0x4f0   :  { %2717 = vmatpush.msrb.mxu2 %v2264_v30  ;;  %v2280_v30 = vld [vmem:[#allocation6 + $0x238] sm:$0xff] }
 0x4f1   :  { %2676 = vmatpush.msrb.mxu0 %v2395_v55  ;;  %2669 = vmatpush.msra.mxu3 %v2279_v19  ;;  %v2392_v55 = vld [vmem:[#allocation6 + $0x5b8] sm:$0xff]  ;;  %v2455_v19 = vld [vmem:[#allocation6 + $0x7b0] sm:$0xff] }
 0x4f2   :  { %2718 = vmatpush.msrb.mxu2 %v2260_v48  ;;  %v2388_v48 = vld [vmem:[#allocation6 + $0x598] sm:$0xff] }
 0x4f3   :  { %2677 = vmatpush.msrb.mxu0 %v2391_v10  ;;  %2670 = vmatpush.msra.mxu3 %v2275_v14  ;;  %v2384_v10 = vld [vmem:[#allocation6 + $0x578] sm:$0xff]  ;;  %v2447_v14 = vld [vmem:[#allocation6 + $0x770] sm:$0xff] }
 0x4f4   :  { %2671 = vmatmul.f32.vlgmr.msra.gmra.mxu3 %v4387_v28  ;;  %2719 = vmatpush.msrb.mxu2 %v2256_v27  ;;  %v2380_v27 = vld [vmem:[#allocation6 + $0x558] sm:$0xff] }
 0x4f5   :  { %2678 = vmatpush.msrb.mxu0 %v2387_v6  ;;  %2735 = vmatpush.msrb.mxu3 %v2336_v53  ;;  %v2443_v6 = vld [vmem:[#allocation6 + $0x750] sm:$0xff]  ;;  %v2376_v53 = vld [vmem:[#allocation6 + $0x538] sm:$0xff] }
 0x4f6   :  { %2611 = vmatmul.f32.vlgmr.msra.gmra.mxu0 %v4394_v58  ;;  %2720 = vmatpush.msrb.mxu2 %v2252_v5  ;;  %v2439_v5 = vld [vmem:[#allocation6 + $0x730] sm:$0xff] }
 0x4f7   :  { %2679 = vmatpush.msrb.mxu0 %v2383_v3  ;;  %2736 = vmatpush.msrb.mxu3 %v2332_v61  ;;  %v2372_v3 = vld [vmem:[#allocation6 + $0x518] sm:$0xff]  ;;  %v2435_v61 = vld [vmem:[#allocation6 + $0x710] sm:$0xff] }
 0x4f8   :  { %2721 = vmatpush.msrb.mxu2 %v2248_v16  ;;  %v2368_v16 = vld [vmem:[#allocation6 + $0x4f8] sm:$0xff] }
 0x4f9   :  { %2680 = vmatpush.msrb.mxu0 %v2379_v25  ;;  %2737 = vmatpush.msrb.mxu3 %v2328_v12  ;;  %v2364_v25 = vld [vmem:[#allocation6 + $0x4d8] sm:$0xff] }
 0x4fa   :  { %2722 = vmatpush.msrb.mxu2 %v2244_v51  ;;  %v2360_v12 = vld [vmem:[#allocation6 + $0x4b8] sm:$0xff]  ;;  %v2423_v51 = vld [vmem:[#allocation6 + $0x6b0] sm:$0xff] }
 0x4fb   :  { %2681 = vmatpush.msrb.mxu0 %v2375_v47  ;;  %2738 = vmatpush.msrb.mxu3 %v2324_v24  ;;  %v2356_v47 = vld [vmem:[#allocation6 + $0x498] sm:$0xff]  ;;  %v2419_v24 = vld [vmem:[#allocation6 + $0x690] sm:$0xff] }
 0x4fc   :  { %2723 = vmatpush.msrb.mxu2 %v2240_v54  ;;  %v2352_v54 = vld [vmem:[#allocation6 + $0x478] sm:$0xff] }
 0x4fd   :  { %2682 = vmatpush.msrb.mxu0 %v2371_v42  ;;  %2739 = vmatpush.msrb.mxu3 %v2320_v29  ;;  %v2415_v42 = vld [vmem:[#allocation6 + $0x670] sm:$0xff]  ;;  %v2348_v29 = vld [vmem:[#allocation6 + $0x458] sm:$0xff] }
 0x4fe   :  { %2724 = vmatpush.msrb.mxu2 %v2236_v59  ;;  %v2411_v59 = vld [vmem:[#allocation6 + $0x650] sm:$0xff] }
 0x4ff   :  { %2683 = vmatpush.msrb.mxu0 %v2367_v26  ;;  %2740 = vmatpush.msrb.mxu3 %v2316_v32  ;;  %v2344_v26 = vld [vmem:[#allocation6 + $0x438] sm:$0xff]  ;;  %v2407_v32 = vld [vmem:[#allocation6 + $0x630] sm:$0xff] }
 0x500   :  { %2725 = vmatpush.msrb.mxu2 %v2232_v22  ;;  %v2340_v22 = vld [vmem:[#allocation6 + $0x418] sm:$0xff] }
 0x501   :  { %2684 = vmatpush.msrb.mxu0 %v2363_v44  ;;  %2741 = vmatpush.msrb.mxu3 %v2312_v13  ;;  %v2403_v44 = vld [vmem:[#allocation6 + $0x610] sm:$0xff]  ;;  %v2464_v13 = vld [vmem:[#allocation6 + $0x7f8] sm:$0xff] }
 0x502   :  { %2726 = vmatpush.msrb.mxu2 %v2228_v40  ;;  %v2460_v40 = vld [vmem:[#allocation6 + $0x7d8] sm:$0xff] }
 0x503   :  { %2685 = vmatpush.msrb.mxu0 %v2359_v34  ;;  %2742 = vmatpush.msrb.mxu3 %v2308_v33  ;;  %v2456_v34 = vld [vmem:[#allocation6 + $0x7b8] sm:$0xff] }
 0x504   :  { %2727 = vmatpush.msrb.mxu2 %v2224_v4  ;;  %v2452_v33 = vld [vmem:[#allocation6 + $0x798] sm:$0xff] }
 0x505   :  { %v2142_v45 = vpop.f32.mrf.mxu2  ;;  %2686 = vmatpush.msrb.mxu0 %v2355_v63  ;;  %2743 = vmatpush.msrb.mxu3 %v2304_v17  ;;  %v2162_v18 = vpop.f32.mrf.mxu3  ;;  %v2448_v4 = vld [vmem:[#allocation6 + $0x778] sm:$0xff] }
 0x506   :  { %v2143_v15 = vadd.f32 %v2142_v45, %v1880_v20  ;;  %2728 = vmatpush.msrb.mxu2 %v2220_v1  ;;  %v2444_v20 = vld [vmem:[#allocation6 + $0x758] sm:$0xff] }
 0x507   :  { %2687 = vmatpush.msrb.mxu0 %v2351_v0  ;;  %2744 = vmatpush.msrb.mxu3 %v2300_v23  ;;  %v2182_v36 = vpop.f32.mrf.mxu0  ;;  %v2202_v11 = vpop.f32.mrf.mxu1  ;;  %v2440_v63 = vld [vmem:[#allocation6 + $0x738] sm:$0xff] }
 0x508   :  { %v2163_v46 = vadd.f32 %v2162_v18, %v2143_v15  ;;  %2729 = vmatpush.msrb.mxu2 %v2216_v50  ;;  %v2436_v17 = vld [vmem:[#allocation6 + $0x718] sm:$0xff]  ;;  %v2813_v18 = vld [vmem:[%s4628_s11 + $0x70] sm:$0xff] }
 0x509   :  { %2688 = vmatpush.msrb.mxu0 %v2347_v2  ;;  %2745 = vmatpush.msrb.mxu3 %v2296_v52  ;;  %v2432_v1 = vld [vmem:[#allocation6 + $0x6f8] sm:$0xff] }
 0x50a   :  { %v2183_v49 = vadd.f32 %v2182_v36, %v2163_v46  ;;  %2730 = vmatpush.msrb.mxu2 %v2212_v8  ;;  %v2424_v0 = vld [vmem:[#allocation6 + $0x6b8] sm:$0xff]  ;;  %v2812_v8 = vld [vmem:[%s4628_s11 + $0x68] sm:$0xff]  ;;  %v2811_v46 = vld [vmem:[%s4628_s11 + $0x60] sm:$0xff] }
 0x50b   :  { %2689 = vmatpush.msrb.mxu0 %v2343_v41  ;;  %2746 = vmatpush.msrb.mxu3 %v2292_v21  ;;  %v2420_v23 = vld [vmem:[#allocation6 + $0x698] sm:$0xff]  ;;  %v2809_v36 = vld [vmem:[%s4628_s11 + $0x50] sm:$0xff] }
 0x50c   :  { %v2203_v56 = vadd.f32 %v2202_v11, %v2183_v49  ;;  %2731 = vmatmul.f32.vlgmr.msrb.gmra.mxu2 %v4384_v39  ;;  %v2276_v39 = vld [vmem:[#allocation6 + $0x218] sm:$0xff]  ;;  %v2829_v49 = vld [vmem:[%s4628_s11 + $0xf0] sm:$0xff]  ;;  %v2827_v11 = vld [vmem:[%s4628_s11 + $0xe0] sm:$0xff] }
 0x50d   :  { %2690 = vmatpush.msrb.mxu0 %v2339_v35  ;;  %2747 = vmatpush.msrb.mxu3 %v2288_v62  ;;  %v2416_v45 = vld [vmem:[#allocation6 + $0x678] sm:$0xff]  ;;  %v2828_v35 = vld [vmem:[%s4628_s11 + $0xe8] sm:$0xff] }
 0x50e   :  { %v4401_v57 = vmax.f32 %v2203_v56, 0.0  ;;  %2691 = vmatmul.f32.vlgmr.msrb.gmra.mxu0 %v4394_v58  ;;  %v2412_v50 = vld [vmem:[#allocation6 + $0x658] sm:$0xff]  ;;  %v2808_v62 = vld [vmem:[%s4628_s11 + $0x48] sm:$0xff]  ;;  %v2807_v56 = vld [vmem:[%s4628_s11 + $0x40] sm:$0xff] }
 0x50f   :  { %2755 = vmatpush.msra.mxu0 %v2400_v37  ;;  %2748 = vmatpush.msrb.mxu3 %v2284_v38  ;;  %v2408_v15 = vld [vmem:[#allocation6 + $0x638] sm:$0xff] }
 0x510   :  { %2551 = vmatmul.f32.vlgmr.msrb.gmra.mxu1 %v4401_v57  ;;  %v2404_v2 = vld [vmem:[#allocation6 + $0x618] sm:$0xff] }
 0x511   :  { %2695 = vmatpush.msrb.mxu1 %v2463_v43  ;;  %2756 = vmatpush.msra.mxu0 %v2396_v31  ;;  %v2814_v52 = vld [vmem:[%s4628_s11 + $0x78] sm:$0xff]  ;;  %v2805_v43 = vld [vmem:[%s4628_s11 + $0x30] sm:$0xff]  ;;  %v2824_v31 = vld [vmem:[%s4628_s11 + $0xc8] sm:$0xff] }
 0x512   :  { %2749 = vmatpush.msrb.mxu3 %v2280_v30  ;;  %2867 = vmatpush.msra.mxu2 %v2814_v52  ;;  %v2830_v41 = vld [vmem:[%s4628_s11 + $0xf8] sm:$0xff]  ;;  %v2804_v30 = vld [vmem:[%s4628_s11 + $0x28] sm:$0xff] }
 0x513   :  { %2696 = vmatpush.msrb.mxu1 %v2459_v60  ;;  %2757 = vmatpush.msra.mxu0 %v2392_v55  ;;  %v2810_v21 = vld [vmem:[%s4628_s11 + $0x58] sm:$0xff]  ;;  %v2823_v60 = vld [vmem:[%s4628_s11 + $0xc0] sm:$0xff] }
 0x514   :  { %2750 = vmatpush.msrb.mxu3 %v2276_v39  ;;  %2868 = vmatpush.msra.mxu2 %v2813_v18  ;;  %v2826_v37 = vld [vmem:[%s4628_s11 + $0xd8] sm:$0xff]  ;;  %v2803_v55 = vld [vmem:[%s4628_s11 + $0x20] sm:$0xff] }
 0x515   :  { %2697 = vmatpush.msrb.mxu1 %v2455_v19  ;;  %2758 = vmatpush.msra.mxu0 %v2388_v48  ;;  %v2806_v38 = vld [vmem:[%s4628_s11 + $0x38] sm:$0xff]  ;;  %v2801_v48 = vld [vmem:[%s4628_s11 + $0x10] sm:$0xff] }
 0x516   :  { %2751 = vmatmul.f32.vlgmr.msrb.gmra.mxu3 %v4387_v28  ;;  %v2427_v28 = vld [vmem:[#allocation6 + $0x6d0] sm:$0xff]  ;;  %2869 = vmatpush.msra.mxu2 %v2812_v8  ;;  %v2822_v39 = vld [vmem:[%s4628_s11 + $0xb8] sm:$0xff] }
 0x517   :  { %2698 = vmatpush.msrb.mxu1 %v2451_v9  ;;  %2759 = vmatpush.msra.mxu0 %v2384_v10  ;;  %v2802_v19 = vld [vmem:[%s4628_s11 + $0x18] sm:$0xff]  ;;  %v2821_v9 = vld [vmem:[%s4628_s11 + $0xb0] sm:$0xff]  ;;  %v2800_v10 = vld [vmem:[%s4628_s11 + $0x8] sm:$0xff] }
 0x518   :  { %2631 = vmatmul.f32.vlgmr.msra.gmra.mxu1 %v4401_v57  ;;  %2887 = vmatpush.msra.mxu3 %v2830_v41  ;;  %v2862_v18 = vld [vmem:[%s4628_s11 + $0x1f8] sm:$0xff]  ;;  %v2861_v8 = vld [vmem:[%s4628_s11 + $0x1f0] sm:$0xff]  ;;  %v2860_v41 = vld [vmem:[%s4628_s11 + $0x1e8] sm:$0xff] }
 0x519   :  { %2699 = vmatpush.msrb.mxu1 %v2447_v14  ;;  %2760 = vmatpush.msra.mxu0 %v2380_v27  ;;  %v2820_v14 = vld [vmem:[%s4628_s11 + $0xa8] sm:$0xff]  ;;  %v2799_v27 = vld [vmem:[%s4628_s11] sm:$0xff] }
 0x51a   :  { %2870 = vmatpush.msra.mxu2 %v2811_v46  ;;  %2888 = vmatpush.msra.mxu3 %v2829_v49  ;;  %v2859_v49 = vld [vmem:[%s4628_s11 + $0x1e0] sm:$0xff] }
 0x51b   :  { %2700 = vmatpush.msrb.mxu1 %v2443_v6  ;;  %2761 = vmatpush.msra.mxu0 %v2376_v53  ;;  %v2819_v6 = vld [vmem:[%s4628_s11 + $0xa0] sm:$0xff]  ;;  %v2846_v53 = vld [vmem:[%s4628_s11 + $0x178] sm:$0xff] }
 0x51c   :  { %2871 = vmatpush.msra.mxu2 %v2810_v21  ;;  %2889 = vmatpush.msra.mxu3 %v2828_v35 }
 0x51d   :  { %2701 = vmatpush.msrb.mxu1 %v2439_v5  ;;  %2762 = vmatpush.msra.mxu0 %v2372_v3  ;;  %v2818_v5 = vld [vmem:[%s4628_s11 + $0x98] sm:$0xff]  ;;  %v2845_v3 = vld [vmem:[%s4628_s11 + $0x170] sm:$0xff] }
 0x51e   :  { %2872 = vmatpush.msra.mxu2 %v2809_v36  ;;  %2890 = vmatpush.msra.mxu3 %v2827_v11  ;;  %v2857_v11 = vld [vmem:[%s4628_s11 + $0x1d0] sm:$0xff] }
 0x51f   :  { %2702 = vmatpush.msrb.mxu1 %v2435_v61  ;;  %2763 = vmatpush.msra.mxu0 %v2368_v16  ;;  %v2817_v61 = vld [vmem:[%s4628_s11 + $0x90] sm:$0xff]  ;;  %v2844_v16 = vld [vmem:[%s4628_s11 + $0x168] sm:$0xff] }
 0x520   :  { %2873 = vmatpush.msra.mxu2 %v2808_v62  ;;  %2891 = vmatpush.msra.mxu3 %v2826_v37  ;;  %v2858_v62 = vld [vmem:[%s4628_s11 + $0x1d8] sm:$0xff]  ;;  %v2855_v37 = vld [vmem:[%s4628_s11 + $0x1c0] sm:$0xff] }
 0x521   :  { %2703 = vmatpush.msrb.mxu1 %v2431_v7  ;;  %2764 = vmatpush.msra.mxu0 %v2364_v25  ;;  %v2816_v7 = vld [vmem:[%s4628_s11 + $0x88] sm:$0xff]  ;;  %v2843_v25 = vld [vmem:[%s4628_s11 + $0x160] sm:$0xff] }
 0x522   :  { %2874 = vmatpush.msra.mxu2 %v2807_v56  ;;  %v2856_v56 = vld [vmem:[%s4628_s11 + $0x1c8] sm:$0xff] }
 0x523   :  { %2704 = vmatpush.msrb.mxu1 %v2427_v28  ;;  %2765 = vmatpush.msra.mxu0 %v2360_v12  ;;  %v2815_v28 = vld [vmem:[%s4628_s11 + $0x80] sm:$0xff]  ;;  %v2842_v12 = vld [vmem:[%s4628_s11 + $0x158] sm:$0xff] }
 0x524   :  { %2875 = vmatpush.msra.mxu2 %v2806_v38  ;;  %v2854_v38 = vld [vmem:[%s4628_s11 + $0x1b8] sm:$0xff] }
 0x525   :  { %2705 = vmatpush.msrb.mxu1 %v2423_v51  ;;  %2766 = vmatpush.msra.mxu0 %v2356_v47  ;;  %v2841_v51 = vld [vmem:[%s4628_s11 + $0x150] sm:$0xff]  ;;  %v2840_v47 = vld [vmem:[%s4628_s11 + $0x148] sm:$0xff] }
 0x526   :  { %2876 = vmatpush.msra.mxu2 %v2805_v43 }
 0x527   :  { %2706 = vmatpush.msrb.mxu1 %v2419_v24  ;;  %2767 = vmatpush.msra.mxu0 %v2352_v54  ;;  %v2839_v24 = vld [vmem:[%s4628_s11 + $0x140] sm:$0xff] }
 0x528   :  { %2877 = vmatpush.msra.mxu2 %v2804_v30  ;;  %v4533_v54 = vld [vmem:[%s4627_s10] sm:$0xf] }
 0x529   :  { %2707 = vmatpush.msrb.mxu1 %v2415_v42  ;;  %2768 = vmatpush.msra.mxu0 %v2348_v29  ;;  %v2838_v42 = vld [vmem:[%s4628_s11 + $0x138] sm:$0xff]  ;;  %v2469_v43 = vperm.slane %v4533_v54, 2 }
 0x52a   :  { %2878 = vmatpush.msra.mxu2 %v2803_v55 }
 0x52b   :  { %2708 = vmatpush.msrb.mxu1 %v2411_v59  ;;  %2769 = vmatpush.msra.mxu0 %v2344_v26  ;;  %v2837_v59 = vld [vmem:[%s4628_s11 + $0x130] sm:$0xff]  ;;  %v2467_v26 = vperm.slane %v4533_v54, 0 }
 0x52c   :  { %2879 = vmatpush.msra.mxu2 %v2802_v19  ;;  %v2850_v19 = vld [vmem:[%s4628_s11 + $0x198] sm:$0xff] }
 0x52d   :  { %2709 = vmatpush.msrb.mxu1 %v2407_v32  ;;  %2770 = vmatpush.msra.mxu0 %v2340_v22  ;;  %v2836_v22 = vld [vmem:[%s4628_s11 + $0x128] sm:$0xff] }
 0x52e   :  { %2771 = vmatmul.f32.vlgmr.msra.gmra.mxu0 %v4394_v58  ;;  %v2428_v58 = vld [vmem:[#allocation6 + $0x6d8] sm:$0xff]  ;;  %2880 = vmatpush.msra.mxu2 %v2801_v48 }
 0x52f   :  { %2710 = vmatpush.msrb.mxu1 %v2403_v44  ;;  %2907 = vmatpush.msrb.mxu0 %v2846_v53  ;;  %v2848_v53 = vld [vmem:[%s4628_s11 + $0x188] sm:$0xff] }
 0x530   :  { %2711 = vmatmul.f32.vlgmr.msrb.gmra.mxu1 %v4401_v57  ;;  %2881 = vmatpush.msra.mxu2 %v2800_v10 }
 0x531   :  { %2775 = vmatpush.msra.mxu1 %v2464_v13  ;;  %2908 = vmatpush.msrb.mxu0 %v2845_v3  ;;  %v2835_v13 = vld [vmem:[%s4628_s11 + $0x120] sm:$0xff] }
 0x532   :  { %2882 = vmatpush.msra.mxu2 %v2799_v27  ;;  %v2847_v3 = vld [vmem:[%s4628_s11 + $0x180] sm:$0xff] }
 0x533   :  { %2776 = vmatpush.msra.mxu1 %v2460_v40  ;;  %2909 = vmatpush.msrb.mxu0 %v2844_v16 }
 0x535   :  { %2777 = vmatpush.msra.mxu1 %v2456_v34  ;;  %2910 = vmatpush.msrb.mxu0 %v2843_v25  ;;  %v2834_v34 = vld [vmem:[%s4628_s11 + $0x118] sm:$0xff] }
 0x537   :  { %2778 = vmatpush.msra.mxu1 %v2452_v33  ;;  %2911 = vmatpush.msrb.mxu0 %v2842_v12 }
 0x539   :  { %2779 = vmatpush.msra.mxu1 %v2448_v4  ;;  %2912 = vmatpush.msrb.mxu0 %v2841_v51  ;;  %v2468_v4 = vperm.slane %v4533_v54, 1 }
 0x53b   :  { %2780 = vmatpush.msra.mxu1 %v2444_v20  ;;  %2913 = vmatpush.msrb.mxu0 %v2840_v47 }
 0x53d   :  { %2781 = vmatpush.msra.mxu1 %v2440_v63  ;;  %2914 = vmatpush.msrb.mxu0 %v2839_v24 }
 0x53f   :  { %2782 = vmatpush.msra.mxu1 %v2436_v17  ;;  %2915 = vmatpush.msrb.mxu0 %v2838_v42 }
 0x541   :  { %2783 = vmatpush.msra.mxu1 %v2432_v1  ;;  %2916 = vmatpush.msrb.mxu0 %v2837_v59  ;;  %v2833_v1 = vld [vmem:[%s4628_s11 + $0x110] sm:$0xff] }
 0x543   :  { %2784 = vmatpush.msra.mxu1 %v2428_v58  ;;  %2917 = vmatpush.msrb.mxu0 %v2836_v22 }
 0x545   :  { %2785 = vmatpush.msra.mxu1 %v2424_v0  ;;  %2918 = vmatpush.msrb.mxu0 %v2835_v13 }
 0x547   :  { %2786 = vmatpush.msra.mxu1 %v2420_v23  ;;  %2919 = vmatpush.msrb.mxu0 %v2834_v34  ;;  %v2832_v23 = vld [vmem:[%s4628_s11 + $0x108] sm:$0xff] }
 0x549   :  { %2787 = vmatpush.msra.mxu1 %v2416_v45  ;;  %2920 = vmatpush.msrb.mxu0 %v2833_v1 }
 0x54b   :  { %2788 = vmatpush.msra.mxu1 %v2412_v50  ;;  %2921 = vmatpush.msrb.mxu0 %v2832_v23 }
 0x54d   :  { %2789 = vmatpush.msra.mxu1 %v2408_v15  ;;  %v2831_v15 = vld [vmem:[%s4628_s11 + $0x100] sm:$0xff] }
 0x54e   :  { %v2492_v29 = vpop.f32.mrf.mxu2  ;;  %2922 = vmatpush.msrb.mxu0 %v2831_v15 }
 0x54f   :  { %2790 = vmatpush.msra.mxu1 %v2404_v2  ;;  %v2493_v40 = vadd.f32 %v2492_v29, %v2467_v26  ;;  %v3105_v29 = vld [vmem:[%s4629_s12] ss:$0 sm:$0xff] }
 0x550   :  { %2791 = vmatmul.f32.vlgmr.msra.gmra.mxu1 %v4401_v57  ;;  %v2825_v57 = vld [vmem:[%s4628_s11 + $0xd0] sm:$0xff] }
 0x551   :  { %2892 = vmatpush.msra.mxu3 %v2825_v57  ;;  %2927 = vmatpush.msrb.mxu1 %v2862_v18  ;;  %v2853_v57 = vld [vmem:[%s4628_s11 + $0x1b0] sm:$0xff] }
 0x553   :  { %2893 = vmatpush.msra.mxu3 %v2824_v31  ;;  %2928 = vmatpush.msrb.mxu1 %v2861_v8  ;;  %v2852_v31 = vld [vmem:[%s4628_s11 + $0x1a8] sm:$0xff] }
 0x555   :  { %2894 = vmatpush.msra.mxu3 %v2823_v60  ;;  %2929 = vmatpush.msrb.mxu1 %v2860_v41  ;;  %v2851_v60 = vld [vmem:[%s4628_s11 + $0x1a0] sm:$0xff] }
 0x556   :  { %v2572_v63 = vpop.f32.mrf.mxu2 }
 0x557   :  { %2895 = vmatpush.msra.mxu3 %v2822_v39  ;;  %v2512_v32 = vpop.f32.mrf.mxu3  ;;  %v2573_v45 = vadd.f32 %v2572_v63, %v2468_v4  ;;  %2930 = vmatpush.msrb.mxu1 %v2859_v49 }
 0x558   :  { %v2513_v33 = vadd.f32 %v2512_v32, %v2493_v40 }
 0x559   :  { %2896 = vmatpush.msra.mxu3 %v2821_v9  ;;  %2931 = vmatpush.msrb.mxu1 %v2858_v62 }
 0x55b   :  { %2897 = vmatpush.msra.mxu3 %v2820_v14  ;;  %2932 = vmatpush.msrb.mxu1 %v2857_v11  ;;  %v2849_v14 = vld [vmem:[%s4628_s11 + $0x190] sm:$0xff] }
 0x55d   :  { %2898 = vmatpush.msra.mxu3 %v2819_v6  ;;  %2933 = vmatpush.msrb.mxu1 %v2856_v56 }
 0x55f   :  { %2899 = vmatpush.msra.mxu3 %v2818_v5  ;;  %v2592_v0 = vpop.f32.mrf.mxu3  ;;  %2934 = vmatpush.msrb.mxu1 %v2855_v37 }
 0x560   :  { %v2593_v52 = vadd.f32 %v2592_v0, %v2573_v45 }
 0x561   :  { %2900 = vmatpush.msra.mxu3 %v2817_v61  ;;  %2935 = vmatpush.msrb.mxu1 %v2854_v38  ;;  %v2470_v61 = vperm.slane %v4533_v54, 3 }
 0x563   :  { %2901 = vmatpush.msra.mxu3 %v2816_v7  ;;  %2936 = vmatpush.msrb.mxu1 %v2853_v57 }
 0x565   :  { %2902 = vmatpush.msra.mxu3 %v2815_v28  ;;  %2937 = vmatpush.msrb.mxu1 %v2852_v31 }
 0x567   :  { %2938 = vmatpush.msrb.mxu1 %v2851_v60 }
 0x569   :  { %2939 = vmatpush.msrb.mxu1 %v2850_v19 }
 0x56b   :  { %v2532_v44 = vpop.f32.mrf.mxu0  ;;  %2940 = vmatpush.msrb.mxu1 %v2849_v14 }
 0x56c   :  { %v2533_v20 = vadd.f32 %v2532_v44, %v2513_v33 }
 0x56d   :  { %2941 = vmatpush.msrb.mxu1 %v2848_v53 }
 0x56e   :  { %v2652_v30 = vpop.f32.mrf.mxu2 }
 0x56f   :  { %v2653_v39 = vadd.f32 %v2652_v30, %v2469_v43  ;;  %2942 = vmatpush.msrb.mxu1 %v2847_v3 }
 0x573   :  { %v2612_v2 = vpop.f32.mrf.mxu0 }
 0x574   :  { %v2613_v46 = vadd.f32 %v2612_v2, %v2593_v52 }
 0x577   :  { %v2672_v55 = vpop.f32.mrf.mxu3 }
 0x578   :  { %v2673_v9 = vadd.f32 %v2672_v55, %v2653_v39 }
 0x58b   :  { %v2692_v48 = vpop.f32.mrf.mxu0 }
 0x58c   :  { %v2693_v10 = vadd.f32 %v2692_v48, %v2673_v9 }
 0x58d   :  { %v2552_v17 = vpop.f32.mrf.mxu1 }
 0x58e   :  { %v2553_v58 = vadd.f32 %v2552_v17, %v2533_v20 }
 0x58f   :  { %v2732_v16 = vpop.f32.mrf.mxu2 }
 0x590   :  { %v2795_v50 = vmax.f32 %v2553_v58, 0.0  ;;  %v2733_v25 = vadd.f32 %v2732_v16, %v2470_v61 }
 0x592   :  { %2883 = vmatmul.f32.vlgmr.msra.gmra.mxu2 %v2795_v50 }
 0x595   :  { %v2632_v21 = vpop.f32.mrf.mxu1 }
 0x596   :  { %v2633_v36 = vadd.f32 %v2632_v21, %v2613_v46 }
 0x598   :  { %v2796_v35 = vmax.f32 %v2633_v36, 0.0 }
 0x599   :  { %v2752_v7 = vpop.f32.mrf.mxu3 }
 0x59a   :  { %2903 = vmatmul.f32.vlgmr.msra.gmra.mxu3 %v2796_v35  ;;  %v2753_v12 = vadd.f32 %v2752_v7, %v2733_v25 }
 0x5ab   :  { %v2772_v28 = vpop.f32.mrf.mxu0 }
 0x5ac   :  { %v2773_v51 = vadd.f32 %v2772_v28, %v2753_v12 }
 0x5ad   :  { %v2712_v27 = vpop.f32.mrf.mxu1 }
 0x5ae   :  { %v2713_v6 = vadd.f32 %v2712_v27, %v2693_v10 }
 0x5b0   :  { %v2797_v5 = vmax.f32 %v2713_v6, 0.0 }
 0x5b2   :  { %2923 = vmatmul.f32.vlgmr.msrb.gmra.mxu0 %v2797_v5 }
 0x5cd   :  { %v2792_v47 = vpop.f32.mrf.mxu1 }
 0x5ce   :  { %v2793_v24 = vadd.f32 %v2792_v47, %v2773_v51 }
 0x5d0   :  { %v2798_v42 = vmax.f32 %v2793_v24, 0.0 }
 0x5d2   :  { %2943 = vmatmul.f32.vlgmr.msrb.gmra.mxu1 %v2798_v42 }
 0x615   :  { %v2884_v59 = vpop.f32.mrf.mxu2 }
 0x616   :  { %v2885_v32 = vadd.f32 %v3105_v29, %v2884_v59 }
 0x61d   :  { %v2904_v26 = vpop.f32.mrf.mxu3 }
 0x61e   :  { %v2905_v44 = vadd.f32 %v2904_v26, %v2885_v32 }
 0x62f   :  { %v2924_v22 = vpop.f32.mrf.mxu0 }
 0x630   :  { %v2925_v54 = vadd.f32 %v2924_v22, %v2905_v44 }
 0x64f   :  { %v2944_v13 = vpop.f32.mrf.mxu1 }
 0x650   :  { %v2945_v40 = vadd.f32 %v2944_v13, %v2925_v54 }
 0x652   :  { %2947 = vst [vmem:[%s4630_s13] sm:$0xff] %v2945_v40 }
 0x653   :  { %2952 = vsyncpa [#allocation3], 1 }
 0x654   :  { %2953 = vsyncpa [#allocation5], 1 }

</bundles_post_ra>
